<compile_context>
chip_gen: v7x
topology: tpu7x:2x2x1
jax: 0.10.0
libtpu: 0.0.40
codegen_flags: <defaults>
</compile_context>

<pallas_src>
import numpy as np
import jax
import jax.numpy as jnp
from jax.experimental import pallas as pl
from jax.experimental.pallas import tpu as pltpu

# ---- small, module-consistent sizes -------------------------------------------------
BATCH      = 2
FRAMES     = 8
CHANNELS   = 3
FRAME_SIZE = 16
IN_DIM     = FRAMES * CHANNELS * FRAME_SIZE * FRAME_SIZE   # 6144 (flattened video)
FEAT_DIM   = 256                                           # encoder.fc.in_features surrogate
LATENT_DIM = 128                                           # latent_dim (lane-dense)


# ---- deterministic parameter init ---------------------------------------------------
def make_params():
    rng = np.random.default_rng(0)
    # encoder surrogate: flatten -> linear -> ReLU.  Weights in bf16 (halves HBM
    # traffic of the dominant 6.3 MB f32 fetch); biases stay f32.
    we = (rng.standard_normal((IN_DIM, FEAT_DIM)).astype(np.float32)
          / np.float32(np.sqrt(IN_DIM)))
    be = np.zeros((1, FEAT_DIM), np.float32)
    # fc_mu and fc_log_var packed side by side: [FEAT_DIM, 2*LATENT_DIM]
    wmu = (rng.standard_normal((FEAT_DIM, LATENT_DIM)).astype(np.float32)
           / np.float32(np.sqrt(FEAT_DIM)))
    wlv = (rng.standard_normal((FEAT_DIM, LATENT_DIM)).astype(np.float32)
           / np.float32(np.sqrt(FEAT_DIM)))
    whead = np.concatenate([wmu, wlv], axis=1)             # [FEAT_DIM, 2*LATENT_DIM]
    bhead = np.zeros((1, 2 * LATENT_DIM), np.float32)
    return (jnp.asarray(we, dtype=jnp.bfloat16), jnp.asarray(be),
            jnp.asarray(whead, dtype=jnp.bfloat16), jnp.asarray(bhead))


# ---- fused Pallas kernel: encoder + fc_mu + fc_log_var + reparameterize --------------
def vae_kernel(x_ref, we_ref, be_ref, wh_ref, bh_ref, eps_ref,
               z_ref, mu_ref, lv_ref):
    # encoder surrogate: [B, IN_DIM] @ [IN_DIM, F] -> ReLU
    # bf16 x bf16 MXU matmul with f32 accumulation.
    x_bf = x_ref[...].astype(jnp.bfloat16)
    feats = jnp.dot(x_bf, we_ref[...],
                    preferred_element_type=jnp.float32) + be_ref[...]
    feats = jnp.maximum(feats, 0.0)

    # fused heads: [B, F] @ [F, 2L] -> split into mu | log_var at lane-aligned 128
    head = jnp.dot(feats.astype(jnp.bfloat16), wh_ref[...],
                   preferred_element_type=jnp.float32) + bh_ref[...]
    mu = head[:, :LATENT_DIM]
    log_var = head[:, LATENT_DIM:]

    # reparameterize: z = mu + eps * exp(0.5 * log_var)
    std = jnp.exp(0.5 * log_var)
    z_ref[...] = mu + eps_ref[...] * std
    mu_ref[...] = mu
    lv_ref[...] = log_var


# ---- wrapper ------------------------------------------------------------------------
def video_vae_forward(x, eps, params):
    we, be, wh, bh = params
    B = x.shape[0]
    x_flat = x.reshape(B, IN_DIM)

    out_shapes = (
        jax.ShapeDtypeStruct((B, LATENT_DIM), jnp.float32),  # z
        jax.ShapeDtypeStruct((B, LATENT_DIM), jnp.float32),  # mu
        jax.ShapeDtypeStruct((B, LATENT_DIM), jnp.float32),  # log_var
    )

    # Advisory cost estimate so XLA can overlap the (dominant) weight fetch with
    # neighboring ops in the surrounding graph.
    flops = 2 * B * (IN_DIM * FEAT_DIM + FEAT_DIM * 2 * LATENT_DIM)
    bytes_accessed = (
        x_flat.size * 4                    # x (f32)
        + we.size * 2 + wh.size * 2        # bf16 weights
        + be.size * 4 + bh.size * 4        # f32 biases
        + eps.size * 4                     # eps
        + 3 * B * LATENT_DIM * 4           # z, mu, log_var
    )
    cost = pl.CostEstimate(flops=flops,
                           transcendentals=B * LATENT_DIM,
                           bytes_accessed=bytes_accessed)

    z, mu, log_var = pl.pallas_call(
        vae_kernel,
        out_shape=out_shapes,
        in_specs=[
            pl.BlockSpec((B, IN_DIM), lambda: (0, 0)),
            pl.BlockSpec((IN_DIM, FEAT_DIM), lambda: (0, 0)),
            pl.BlockSpec((1, FEAT_DIM), lambda: (0, 0)),
            pl.BlockSpec((FEAT_DIM, 2 * LATENT_DIM), lambda: (0, 0)),
            pl.BlockSpec((1, 2 * LATENT_DIM), lambda: (0, 0)),
            pl.BlockSpec((B, LATENT_DIM), lambda: (0, 0)),
        ],
        out_specs=(
            pl.BlockSpec((B, LATENT_DIM), lambda: (0, 0)),
            pl.BlockSpec((B, LATENT_DIM), lambda: (0, 0)),
            pl.BlockSpec((B, LATENT_DIM), lambda: (0, 0)),
        ),
        cost_estimate=cost,
        # Real footprint < 8 MiB; 16 MiB is safe on v5e/v6e/v7x (v7x physical = 64 MiB/TC).
        compiler_params=pltpu.CompilerParams(vmem_limit_bytes=16 * 1024 * 1024),
    )(x_flat, we, be, wh, bh, eps)

    return z, mu, log_var


if __name__ == "__main__":
    key = jax.random.PRNGKey(0)
    kx, keps = jax.random.split(key)

    # deterministic example video input [B, T, C, H, W]
    x = jax.random.normal(kx, (BATCH, FRAMES, CHANNELS, FRAME_SIZE, FRAME_SIZE),
                          dtype=jnp.float32)
    # eps for the reparameterization trick (torch.randn_like equivalent, host-side)
    eps = jax.random.normal(keps, (BATCH, LATENT_DIM), dtype=jnp.float32)

    params = make_params()
    z, mu, log_var = video_vae_forward(x, eps, params)
    z = jax.block_until_ready(z)
    mu = jax.block_until_ready(mu)
    log_var = jax.block_until_ready(log_var)

    assert z.shape == (BATCH, LATENT_DIM), z.shape
    assert mu.shape == (BATCH, LATENT_DIM), mu.shape
    assert log_var.shape == (BATCH, LATENT_DIM), log_var.shape
    assert bool(jnp.all(jnp.isfinite(z)))
    assert bool(jnp.all(jnp.isfinite(mu)))
    assert bool(jnp.all(jnp.isfinite(log_var)))
    # reparameterize consistency: z == mu + eps * exp(0.5 * log_var)
    # (self-consistent in f32: mu/log_var are the kernel's own f32 outputs)
    ref_z = mu + eps * jnp.exp(0.5 * log_var)
    assert bool(jnp.allclose(z, ref_z, atol=1e-5, rtol=1e-5))
    print("KERNEL_OK")
</pallas_src>

<mosaic_0001>
module attributes {stable_mosaic.version = 11 : i64} {
  func.func @vae_kernel(%arg0: memref<2x6144xf32, #tpu.memory_space<vmem>>, %arg1: memref<6144x256xbf16, #tpu.memory_space<vmem>>, %arg2: memref<1x256xf32, #tpu.memory_space<vmem>>, %arg3: memref<256x256xbf16, #tpu.memory_space<vmem>>, %arg4: memref<1x256xf32, #tpu.memory_space<vmem>>, %arg5: memref<2x128xf32, #tpu.memory_space<vmem>>, %arg6: memref<2x128xf32, #tpu.memory_space<vmem>>, %arg7: memref<2x128xf32, #tpu.memory_space<vmem>>, %arg8: memref<2x128xf32, #tpu.memory_space<vmem>>) attributes {dimension_semantics = [], scalar_prefetch = 0 : i64, scratch_operands = 0 : i64, tpu.core_type = #tpu.core_type<tc>} {
    %c0 = arith.constant 0 : index
    %c0_0 = arith.constant 0 : index
    %0 = vector.load %arg0[%c0, %c0_0] : memref<2x6144xf32, #tpu.memory_space<vmem>>, vector<2x6144xf32>
    %1 = arith.truncf %0 : vector<2x6144xf32> to vector<2x6144xbf16>
    %c0_1 = arith.constant 0 : index
    %c0_2 = arith.constant 0 : index
    %2 = vector.load %arg1[%c0_1, %c0_2] : memref<6144x256xbf16, #tpu.memory_space<vmem>>, vector<6144x256xbf16>
    %cst = arith.constant dense<0.000000e+00> : vector<2x256xf32>
    %3 = tpu.matmul %1, %2, %cst {dimension_numbers = #tpu.dot_dimension_numbers<[1], [0], [0], [1], [0, 0, 1, 1], [], []>} : vector<2x6144xbf16>, vector<6144x256xbf16>, vector<2x256xf32> -> vector<2x256xf32>
    %c0_3 = arith.constant 0 : index
    %c0_4 = arith.constant 0 : index
    %4 = vector.load %arg2[%c0_3, %c0_4] : memref<1x256xf32, #tpu.memory_space<vmem>>, vector<1x256xf32>
    %5 = vector.broadcast %4 : vector<1x256xf32> to vector<2x256xf32>
    %6 = arith.addf %3, %5 : vector<2x256xf32>
    %cst_5 = arith.constant 0.000000e+00 : f32
    %7 = vector.broadcast %cst_5 : f32 to vector<2x256xf32>
    %8 = arith.maximumf %6, %7 : vector<2x256xf32>
    %9 = arith.truncf %8 : vector<2x256xf32> to vector<2x256xbf16>
    %c0_6 = arith.constant 0 : index
    %c0_7 = arith.constant 0 : index
    %10 = vector.load %arg3[%c0_6, %c0_7] : memref<256x256xbf16, #tpu.memory_space<vmem>>, vector<256x256xbf16>
    %cst_8 = arith.constant dense<0.000000e+00> : vector<2x256xf32>
    %11 = tpu.matmul %9, %10, %cst_8 {dimension_numbers = #tpu.dot_dimension_numbers<[1], [0], [0], [1], [0, 0, 1, 1], [], []>} : vector<2x256xbf16>, vector<256x256xbf16>, vector<2x256xf32> -> vector<2x256xf32>
    %c0_9 = arith.constant 0 : index
    %c0_10 = arith.constant 0 : index
    %12 = vector.load %arg4[%c0_9, %c0_10] : memref<1x256xf32, #tpu.memory_space<vmem>>, vector<1x256xf32>
    %13 = vector.broadcast %12 : vector<1x256xf32> to vector<2x256xf32>
    %14 = arith.addf %11, %13 : vector<2x256xf32>
    %15 = vector.extract_strided_slice %14 {offsets = [0, 0], sizes = [2, 128], strides = [1, 1]} : vector<2x256xf32> to vector<2x128xf32>
    %16 = vector.extract_strided_slice %14 {offsets = [0, 128], sizes = [2, 128], strides = [1, 1]} : vector<2x256xf32> to vector<2x128xf32>
    %cst_11 = arith.constant 5.000000e-01 : f32
    %17 = vector.broadcast %cst_11 : f32 to vector<2x128xf32>
    %18 = arith.mulf %17, %16 : vector<2x128xf32>
    %19 = math.exp %18 : vector<2x128xf32>
    %c0_12 = arith.constant 0 : index
    %c0_13 = arith.constant 0 : index
    %20 = vector.load %arg5[%c0_12, %c0_13] : memref<2x128xf32, #tpu.memory_space<vmem>>, vector<2x128xf32>
    %21 = arith.mulf %20, %19 : vector<2x128xf32>
    %22 = arith.addf %15, %21 : vector<2x128xf32>
    %c0_14 = arith.constant 0 : index
    %c0_15 = arith.constant 0 : index
    %23 = vector.load %arg6[%c0_14, %c0_15] : memref<2x128xf32, #tpu.memory_space<vmem>>, vector<2x128xf32>
    tpu.vector_store %arg6[%c0_14, %c0_15], %22 {strides = array<i32>} : memref<2x128xf32, #tpu.memory_space<vmem>>, vector<2x128xf32>,
    %c0_16 = arith.constant 0 : index
    %c0_17 = arith.constant 0 : index
    %24 = vector.load %arg7[%c0_16, %c0_17] : memref<2x128xf32, #tpu.memory_space<vmem>>, vector<2x128xf32>
    tpu.vector_store %arg7[%c0_16, %c0_17], %15 {strides = array<i32>} : memref<2x128xf32, #tpu.memory_space<vmem>>, vector<2x128xf32>,
    %c0_18 = arith.constant 0 : index
    %c0_19 = arith.constant 0 : index
    %25 = vector.load %arg8[%c0_18, %c0_19] : memref<2x128xf32, #tpu.memory_space<vmem>>, vector<2x128xf32>
    tpu.vector_store %arg8[%c0_18, %c0_19], %16 {strides = array<i32>} : memref<2x128xf32, #tpu.memory_space<vmem>>, vector<2x128xf32>,
    return
  }
}

</mosaic_0001>

<bundles_post_ra>
// kernel: tpu_custom_call.1
= control target key start
LH: loop header
LB: loop body
LE: loop exit
PB: predicated region body
PF: predicated region fallthrough
CT: control target
= control target key end

     0   :  { %14 = vsyncpa [#allocation3], 0  ;;  %s9053_s0 = inlined_call_operand.hbm [shape: f32[2,6144], index: 0, kind: input, shape index: {}]   ;;  %s9054_s1 = inlined_call_operand.hbm [shape: bf16[6144,256], index: 1, kind: input, shape index: {}]   ;;  %s9055_s2 = inlined_call_operand.hbm [shape: f32[1,256], index: 2, kind: input, shape index: {}]   ;;  %s9056_s3 = inlined_call_operand.hbm [shape: bf16[256,256], index: 3, kind: input, shape index: {}]   ;;  %s9057_s4 = inlined_call_operand.hbm [shape: f32[1,256], index: 4, kind: input, shape index: {}]   ;;  %s9058_s5 = inlined_call_operand.hbm [shape: f32[2,128], index: 5, kind: input, shape index: {}]   ;;  %s9059_s6 = inlined_call_operand.hbm [shape: f32[2,128], index: 6, kind: output, shape index: {0}]   ;;  %s9060_s7 = inlined_call_operand.hbm [shape: f32[2,128], index: 7, kind: output, shape index: {1}]   ;;  %s9061_s8 = inlined_call_operand.hbm [shape: f32[2,128], index: 8, kind: output, shape index: {2}]  }
   0x1   :  { %15 = vsyncpa [#allocation6], 0 }
   0x2   :  { %16 = vsyncpa [#allocation9], 0 }
   0x3   :  { %17 = vsyncpa [#allocation12], 0 }
   0x4   :  { %18 = vsyncpa [#allocation4], 0 }
   0x5   :  { %19 = vsyncpa [#allocation15], 0  ;;  %s8663_s27 = smov [#allocation5]   ;;  %s8453_s9 = scalar_lea.hbm %s9054_s1, 98304 }
   0x6   :  { %s35_s28 = sshll.u32 %s8663_s27, 4  ;;  %p8454_p0 = scmp.ne.s32.totalorder %s9054_s1, %s8453_s9  ;;  %s36_s28 = int_to_ptr.vmem [resolvable:$true] %s35_s28 }
   0x7   :  { %p8457_p1 = scmp.lt.u32.totalorder %s8453_s9, %s9054_s1 }
   0x9   :  { %p8459_p2 = pnand %p8457_p1, %p8454_p0 }
   0xb   :  { %8462 = shalt.err (!%p8459_p2)
}
   0xc   :  { %s8463_s14 = scalar_lea.vmem %s36_s28, 98304  ;;  %p8468_p4 = scmp.lt.s32.totalorder %s36_s28, %s36_s28 }
   0xd   :  { %p8464_p3 = scmp.ne.s32.totalorder %s36_s28, %s8463_s14  ;;  %p8469_p5 = scmp.lt.s32.totalorder %s8463_s14, %s8463_s14 }
   0xf   :  { %p8470_p6 = por %p8469_p5, %p8468_p4 }
  0x11   :  { %p8471_p7 = pnand %p8470_p6, %p8464_p3 }
  0x13   :  { %8474 = shalt.err (!%p8471_p7)
}
  0x14   :  { %s8664_s15 = smov 128   ;;  %s8665_s16 = smov 8  }
  0x15   :  { %41 = dma.hbm_to_vmem [thread:$0]  %s9054_s1, 98304, %s36_s28, [#allocation6], %s8664_s15, %s8664_s15, %s8665_s16  }
  0x16   :  { %s8666_s19 = smov [#allocation8]   ;;  %s8667_s21 = smov [#allocation2]  }
  0x17   :  { %s57_s20 = sshll.u32 %s8666_s19, 4  ;;  %s26_s22 = sshll.u32 %s8667_s21, 4  ;;  %s58_s20 = int_to_ptr.vmem [resolvable:$true] %s57_s20  ;;  %s27_s22 = int_to_ptr.vmem [resolvable:$true] %s26_s22 }
  0x18   :  { %s8475_s25 = scalar_lea.hbm %s9056_s3, 4096 }
  0x19   :  { %p8476_p8 = scmp.ne.s32.totalorder %s9056_s3, %s8475_s25  ;;  %p8479_p9 = scmp.lt.u32.totalorder %s8475_s25, %s9056_s3 }
  0x1b   :  { %p8481_p10 = pnand %p8479_p9, %p8476_p8 }
  0x1d   :  { %8484 = shalt.err (!%p8481_p10)
}
  0x1e   :  { %s8485_s1 = scalar_lea.vmem %s58_s20, 4096  ;;  %p8490_p12 = scmp.lt.s32.totalorder %s58_s20, %s58_s20 }
  0x1f   :  { %p8486_p11 = scmp.ne.s32.totalorder %s58_s20, %s8485_s1  ;;  %p8491_p13 = scmp.lt.s32.totalorder %s8485_s1, %s8485_s1 }
  0x21   :  { %p8492_p0 = por %p8491_p13, %p8490_p12 }
  0x23   :  { %p8493_p1 = pnand %p8492_p0, %p8486_p11 }
  0x25   :  { %8496 = shalt.err (!%p8493_p1)
}
  0x26   :  { %63 = dma.hbm_to_vmem [thread:$0]  %s9056_s3, 4096, %s58_s20, [#allocation9], %s8664_s15, %s8664_s15, %s8665_s16  }
  0x27   :  { %s8497_s12 = scalar_lea.hbm %s9053_s0, 1536 }
  0x28   :  { %p8498_p2 = scmp.ne.s32.totalorder %s9053_s0, %s8497_s12  ;;  %p8501_p3 = scmp.lt.u32.totalorder %s8497_s12, %s9053_s0 }
  0x2a   :  { %p8503_p4 = pnand %p8501_p3, %p8498_p2 }
  0x2c   :  { %8506 = shalt.err (!%p8503_p4)
}
  0x2d   :  { %s8507_s19 = scalar_lea.vmem %s27_s22, 1536  ;;  %p8512_p6 = scmp.lt.s32.totalorder %s27_s22, %s27_s22 }
  0x2e   :  { %p8508_p5 = scmp.ne.s32.totalorder %s27_s22, %s8507_s19  ;;  %p8513_p7 = scmp.lt.s32.totalorder %s8507_s19, %s8507_s19 }
  0x30   :  { %p8514_p8 = por %p8513_p7, %p8512_p6 }
  0x32   :  { %p8515_p9 = pnand %p8514_p8, %p8508_p5 }
  0x34   :  { %8518 = shalt.err (!%p8515_p9)
}
  0x35   :  { %29 = dma.hbm_to_vmem [thread:$0]  %s9053_s0, 1536, %s27_s22, [#allocation3]  }
  0x36   :  { %s8668_s16 = smov [#allocation7]   ;;  %s8669_s21 = smov [#allocation10]  }
  0x37   :  { %s48_s20 = sshll.u32 %s8668_s16, 4  ;;  %s70_s23 = sshll.u32 %s8669_s21, 4  ;;  %s49_s20 = int_to_ptr.vmem [resolvable:$true] %s48_s20  ;;  %s71_s23 = int_to_ptr.vmem [resolvable:$true] %s70_s23 }
  0x38   :  { %s8519_s26 = scalar_lea.hbm %s9055_s2, 32 }
  0x39   :  { %p8520_p10 = scmp.ne.s32.totalorder %s9055_s2, %s8519_s26  ;;  %p8523_p11 = scmp.lt.u32.totalorder %s8519_s26, %s9055_s2 }
  0x3b   :  { %p8525_p12 = pnand %p8523_p11, %p8520_p10 }
  0x3d   :  { %8528 = shalt.err (!%p8525_p12)
}
  0x3e   :  { %s8529_s0 = scalar_lea.vmem %s49_s20, 32  ;;  %p8534_p0 = scmp.lt.s32.totalorder %s49_s20, %s49_s20 }
  0x3f   :  { %p8530_p13 = scmp.ne.s32.totalorder %s49_s20, %s8529_s0  ;;  %p8535_p1 = scmp.lt.s32.totalorder %s8529_s0, %s8529_s0 }
  0x41   :  { %p8536_p2 = por %p8535_p1, %p8534_p0 }
  0x43   :  { %p8537_p3 = pnand %p8536_p2, %p8530_p13 }
  0x45   :  { %8540 = shalt.err (!%p8537_p3)
}
  0x46   :  { %51 = dma.hbm_to_vmem [thread:$0]  %s9055_s2, 32, %s49_s20, [#allocation6]  }
  0x47   :  { %s8541_s11 = scalar_lea.hbm %s9057_s4, 32 }
  0x48   :  { %p8542_p4 = scmp.ne.s32.totalorder %s9057_s4, %s8541_s11  ;;  %p8545_p5 = scmp.lt.u32.totalorder %s8541_s11, %s9057_s4 }
  0x4a   :  { %p8547_p6 = pnand %p8545_p5, %p8542_p4 }
  0x4c   :  { %8550 = shalt.err (!%p8547_p6)
}
  0x4d   :  { %s8551_s18 = scalar_lea.vmem %s71_s23, 32  ;;  %p8556_p8 = scmp.lt.s32.totalorder %s71_s23, %s71_s23 }
  0x4e   :  { %p8552_p7 = scmp.ne.s32.totalorder %s71_s23, %s8551_s18  ;;  %p8557_p9 = scmp.lt.s32.totalorder %s8551_s18, %s8551_s18 }
  0x50   :  { %p8558_p10 = por %p8557_p9, %p8556_p8 }
  0x52   :  { %p8559_p11 = pnand %p8558_p10, %p8552_p7 }
  0x54   :  { %8562 = shalt.err (!%p8559_p11)
}
  0x55   :  { %73 = dma.hbm_to_vmem [thread:$0]  %s9057_s4, 32, %s71_s23, [#allocation9]  }
  0x56   :  { %s8670_s3 = smov [#allocation11]   ;;  %s8563_s21 = scalar_lea.hbm %s9058_s5, 32 }
  0x57   :  { %s80_s15 = sshll.u32 %s8670_s3, 4  ;;  %p8564_p12 = scmp.ne.s32.totalorder %s9058_s5, %s8563_s21  ;;  %s81_s15 = int_to_ptr.vmem [resolvable:$true] %s80_s15 }
  0x58   :  { %p8567_p13 = scmp.lt.u32.totalorder %s8563_s21, %s9058_s5 }
  0x5a   :  { %p8569_p0 = pnand %p8567_p13, %p8564_p12 }
  0x5c   :  { %8572 = shalt.err (!%p8569_p0)
}
  0x5d   :  { %s8573_s29 = scalar_lea.vmem %s81_s15, 32  ;;  %p8578_p2 = scmp.lt.s32.totalorder %s81_s15, %s81_s15 }
  0x5e   :  { %p8574_p1 = scmp.ne.s32.totalorder %s81_s15, %s8573_s29  ;;  %p8579_p3 = scmp.lt.s32.totalorder %s8573_s29, %s8573_s29 }
  0x60   :  { %p8580_p4 = por %p8579_p3, %p8578_p2 }
  0x62   :  { %p8581_p5 = pnand %p8580_p4, %p8574_p1 }
  0x64   :  { %8584 = shalt.err (!%p8581_p5)
}
  0x65   :  { %83 = dma.hbm_to_vmem [thread:$0]  %s9058_s5, 32, %s81_s15, [#allocation12]  }
  0x66   :  { %8651 = dma.done.wait [#allocation3], 1536  }
  0x67   :  { %8652 = vsyncadd [#allocation3], 4294965760 }
  0x68   :  { %8653 = dma.done.wait [#allocation6], 98336  }
  0x69   :  { %8654 = vsyncadd [#allocation6], 4294868960 }
  0x6a   :  { %8655 = dma.done.wait [#allocation9], 4128  }
  0x6b   :  { %8656 = vsyncadd [#allocation9], 4294963168 }
  0x6c   :  { %8657 = dma.done.wait [#allocation12], 32  }
  0x6d   :  { %8658 = vsyncadd [#allocation12], 4294967264  ;;  %v7237_v0 = vld [vmem:[#allocation5 + $0x4] ss:$8 sps:$4 sm:$0xff]   ;;  %v7241_v2 = vld [vmem:[#allocation5] ss:$8 sps:$4 sm:$0xff]   ;;  %v130_v38 = vlaneseq }
  0x6e   :  { %v7239_v1 = vld [vmem:[#allocation5 + $0xb04] ss:$8 sps:$4 sm:$0xff]   ;;  %5046 = vmatprep.subr.bf16.mxu1 %v7237_v0  ;;  %v7242_v3 = vld [vmem:[#allocation5 + $0xb00] ss:$8 sps:$4 sm:$0xff]   ;;  %v7243_v4 = vld [vmem:[#allocation5 + $0x14] ss:$8 sps:$4 sm:$0xff]  }
  0x6f   :  { %5497 = vmatprep.subr.bf16.mxu0 %v7239_v1  ;;  %5047 = vmatpush1.bf16.msra.mxu1 %v7241_v2  ;;  %v7245_v5 = vld [vmem:[#allocation5 + $0xb14] ss:$8 sps:$4 sm:$0xff]   ;;  %v7247_v6 = vld [vmem:[#allocation5 + $0x10] ss:$8 sps:$4 sm:$0xff]   ;;  %v7249_v8 = vld [vmem:[#allocation5 + $0x24] ss:$8 sps:$4 sm:$0xff]  }
  0x70   :  { %5498 = vmatpush1.bf16.msra.mxu0 %v7242_v3  ;;  %5048 = vmatprep.subr.bf16.mxu1 %v7243_v4  ;;  %v7248_v7 = vld [vmem:[#allocation5 + $0xb10] ss:$8 sps:$4 sm:$0xff]   ;;  %v7251_v9 = vld [vmem:[#allocation5 + $0xb24] ss:$8 sps:$4 sm:$0xff]   ;;  %v7253_v10 = vld [vmem:[#allocation5 + $0x20] ss:$8 sps:$4 sm:$0xff]  }
  0x71   :  { %5499 = vmatprep.subr.bf16.mxu0 %v7245_v5  ;;  %v7254_v11 = vld [vmem:[#allocation5 + $0xb20] ss:$8 sps:$4 sm:$0xff]   ;;  %v7255_v12 = vld [vmem:[#allocation5 + $0x34] ss:$8 sps:$4 sm:$0xff]   ;;  %v7259_v14 = vld [vmem:[#allocation5 + $0x30] ss:$8 sps:$4 sm:$0xff]  }
  0x72   :  { %v7257_v13 = vld [vmem:[#allocation5 + $0xb34] ss:$8 sps:$4 sm:$0xff]   ;;  %v7260_v15 = vld [vmem:[#allocation5 + $0xb30] ss:$8 sps:$4 sm:$0xff]   ;;  %v7261_v16 = vld [vmem:[#allocation5 + $0x44] ss:$8 sps:$4 sm:$0xff]  }
  0x73   :  { %5049 = vmatpush1.bf16.msra.mxu1 %v7247_v6  ;;  %v7263_v17 = vld [vmem:[#allocation5 + $0xb44] ss:$8 sps:$4 sm:$0xff]   ;;  %v7265_v18 = vld [vmem:[#allocation5 + $0x40] ss:$8 sps:$4 sm:$0xff]   ;;  %v7267_v20 = vld [vmem:[#allocation5 + $0x54] ss:$8 sps:$4 sm:$0xff]  }
  0x74   :  { %5500 = vmatpush1.bf16.msra.mxu0 %v7248_v7  ;;  %5050 = vmatprep.subr.bf16.mxu1 %v7249_v8  ;;  %v7266_v19 = vld [vmem:[#allocation5 + $0xb40] ss:$8 sps:$4 sm:$0xff]   ;;  %v7269_v21 = vld [vmem:[#allocation5 + $0xb54] ss:$8 sps:$4 sm:$0xff]   ;;  %v7271_v22 = vld [vmem:[#allocation5 + $0x50] ss:$8 sps:$4 sm:$0xff]  }
  0x75   :  { %5501 = vmatprep.subr.bf16.mxu0 %v7251_v9  ;;  %v7272_v23 = vld [vmem:[#allocation5 + $0xb50] ss:$8 sps:$4 sm:$0xff]   ;;  %v7273_v24 = vld [vmem:[#allocation5 + $0x64] ss:$8 sps:$4 sm:$0xff]   ;;  %v7277_v26 = vld [vmem:[#allocation5 + $0x60] ss:$8 sps:$4 sm:$0xff]  }
  0x76   :  { %v7275_v25 = vld [vmem:[#allocation5 + $0xb64] ss:$8 sps:$4 sm:$0xff]   ;;  %v7278_v27 = vld [vmem:[#allocation5 + $0xb60] ss:$8 sps:$4 sm:$0xff]   ;;  %v7279_v28 = vld [vmem:[#allocation5 + $0x74] ss:$8 sps:$4 sm:$0xff]  }
  0x77   :  { %5051 = vmatpush1.bf16.msra.mxu1 %v7253_v10  ;;  %v7281_v29 = vld [vmem:[#allocation5 + $0xb74] ss:$8 sps:$4 sm:$0xff]   ;;  %v7283_v30 = vld [vmem:[#allocation5 + $0x70] ss:$8 sps:$4 sm:$0xff]   ;;  %v7285_v32 = vld [vmem:[#allocation5 + $0x84] ss:$8 sps:$4 sm:$0xff]  }
  0x78   :  { %5502 = vmatpush1.bf16.msra.mxu0 %v7254_v11  ;;  %5052 = vmatprep.subr.bf16.mxu1 %v7255_v12  ;;  %v7284_v31 = vld [vmem:[#allocation5 + $0xb70] ss:$8 sps:$4 sm:$0xff]   ;;  %v7287_v33 = vld [vmem:[#allocation5 + $0xb84] ss:$8 sps:$4 sm:$0xff]   ;;  %v7289_v34 = vld [vmem:[#allocation5 + $0x80] ss:$8 sps:$4 sm:$0xff]  }
  0x79   :  { %5503 = vmatprep.subr.bf16.mxu0 %v7257_v13  ;;  %v7290_v35 = vld [vmem:[#allocation5 + $0xb80] ss:$8 sps:$4 sm:$0xff]   ;;  %v8671_v36 = vmov 1983009808   ;;  %v7291_v39 = vld [vmem:[#allocation5 + $0x94] ss:$8 sps:$4 sm:$0xff]  }
  0x7a   :  { %v128_v37 = vunpack.c.l.s4 %v8671_v36  ;;  %v7293_v40 = vld [vmem:[#allocation5 + $0xb94] ss:$8 sps:$4 sm:$0xff]   ;;  %v7295_v41 = vld [vmem:[#allocation5 + $0x90] ss:$8 sps:$4 sm:$0xff]   ;;  %v8792_v43 = vshrl.u32 %v130_v38, 7  ;;  %v102_v52 = vld [vmem:[#allocation2] sm:$0xff] }
  0x7b   :  { %5053 = vmatpush1.bf16.msra.mxu1 %v7259_v14  ;;  %v7296_v44 = vld [vmem:[#allocation5 + $0xb90] ss:$8 sps:$4 sm:$0xff]   ;;  %v7297_v45 = vld [vmem:[#allocation5 + $0xa4] ss:$8 sps:$4 sm:$0xff]   ;;  %v7301_v47 = vld [vmem:[#allocation5 + $0xa0] ss:$8 sps:$4 sm:$0xff]   ;;  %v126_v9 = vcombine.high %v102_v52, %v102_v52 }
  0x7c   :  { %5504 = vmatpush1.bf16.msra.mxu0 %v7260_v15  ;;  %5054 = vmatprep.subr.bf16.mxu1 %v7261_v16  ;;  %v129_v42 = vunpack.c.0.s8 %v128_v37  ;;  %v7299_v46 = vld [vmem:[#allocation5 + $0xba4] ss:$8 sps:$4 sm:$0xff]   ;;  %v7302_v48 = vld [vmem:[#allocation5 + $0xba0] ss:$8 sps:$4 sm:$0xff]   ;;  %v7303_v50 = vld [vmem:[#allocation5 + $0xb4] ss:$8 sps:$4 sm:$0xff]  }
  0x7d   :  { %5505 = vmatprep.subr.bf16.mxu0 %v7263_v17  ;;  %v7305_v51 = vld [vmem:[#allocation5 + $0xbb4] ss:$8 sps:$4 sm:$0xff]   ;;  %v7307_v53 = vld [vmem:[#allocation5 + $0xb0] ss:$8 sps:$4 sm:$0xff]   ;;  %v107_v56 = vld [vmem:[#allocation2 + $0x28] sm:$0xff]  ;;  %s8672_s5 = smov [#allocation14]  }
  0x7e   :  { %v8795_v49 = vsub.s32 %v129_v42, %v8792_v43  ;;  %v7308_v55 = vld [vmem:[#allocation5 + $0xbb0] ss:$8 sps:$4 sm:$0xff]   ;;  %v7309_v57 = vld [vmem:[#allocation5 + $0xc4] ss:$8 sps:$4 sm:$0xff]   ;;  %v211_v60 = vcombine.high %v107_v56, %v107_v56  ;;  %v7313_v63 = vld [vmem:[#allocation5 + $0xc0] ss:$8 sps:$4 sm:$0xff]  }
  0x7f   :  { %5055 = vmatpush1.bf16.msra.mxu1 %v7265_v18  ;;  %v7311_v58 = vld [vmem:[#allocation5 + $0xbc4] ss:$8 sps:$4 sm:$0xff]   ;;  %v7314_v0 = vld [vmem:[#allocation5 + $0xbc0] ss:$8 sps:$4 sm:$0xff]   ;;  %v7315_v1 = vld [vmem:[#allocation5 + $0xd4] ss:$8 sps:$4 sm:$0xff]  }
  0x80   :  { %5506 = vmatpush1.bf16.msra.mxu0 %v7266_v19  ;;  %5056 = vmatprep.subr.bf16.mxu1 %v7267_v20  ;;  %v8798_v54 = vrot.slane %v102_v52, %v8795_v49  ;;  %v225_v62 = vrot.slane %v211_v60, %v8795_v49  ;;  %v7317_v2 = vld [vmem:[#allocation5 + $0xbd4] ss:$8 sps:$4 sm:$0xff]   ;;  %v7319_v5 = vld [vmem:[#allocation5 + $0xd0] ss:$8 sps:$4 sm:$0xff]   ;;  %v7321_v7 = vld [vmem:[#allocation5 + $0xe4] ss:$8 sps:$4 sm:$0xff]   ;;  %v8804_v14 = vrot.slane %v126_v9, %v8795_v49 }
  0x81   :  { %5507 = vmatprep.subr.bf16.mxu0 %v7269_v21  ;;  %v7320_v6 = vld [vmem:[#allocation5 + $0xbd0] ss:$8 sps:$4 sm:$0xff]   ;;  %v7323_v8 = vld [vmem:[#allocation5 + $0xbe4] ss:$8 sps:$4 sm:$0xff]   ;;  %v7325_v10 = vld [vmem:[#allocation5 + $0xe0] ss:$8 sps:$4 sm:$0xff]  }
  0x82   :  { %v141_v59 = vcombine.high %v8798_v54, %v8798_v54  ;;  %v227_v3 = vcombine.high %v225_v62, %v225_v62  ;;  %v7326_v11 = vld [vmem:[#allocation5 + $0xbe0] ss:$8 sps:$4 sm:$0xff]   ;;  %v7327_v12 = vld [vmem:[#allocation5 + $0xf4] ss:$8 sps:$4 sm:$0xff]   ;;  %v7331_v15 = vld [vmem:[#allocation5 + $0xf0] ss:$8 sps:$4 sm:$0xff]   ;;  %v142_v19 = vcombine.high %v8804_v14, %v8804_v14  ;;  %v378_v20 = vpack.c.bf16 %v8798_v54, %v8798_v54 }
  0x83   :  { %5057 = vmatpush1.bf16.msra.mxu1 %v7271_v22  ;;  %v7329_v13 = vld [vmem:[#allocation5 + $0xbf4] ss:$8 sps:$4 sm:$0xff]   ;;  %v7332_v16 = vld [vmem:[#allocation5 + $0xbf0] ss:$8 sps:$4 sm:$0xff]   ;;  %v7336_v17 = vld [vmem:[#allocation5 + $0x104] ss:$8 sps:$4 sm:$0xff]   ;;  %v400_v21 = vpack.c.bf16 %v225_v62, %v225_v62 }
  0x84   :  { %5508 = vmatpush1.bf16.msra.mxu0 %v7272_v23  ;;  %5058 = vmatprep.subr.bf16.mxu1 %v7273_v24  ;;  %v379_v61 = vpack.c.bf16 %v141_v59, %v141_v59  ;;  %v401_v4 = vpack.c.bf16 %v227_v3, %v227_v3  ;;  %v7340_v18 = vld [vmem:[#allocation5 + $0xc04] ss:$8 sps:$4 sm:$0xff]   ;;  %v7334_v22 = vld [vmem:[#allocation5 + $0x100] ss:$8 sps:$4 sm:$0xff]   ;;  %v7343_v24 = vld [vmem:[#allocation5 + $0x114] ss:$8 sps:$4 sm:$0xff]  }
  0x85   :  { %5509 = vmatprep.subr.bf16.mxu0 %v7275_v25  ;;  %v7338_v23 = vld [vmem:[#allocation5 + $0xc00] ss:$8 sps:$4 sm:$0xff]   ;;  %v7346_v25 = vld [vmem:[#allocation5 + $0xc14] ss:$8 sps:$4 sm:$0xff]   ;;  %v7356_v36 = vld [vmem:[#allocation5 + $0xc30] ss:$8 sps:$4 sm:$0xff]  }
  0x86   :  { %5078 = vmatprep.mubr.bf16.mxu1 %v379_v61  ;;  %5529 = vmatprep.mubr.bf16.mxu0 %v401_v4  ;;  %v7361_v37 = vld [vmem:[#allocation5 + $0x144] ss:$8 sps:$4 sm:$0xff]   ;;  %v7370_v42 = vld [vmem:[#allocation5 + $0xc54] ss:$8 sps:$4 sm:$0xff]   ;;  %v7377_v56 = vld [vmem:[#allocation5 + $0x170] ss:$8 sps:$4 sm:$0xff]  }
  0x87   :  { %5059 = vmatpush1.bf16.msra.mxu1 %v7277_v26  ;;  %v381_v26 = vpack.c.bf16 %v142_v19, %v142_v19  ;;  %v7364_v38 = vld [vmem:[#allocation5 + $0xc44] ss:$8 sps:$4 sm:$0xff]   ;;  %v7379_v52 = vld [vmem:[#allocation5 + $0x174] ss:$8 sps:$4 sm:$0xff]   ;;  %v7383_v61 = vld [vmem:[#allocation5 + $0x180] ss:$8 sps:$4 sm:$0xff]  }
  0x88   :  { %5510 = vmatpush1.bf16.msra.mxu0 %v7278_v27  ;;  %5060 = vmatprep.subr.bf16.mxu1 %v7279_v28  ;;  %v7341_v27 = vld [vmem:[#allocation5 + $0x110] ss:$8 sps:$4 sm:$0xff]   ;;  %v7382_v54 = vld [vmem:[#allocation5 + $0xc74] ss:$8 sps:$4 sm:$0xff]   ;;  %v7388_v60 = vld [vmem:[#allocation5 + $0xc84] ss:$8 sps:$4 sm:$0xff]  }
  0x89   :  { %5511 = vmatprep.subr.bf16.mxu0 %v7281_v29  ;;  %v7344_v28 = vld [vmem:[#allocation5 + $0xc10] ss:$8 sps:$4 sm:$0xff]   ;;  %v7349_v29 = vld [vmem:[#allocation5 + $0x124] ss:$8 sps:$4 sm:$0xff]   ;;  %v7386_v62 = vld [vmem:[#allocation5 + $0xc80] ss:$8 sps:$4 sm:$0xff]  }
  0x8a   :  { %v7397_v3 = vld [vmem:[#allocation5 + $0x1a4] ss:$8 sps:$4 sm:$0xff]   ;;  %v7401_v9 = vld [vmem:[#allocation5 + $0x1b0] ss:$8 sps:$4 sm:$0xff]   ;;  %s6304_s30 = sshll.u32 %s8672_s5, 4  ;;  %s8673_s1 = smov [#allocation16]   ;;  %s6305_s30 = int_to_ptr.vmem [resolvable:$true] %s6304_s30 }
  0x8b   :  { %5061 = vmatpush1.bf16.msra.mxu1 %v7283_v30  ;;  %v7352_v30 = vld [vmem:[#allocation5 + $0xc24] ss:$8 sps:$4 sm:$0xff]   ;;  %v7416_v19 = vld [vmem:[#allocation5 + $0xcd0] ss:$8 sps:$4 sm:$0xff]   ;;  %s6314_s0 = sshll.u32 %s8673_s1, 4  ;;  %s8585_s22 = scalar_lea.vmem %s6305_s30, 32  ;;  %s9010_s0 = int_to_ptr.vmem [resolvable:$true] %s6314_s0 }
  0x8c   :  { %5512 = vmatpush1.bf16.msra.mxu0 %v7284_v31  ;;  %5062 = vmatprep.subr.bf16.mxu1 %v7285_v32  ;;  %v7347_v31 = vld [vmem:[#allocation5 + $0x120] ss:$8 sps:$4 sm:$0xff]   ;;  %v7400_v4 = vld [vmem:[#allocation5 + $0xca4] ss:$8 sps:$4 sm:$0xff]   ;;  %p8586_p6 = scmp.ne.s32.totalorder %s6305_s30, %s8585_s22  ;;  %p8590_p7 = scmp.lt.s32.totalorder %s6305_s30, %s6305_s30 }
  0x8d   :  { %5513 = vmatprep.subr.bf16.mxu0 %v7287_v33  ;;  %v7350_v32 = vld [vmem:[#allocation5 + $0xc20] ss:$8 sps:$4 sm:$0xff]   ;;  %v7355_v33 = vld [vmem:[#allocation5 + $0x134] ss:$8 sps:$4 sm:$0xff]   ;;  %p8591_p8 = scmp.lt.s32.totalorder %s8585_s22, %s8585_s22 }
  0x8f   :  { %5063 = vmatpush1.bf16.msra.mxu1 %v7289_v34  ;;  %v7358_v34 = vld [vmem:[#allocation5 + $0xc34] ss:$8 sps:$4 sm:$0xff]   ;;  %p8592_p9 = por %p8591_p8, %p8590_p7 }
  0x90   :  { %5514 = vmatpush1.bf16.msra.mxu0 %v7290_v35  ;;  %5064 = vmatprep.subr.bf16.mxu1 %v7291_v39  ;;  %v7353_v35 = vld [vmem:[#allocation5 + $0x130] ss:$8 sps:$4 sm:$0xff]   ;;  %v7359_v39 = vld [vmem:[#allocation5 + $0x140] ss:$8 sps:$4 sm:$0xff]  }
  0x91   :  { %5515 = vmatprep.subr.bf16.mxu0 %v7293_v40  ;;  %v7362_v40 = vld [vmem:[#allocation5 + $0xc40] ss:$8 sps:$4 sm:$0xff]   ;;  %p8593_p10 = pnand %p8592_p9, %p8586_p6 }
  0x93   :  { %5065 = vmatpush1.bf16.msra.mxu1 %v7295_v41  ;;  %v7367_v41 = vld [vmem:[#allocation5 + $0x154] ss:$8 sps:$4 sm:$0xff]  }
  0x94   :  { %5516 = vmatpush1.bf16.msra.mxu0 %v7296_v44  ;;  %5066 = vmatprep.subr.bf16.mxu1 %v7297_v45  ;;  %v7365_v44 = vld [vmem:[#allocation5 + $0x150] ss:$8 sps:$4 sm:$0xff]  }
  0x95   :  { %5517 = vmatprep.subr.bf16.mxu0 %v7299_v46  ;;  %v7368_v45 = vld [vmem:[#allocation5 + $0xc50] ss:$8 sps:$4 sm:$0xff]   ;;  %v7373_v46 = vld [vmem:[#allocation5 + $0x164] ss:$8 sps:$4 sm:$0xff]  }
  0x97   :  { %5067 = vmatpush1.bf16.msra.mxu1 %v7301_v47  ;;  %v7376_v47 = vld [vmem:[#allocation5 + $0xc64] ss:$8 sps:$4 sm:$0xff]  }
  0x98   :  { %5518 = vmatpush1.bf16.msra.mxu0 %v7302_v48  ;;  %5068 = vmatprep.subr.bf16.mxu1 %v7303_v50  ;;  %v7371_v48 = vld [vmem:[#allocation5 + $0x160] ss:$8 sps:$4 sm:$0xff]   ;;  %v8810_v50 = vld [vmem:[#allocation2 + $0x30] sm:$0xff] }
  0x99   :  { %5519 = vmatprep.subr.bf16.mxu0 %v7305_v51  ;;  %v7374_v51 = vld [vmem:[#allocation5 + $0xc60] ss:$8 sps:$4 sm:$0xff]  }
  0x9b   :  { %5069 = vmatpush1.bf16.msra.mxu1 %v7307_v53  ;;  %v8814_v53 = vrot.slane %v8810_v50, %v8795_v49 }
  0x9c   :  { %5520 = vmatpush1.bf16.msra.mxu0 %v7308_v55  ;;  %5070 = vmatprep.subr.bf16.mxu1 %v7309_v57  ;;  %v7380_v57 = vld [vmem:[#allocation5 + $0xc70] ss:$8 sps:$4 sm:$0xff]  }
  0x9d   :  { %5521 = vmatprep.subr.bf16.mxu0 %v7311_v58  ;;  %v243_v55 = vcombine.high %v8814_v53, %v8814_v53  ;;  %v7385_v58 = vld [vmem:[#allocation5 + $0x184] ss:$8 sps:$4 sm:$0xff]  }
  0x9f   :  { %5071 = vmatpush1.bf16.msra.mxu1 %v7313_v63  ;;  %v403_v59 = vpack.c.bf16 %v243_v55, %v243_v55  ;;  %v7391_v63 = vld [vmem:[#allocation5 + $0x194] ss:$8 sps:$4 sm:$0xff]   ;;  %v7457_v55 = vld [vmem:[#allocation5 + $0x244] ss:$8 sps:$4 sm:$0xff]  }
  0xa0   :  { %5522 = vmatpush1.bf16.msra.mxu0 %v7314_v0  ;;  %5072 = vmatprep.subr.bf16.mxu1 %v7315_v1  ;;  %v7394_v0 = vld [vmem:[#allocation5 + $0xc94] ss:$8 sps:$4 sm:$0xff]   ;;  %v7389_v1 = vld [vmem:[#allocation5 + $0x190] ss:$8 sps:$4 sm:$0xff]  }
  0xa1   :  { %5523 = vmatprep.subr.bf16.mxu0 %v7317_v2  ;;  %v7392_v2 = vld [vmem:[#allocation5 + $0xc90] ss:$8 sps:$4 sm:$0xff]  }
  0xa3   :  { %5073 = vmatpush1.bf16.msra.mxu1 %v7319_v5  ;;  %v7395_v5 = vld [vmem:[#allocation5 + $0x1a0] ss:$8 sps:$4 sm:$0xff]  }
  0xa4   :  { %5524 = vmatpush1.bf16.msra.mxu0 %v7320_v6  ;;  %5074 = vmatprep.subr.bf16.mxu1 %v7321_v7  ;;  %v7398_v6 = vld [vmem:[#allocation5 + $0xca0] ss:$8 sps:$4 sm:$0xff]   ;;  %v7403_v7 = vld [vmem:[#allocation5 + $0x1b4] ss:$8 sps:$4 sm:$0xff]  }
  0xa5   :  { %5525 = vmatprep.subr.bf16.mxu0 %v7323_v8  ;;  %v7406_v8 = vld [vmem:[#allocation5 + $0xcb4] ss:$8 sps:$4 sm:$0xff]  }
  0xa7   :  { %5075 = vmatpush1.bf16.msra.mxu1 %v7325_v10  ;;  %v7404_v10 = vld [vmem:[#allocation5 + $0xcb0] ss:$8 sps:$4 sm:$0xff]  }
  0xa8   :  { %5526 = vmatpush1.bf16.msra.mxu0 %v7326_v11  ;;  %5076 = vmatprep.subr.bf16.mxu1 %v7327_v12  ;;  %v7409_v11 = vld [vmem:[#allocation5 + $0x1c4] ss:$8 sps:$4 sm:$0xff]  }
  0xa9   :  { %5527 = vmatprep.subr.bf16.mxu0 %v7329_v13  ;;  %v7412_v12 = vld [vmem:[#allocation5 + $0xcc4] ss:$8 sps:$4 sm:$0xff]   ;;  %v7407_v13 = vld [vmem:[#allocation5 + $0x1c0] ss:$8 sps:$4 sm:$0xff]  }
  0xab   :  { %5077 = vmatpush1.bf16.msra.mxu1 %v7331_v15  ;;  %v7410_v15 = vld [vmem:[#allocation5 + $0xcc0] ss:$8 sps:$4 sm:$0xff]  }
  0xac   :  { %5528 = vmatpush1.bf16.msra.mxu0 %v7332_v16  ;;  %5087 = vmatprep.subr.bf16.mxu1 %v7336_v17  ;;  %v7415_v16 = vld [vmem:[#allocation5 + $0x1d4] ss:$8 sps:$4 sm:$0xff]  }
  0xad   :  { %5538 = vmatprep.subr.bf16.mxu0 %v7340_v18  ;;  %v7418_v17 = vld [vmem:[#allocation5 + $0xcd4] ss:$8 sps:$4 sm:$0xff]   ;;  %v7413_v18 = vld [vmem:[#allocation5 + $0x1d0] ss:$8 sps:$4 sm:$0xff]  }
  0xae   :  { %5079 = vmatmul.mubr.bf16.vlgmr.msra.gmra.mrb[0].mxu1 %v378_v20  ;;  %v7421_v20 = vld [vmem:[#allocation5 + $0x1e4] ss:$8 sps:$4 sm:$0xff]  }
  0xaf   :  { %5530 = vmatmul.mubr.bf16.vlgmr.msra.gmra.mrb[0].mxu0 %v400_v21  ;;  %5088 = vmatpush1.bf16.msra.mxu1 %v7334_v22  ;;  %v7424_v21 = vld [vmem:[#allocation5 + $0xce4] ss:$8 sps:$4 sm:$0xff]   ;;  %v228_v22 = vcombine.high %v8810_v50, %v8810_v50  ;;  %v7446_v50 = vld [vmem:[#allocation5 + $0xd20] ss:$8 sps:$4 sm:$0xff]  }
  0xb0   :  { %5539 = vmatpush1.bf16.msra.mxu0 %v7338_v23  ;;  %5089 = vmatprep.subr.bf16.mxu1 %v7343_v24  ;;  %v7419_v23 = vld [vmem:[#allocation5 + $0x1e0] ss:$8 sps:$4 sm:$0xff]  }
  0xb1   :  { %5540 = vmatprep.subr.bf16.mxu0 %v7346_v25  ;;  %5119 = vmatprep.mubr.bf16.mxu1 %v381_v26  ;;  %v7422_v24 = vld [vmem:[#allocation5 + $0xce0] ss:$8 sps:$4 sm:$0xff]   ;;  %v7427_v25 = vld [vmem:[#allocation5 + $0x1f4] ss:$8 sps:$4 sm:$0xff]  }
  0xb2   :  { %5570 = vmatprep.mubr.bf16.mxu0 %v403_v59  ;;  %v7430_v26 = vld [vmem:[#allocation5 + $0xcf4] ss:$8 sps:$4 sm:$0xff]  }
  0xb3   :  { %5090 = vmatpush1.bf16.msra.mxu1 %v7341_v27  ;;  %v8821_v27 = vrot.slane %v228_v22, %v8795_v49  ;;  %v7463_v59 = vld [vmem:[#allocation5 + $0x254] ss:$8 sps:$4 sm:$0xff]   ;;  %v7497_v22 = vld [vmem:[#allocation5 + $0x2b0] ss:$8 sps:$4 sm:$0xff]  }
  0xb4   :  { %5541 = vmatpush1.bf16.msra.mxu0 %v7344_v28  ;;  %5091 = vmatprep.subr.bf16.mxu1 %v7349_v29  ;;  %v7425_v28 = vld [vmem:[#allocation5 + $0x1f0] ss:$8 sps:$4 sm:$0xff]  }
  0xb5   :  { %5542 = vmatprep.subr.bf16.mxu0 %v7352_v30  ;;  %v7428_v29 = vld [vmem:[#allocation5 + $0xcf0] ss:$8 sps:$4 sm:$0xff]   ;;  %v7433_v30 = vld [vmem:[#allocation5 + $0x204] ss:$8 sps:$4 sm:$0xff]  }
  0xb7   :  { %5092 = vmatpush1.bf16.msra.mxu1 %v7347_v31  ;;  %v7436_v31 = vld [vmem:[#allocation5 + $0xd04] ss:$8 sps:$4 sm:$0xff]  }
  0xb8   :  { %5543 = vmatpush1.bf16.msra.mxu0 %v7350_v32  ;;  %5093 = vmatprep.subr.bf16.mxu1 %v7355_v33  ;;  %v244_v32 = vcombine.high %v8821_v27, %v8821_v27  ;;  %v7431_v33 = vld [vmem:[#allocation5 + $0x200] ss:$8 sps:$4 sm:$0xff]  }
  0xb9   :  { %5544 = vmatprep.subr.bf16.mxu0 %v7358_v34  ;;  %v7434_v34 = vld [vmem:[#allocation5 + $0xd00] ss:$8 sps:$4 sm:$0xff]  }
  0xbb   :  { %5094 = vmatpush1.bf16.msra.mxu1 %v7353_v35  ;;  %v380_v35 = vpack.c.bf16 %v8804_v14, %v8804_v14  ;;  %v7440_v14 = vld [vmem:[#allocation5 + $0xd10] ss:$8 sps:$4 sm:$0xff]  }
  0xbc   :  { %5545 = vmatpush1.bf16.msra.mxu0 %v7356_v36  ;;  %5095 = vmatprep.subr.bf16.mxu1 %v7361_v37  ;;  %v402_v36 = vpack.c.bf16 %v8814_v53, %v8814_v53  ;;  %v7439_v37 = vld [vmem:[#allocation5 + $0x214] ss:$8 sps:$4 sm:$0xff]   ;;  %v7449_v53 = vld [vmem:[#allocation5 + $0x230] ss:$8 sps:$4 sm:$0xff]  }
  0xbd   :  { %5546 = vmatprep.subr.bf16.mxu0 %v7364_v38  ;;  %v7442_v38 = vld [vmem:[#allocation5 + $0xd14] ss:$8 sps:$4 sm:$0xff]  }
  0xbf   :  { %5096 = vmatpush1.bf16.msra.mxu1 %v7359_v39  ;;  %v8829_v39 = vld [vmem:[#allocation2 + $0x8] sm:$0xff] }
  0xc0   :  { %5547 = vmatpush1.bf16.msra.mxu0 %v7362_v40  ;;  %5097 = vmatprep.subr.bf16.mxu1 %v7367_v41  ;;  %v8833_v40 = vrot.slane %v8829_v39, %v8795_v49  ;;  %v405_v41 = vpack.c.bf16 %v244_v32, %v244_v32  ;;  %v7512_v32 = vld [vmem:[#allocation5 + $0xdd0] ss:$8 sps:$4 sm:$0xff]  }
  0xc1   :  { %5548 = vmatprep.subr.bf16.mxu0 %v7370_v42  ;;  %v7437_v42 = vld [vmem:[#allocation5 + $0x210] ss:$8 sps:$4 sm:$0xff]  }
  0xc3   :  { %5098 = vmatpush1.bf16.msra.mxu1 %v7365_v44  ;;  %v7445_v44 = vld [vmem:[#allocation5 + $0x224] ss:$8 sps:$4 sm:$0xff]  }
  0xc4   :  { %5549 = vmatpush1.bf16.msra.mxu0 %v7368_v45  ;;  %5099 = vmatprep.subr.bf16.mxu1 %v7373_v46  ;;  %v158_v45 = vcombine.high %v8833_v40, %v8833_v40  ;;  %v7448_v46 = vld [vmem:[#allocation5 + $0xd24] ss:$8 sps:$4 sm:$0xff]  }
  0xc5   :  { %5550 = vmatprep.subr.bf16.mxu0 %v7376_v47 }
  0xc6   :  { %v383_v47 = vpack.c.bf16 %v158_v45, %v158_v45  ;;  %v7521_v45 = vld [vmem:[#allocation5 + $0x2f0] ss:$8 sps:$4 sm:$0xff]  }
  0xc7   :  { %5100 = vmatpush1.bf16.msra.mxu1 %v7371_v48  ;;  %v7443_v48 = vld [vmem:[#allocation5 + $0x220] ss:$8 sps:$4 sm:$0xff]  }
  0xc8   :  { %5551 = vmatpush1.bf16.msra.mxu0 %v7374_v51  ;;  %5101 = vmatprep.subr.bf16.mxu1 %v7379_v52  ;;  %v7451_v51 = vld [vmem:[#allocation5 + $0x234] ss:$8 sps:$4 sm:$0xff]  }
  0xc9   :  { %5552 = vmatprep.subr.bf16.mxu0 %v7382_v54  ;;  %v7454_v52 = vld [vmem:[#allocation5 + $0xd34] ss:$8 sps:$4 sm:$0xff]   ;;  %v7452_v54 = vld [vmem:[#allocation5 + $0xd30] ss:$8 sps:$4 sm:$0xff]  }
  0xcb   :  { %5102 = vmatpush1.bf16.msra.mxu1 %v7377_v56  ;;  %v7460_v56 = vld [vmem:[#allocation5 + $0xd44] ss:$8 sps:$4 sm:$0xff]  }
  0xcc   :  { %5553 = vmatpush1.bf16.msra.mxu0 %v7380_v57  ;;  %5103 = vmatprep.subr.bf16.mxu1 %v7385_v58  ;;  %v7455_v57 = vld [vmem:[#allocation5 + $0x240] ss:$8 sps:$4 sm:$0xff]  }
  0xcd   :  { %5554 = vmatprep.subr.bf16.mxu0 %v7388_v60  ;;  %v7458_v58 = vld [vmem:[#allocation5 + $0xd40] ss:$8 sps:$4 sm:$0xff]   ;;  %v7466_v60 = vld [vmem:[#allocation5 + $0xd54] ss:$8 sps:$4 sm:$0xff]  }
  0xcf   :  { %5104 = vmatpush1.bf16.msra.mxu1 %v7383_v61  ;;  %v7461_v61 = vld [vmem:[#allocation5 + $0x250] ss:$8 sps:$4 sm:$0xff]  }
  0xd0   :  { %5555 = vmatpush1.bf16.msra.mxu0 %v7386_v62  ;;  %5105 = vmatprep.subr.bf16.mxu1 %v7391_v63  ;;  %v7464_v62 = vld [vmem:[#allocation5 + $0xd50] ss:$8 sps:$4 sm:$0xff]   ;;  %v7469_v63 = vld [vmem:[#allocation5 + $0x264] ss:$8 sps:$4 sm:$0xff]  }
  0xd1   :  { %5556 = vmatprep.subr.bf16.mxu0 %v7394_v0  ;;  %v7472_v0 = vld [vmem:[#allocation5 + $0xd64] ss:$8 sps:$4 sm:$0xff]  }
  0xd3   :  { %5106 = vmatpush1.bf16.msra.mxu1 %v7389_v1  ;;  %v7467_v1 = vld [vmem:[#allocation5 + $0x260] ss:$8 sps:$4 sm:$0xff]  }
  0xd4   :  { %5557 = vmatpush1.bf16.msra.mxu0 %v7392_v2  ;;  %5107 = vmatprep.subr.bf16.mxu1 %v7397_v3  ;;  %v7470_v2 = vld [vmem:[#allocation5 + $0xd60] ss:$8 sps:$4 sm:$0xff]   ;;  %v7475_v3 = vld [vmem:[#allocation5 + $0x274] ss:$8 sps:$4 sm:$0xff]  }
  0xd5   :  { %5558 = vmatprep.subr.bf16.mxu0 %v7400_v4  ;;  %v7478_v4 = vld [vmem:[#allocation5 + $0xd74] ss:$8 sps:$4 sm:$0xff]  }
  0xd7   :  { %5108 = vmatpush1.bf16.msra.mxu1 %v7395_v5  ;;  %v7473_v5 = vld [vmem:[#allocation5 + $0x270] ss:$8 sps:$4 sm:$0xff]  }
  0xd8   :  { %5559 = vmatpush1.bf16.msra.mxu0 %v7398_v6  ;;  %5109 = vmatprep.subr.bf16.mxu1 %v7403_v7  ;;  %v7476_v6 = vld [vmem:[#allocation5 + $0xd70] ss:$8 sps:$4 sm:$0xff]   ;;  %v7481_v7 = vld [vmem:[#allocation5 + $0x284] ss:$8 sps:$4 sm:$0xff]  }
  0xd9   :  { %5560 = vmatprep.subr.bf16.mxu0 %v7406_v8  ;;  %v7484_v8 = vld [vmem:[#allocation5 + $0xd84] ss:$8 sps:$4 sm:$0xff]  }
  0xdb   :  { %5110 = vmatpush1.bf16.msra.mxu1 %v7401_v9  ;;  %v7479_v9 = vld [vmem:[#allocation5 + $0x280] ss:$8 sps:$4 sm:$0xff]  }
  0xdc   :  { %5561 = vmatpush1.bf16.msra.mxu0 %v7404_v10  ;;  %5111 = vmatprep.subr.bf16.mxu1 %v7409_v11  ;;  %v7482_v10 = vld [vmem:[#allocation5 + $0xd80] ss:$8 sps:$4 sm:$0xff]   ;;  %v7487_v11 = vld [vmem:[#allocation5 + $0x294] ss:$8 sps:$4 sm:$0xff]  }
  0xdd   :  { %5562 = vmatprep.subr.bf16.mxu0 %v7412_v12  ;;  %v7490_v12 = vld [vmem:[#allocation5 + $0xd94] ss:$8 sps:$4 sm:$0xff]  }
  0xdf   :  { %5112 = vmatpush1.bf16.msra.mxu1 %v7407_v13  ;;  %v7485_v13 = vld [vmem:[#allocation5 + $0x290] ss:$8 sps:$4 sm:$0xff]  }
  0xe0   :  { %5563 = vmatpush1.bf16.msra.mxu0 %v7410_v15  ;;  %5113 = vmatprep.subr.bf16.mxu1 %v7415_v16  ;;  %v7488_v15 = vld [vmem:[#allocation5 + $0xd90] ss:$8 sps:$4 sm:$0xff]   ;;  %v7493_v16 = vld [vmem:[#allocation5 + $0x2a4] ss:$8 sps:$4 sm:$0xff]  }
  0xe1   :  { %5564 = vmatprep.subr.bf16.mxu0 %v7418_v17  ;;  %v7496_v17 = vld [vmem:[#allocation5 + $0xda4] ss:$8 sps:$4 sm:$0xff]  }
  0xe3   :  { %5114 = vmatpush1.bf16.msra.mxu1 %v7413_v18  ;;  %v7491_v18 = vld [vmem:[#allocation5 + $0x2a0] ss:$8 sps:$4 sm:$0xff]  }
  0xe4   :  { %5565 = vmatpush1.bf16.msra.mxu0 %v7416_v19  ;;  %5115 = vmatprep.subr.bf16.mxu1 %v7421_v20  ;;  %v7494_v19 = vld [vmem:[#allocation5 + $0xda0] ss:$8 sps:$4 sm:$0xff]   ;;  %v7499_v20 = vld [vmem:[#allocation5 + $0x2b4] ss:$8 sps:$4 sm:$0xff]  }
  0xe5   :  { %5566 = vmatprep.subr.bf16.mxu0 %v7424_v21  ;;  %v7502_v21 = vld [vmem:[#allocation5 + $0xdb4] ss:$8 sps:$4 sm:$0xff]  }
  0xe7   :  { %5116 = vmatpush1.bf16.msra.mxu1 %v7419_v23  ;;  %v7500_v23 = vld [vmem:[#allocation5 + $0xdb0] ss:$8 sps:$4 sm:$0xff]  }
  0xe8   :  { %5567 = vmatpush1.bf16.msra.mxu0 %v7422_v24  ;;  %5117 = vmatprep.subr.bf16.mxu1 %v7427_v25  ;;  %v7505_v24 = vld [vmem:[#allocation5 + $0x2c4] ss:$8 sps:$4 sm:$0xff]  }
  0xe9   :  { %5568 = vmatprep.subr.bf16.mxu0 %v7430_v26  ;;  %v7508_v25 = vld [vmem:[#allocation5 + $0xdc4] ss:$8 sps:$4 sm:$0xff]   ;;  %v7503_v26 = vld [vmem:[#allocation5 + $0x2c0] ss:$8 sps:$4 sm:$0xff]  }
  0xeb   :  { %5118 = vmatpush1.bf16.msra.mxu1 %v7425_v28  ;;  %v7506_v28 = vld [vmem:[#allocation5 + $0xdc0] ss:$8 sps:$4 sm:$0xff]  }
  0xec   :  { %5569 = vmatpush1.bf16.msra.mxu0 %v7428_v29  ;;  %5128 = vmatprep.subr.bf16.mxu1 %v7433_v30  ;;  %v7511_v29 = vld [vmem:[#allocation5 + $0x2d4] ss:$8 sps:$4 sm:$0xff]  }
  0xed   :  { %5579 = vmatprep.subr.bf16.mxu0 %v7436_v31  ;;  %v7514_v30 = vld [vmem:[#allocation5 + $0xdd4] ss:$8 sps:$4 sm:$0xff]   ;;  %v7509_v31 = vld [vmem:[#allocation5 + $0x2d0] ss:$8 sps:$4 sm:$0xff]  }
  0xee   :  { %5120 = vmatmul.mubr.bf16.vlgmr.msra.gmra.mrb[0].mxu1 %v380_v35  ;;  %v7515_v35 = vld [vmem:[#allocation5 + $0x2e0] ss:$8 sps:$4 sm:$0xff]  }
  0xef   :  { %5571 = vmatmul.mubr.bf16.vlgmr.msra.gmra.mrb[0].mxu0 %v402_v36  ;;  %5129 = vmatpush1.bf16.msra.mxu1 %v7431_v33  ;;  %v7517_v33 = vld [vmem:[#allocation5 + $0x2e4] ss:$8 sps:$4 sm:$0xff]   ;;  %v143_v36 = vcombine.high %v8829_v39, %v8829_v39  ;;  %v7524_v39 = vld [vmem:[#allocation5 + $0xdf0] ss:$8 sps:$4 sm:$0xff]  }
  0xf0   :  { %5580 = vmatpush1.bf16.msra.mxu0 %v7434_v34  ;;  %5130 = vmatprep.subr.bf16.mxu1 %v7439_v37  ;;  %v7520_v34 = vld [vmem:[#allocation5 + $0xde4] ss:$8 sps:$4 sm:$0xff]   ;;  %v8839_v37 = vld [vmem:[#allocation2 + $0x38] sm:$0xff] }
  0xf1   :  { %5581 = vmatprep.subr.bf16.mxu0 %v7442_v38  ;;  %5611 = vmatprep.mubr.bf16.mxu0 %v405_v41  ;;  %v7518_v38 = vld [vmem:[#allocation5 + $0xde0] ss:$8 sps:$4 sm:$0xff]   ;;  %v7523_v41 = vld [vmem:[#allocation5 + $0x2f4] ss:$8 sps:$4 sm:$0xff]  }
  0xf2   :  { %5160 = vmatprep.mubr.bf16.mxu1 %v383_v47  ;;  %v7533_v47 = vld [vmem:[#allocation5 + $0xe04] ss:$8 sps:$4 sm:$0xff]  }
  0xf3   :  { %5131 = vmatpush1.bf16.msra.mxu1 %v7437_v42  ;;  %v7526_v42 = vld [vmem:[#allocation5 + $0xdf4] ss:$8 sps:$4 sm:$0xff]  }
  0xf4   :  { %5582 = vmatpush1.bf16.msra.mxu0 %v7440_v14  ;;  %5132 = vmatprep.subr.bf16.mxu1 %v7445_v44  ;;  %v8842_v14 = vrot.slane %v143_v36, %v8795_v49  ;;  %v8846_v44 = vrot.slane %v8839_v37, %v8795_v49  ;;  %v7597_v36 = vld [vmem:[#allocation5 + $0xeb0] ss:$8 sps:$4 sm:$0xff]  }
  0xf5   :  { %5583 = vmatprep.subr.bf16.mxu0 %v7448_v46  ;;  %v7529_v46 = vld [vmem:[#allocation5 + $0x304] ss:$8 sps:$4 sm:$0xff]  }
  0xf7   :  { %5133 = vmatpush1.bf16.msra.mxu1 %v7443_v48  ;;  %v159_v48 = vcombine.high %v8842_v14, %v8842_v14 }
  0xf8   :  { %5584 = vmatpush1.bf16.msra.mxu0 %v7446_v50  ;;  %5134 = vmatprep.subr.bf16.mxu1 %v7451_v51  ;;  %v260_v50 = vcombine.high %v8846_v44, %v8846_v44  ;;  %v7527_v51 = vld [vmem:[#allocation5 + $0x300] ss:$8 sps:$4 sm:$0xff]  }
  0xf9   :  { %5585 = vmatprep.subr.bf16.mxu0 %v7454_v52  ;;  %v382_v52 = vpack.c.bf16 %v8833_v40, %v8833_v40  ;;  %v7542_v40 = vld [vmem:[#allocation5 + $0x324] ss:$8 sps:$4 sm:$0xff]  }
  0xfb   :  { %5135 = vmatpush1.bf16.msra.mxu1 %v7449_v53  ;;  %v404_v53 = vpack.c.bf16 %v8821_v27, %v8821_v27  ;;  %v7540_v27 = vld [vmem:[#allocation5 + $0x320] ss:$8 sps:$4 sm:$0xff]  }
  0xfc   :  { %5586 = vmatpush1.bf16.msra.mxu0 %v7452_v54  ;;  %5136 = vmatprep.subr.bf16.mxu1 %v7457_v55  ;;  %v7531_v54 = vld [vmem:[#allocation5 + $0xe00] ss:$8 sps:$4 sm:$0xff]   ;;  %v7536_v55 = vld [vmem:[#allocation5 + $0x314] ss:$8 sps:$4 sm:$0xff]  }
  0xfd   :  { %5587 = vmatprep.subr.bf16.mxu0 %v7460_v56  ;;  %v7539_v56 = vld [vmem:[#allocation5 + $0xe14] ss:$8 sps:$4 sm:$0xff]  }
  0xff   :  { %5137 = vmatpush1.bf16.msra.mxu1 %v7455_v57  ;;  %v385_v57 = vpack.c.bf16 %v159_v48, %v159_v48  ;;  %v7609_v48 = vld [vmem:[#allocation5 + $0xed0] ss:$8 sps:$4 sm:$0xff]  }
 0x100   :  { %5588 = vmatpush1.bf16.msra.mxu0 %v7458_v58  ;;  %5138 = vmatprep.subr.bf16.mxu1 %v7463_v59  ;;  %v407_v58 = vpack.c.bf16 %v260_v50, %v260_v50  ;;  %v7534_v59 = vld [vmem:[#allocation5 + $0x310] ss:$8 sps:$4 sm:$0xff]   ;;  %v7614_v50 = vld [vmem:[#allocation5 + $0x3e4] ss:$8 sps:$4 sm:$0xff]  }
 0x101   :  { %5589 = vmatprep.subr.bf16.mxu0 %v7466_v60  ;;  %v7537_v60 = vld [vmem:[#allocation5 + $0xe10] ss:$8 sps:$4 sm:$0xff]  }
 0x103   :  { %5139 = vmatpush1.bf16.msra.mxu1 %v7461_v61  ;;  %v7545_v61 = vld [vmem:[#allocation5 + $0xe24] ss:$8 sps:$4 sm:$0xff]  }
 0x104   :  { %5590 = vmatpush1.bf16.msra.mxu0 %v7464_v62  ;;  %5140 = vmatprep.subr.bf16.mxu1 %v7469_v63  ;;  %v7543_v62 = vld [vmem:[#allocation5 + $0xe20] ss:$8 sps:$4 sm:$0xff]   ;;  %v7548_v63 = vld [vmem:[#allocation5 + $0x334] ss:$8 sps:$4 sm:$0xff]  }
 0x105   :  { %5591 = vmatprep.subr.bf16.mxu0 %v7472_v0  ;;  %v7551_v0 = vld [vmem:[#allocation5 + $0xe34] ss:$8 sps:$4 sm:$0xff]  }
 0x107   :  { %5141 = vmatpush1.bf16.msra.mxu1 %v7467_v1  ;;  %v7546_v1 = vld [vmem:[#allocation5 + $0x330] ss:$8 sps:$4 sm:$0xff]  }
 0x108   :  { %5592 = vmatpush1.bf16.msra.mxu0 %v7470_v2  ;;  %5142 = vmatprep.subr.bf16.mxu1 %v7475_v3  ;;  %v7549_v2 = vld [vmem:[#allocation5 + $0xe30] ss:$8 sps:$4 sm:$0xff]   ;;  %v7554_v3 = vld [vmem:[#allocation5 + $0x344] ss:$8 sps:$4 sm:$0xff]  }
 0x109   :  { %5593 = vmatprep.subr.bf16.mxu0 %v7478_v4  ;;  %v7557_v4 = vld [vmem:[#allocation5 + $0xe44] ss:$8 sps:$4 sm:$0xff]  }
 0x10b   :  { %5143 = vmatpush1.bf16.msra.mxu1 %v7473_v5  ;;  %v7552_v5 = vld [vmem:[#allocation5 + $0x340] ss:$8 sps:$4 sm:$0xff]  }
 0x10c   :  { %5594 = vmatpush1.bf16.msra.mxu0 %v7476_v6  ;;  %5144 = vmatprep.subr.bf16.mxu1 %v7481_v7  ;;  %v7555_v6 = vld [vmem:[#allocation5 + $0xe40] ss:$8 sps:$4 sm:$0xff]   ;;  %v7560_v7 = vld [vmem:[#allocation5 + $0x354] ss:$8 sps:$4 sm:$0xff]  }
 0x10d   :  { %5595 = vmatprep.subr.bf16.mxu0 %v7484_v8  ;;  %v7563_v8 = vld [vmem:[#allocation5 + $0xe54] ss:$8 sps:$4 sm:$0xff]  }
 0x10f   :  { %5145 = vmatpush1.bf16.msra.mxu1 %v7479_v9  ;;  %v7558_v9 = vld [vmem:[#allocation5 + $0x350] ss:$8 sps:$4 sm:$0xff]  }
 0x110   :  { %5596 = vmatpush1.bf16.msra.mxu0 %v7482_v10  ;;  %5146 = vmatprep.subr.bf16.mxu1 %v7487_v11  ;;  %v7561_v10 = vld [vmem:[#allocation5 + $0xe50] ss:$8 sps:$4 sm:$0xff]   ;;  %v7566_v11 = vld [vmem:[#allocation5 + $0x364] ss:$8 sps:$4 sm:$0xff]  }
 0x111   :  { %5597 = vmatprep.subr.bf16.mxu0 %v7490_v12  ;;  %v7569_v12 = vld [vmem:[#allocation5 + $0xe64] ss:$8 sps:$4 sm:$0xff]  }
 0x113   :  { %5147 = vmatpush1.bf16.msra.mxu1 %v7485_v13  ;;  %v7564_v13 = vld [vmem:[#allocation5 + $0x360] ss:$8 sps:$4 sm:$0xff]  }
 0x114   :  { %5598 = vmatpush1.bf16.msra.mxu0 %v7488_v15  ;;  %5148 = vmatprep.subr.bf16.mxu1 %v7493_v16  ;;  %v7567_v15 = vld [vmem:[#allocation5 + $0xe60] ss:$8 sps:$4 sm:$0xff]   ;;  %v7572_v16 = vld [vmem:[#allocation5 + $0x374] ss:$8 sps:$4 sm:$0xff]  }
 0x115   :  { %5599 = vmatprep.subr.bf16.mxu0 %v7496_v17  ;;  %v7575_v17 = vld [vmem:[#allocation5 + $0xe74] ss:$8 sps:$4 sm:$0xff]  }
 0x117   :  { %5149 = vmatpush1.bf16.msra.mxu1 %v7491_v18  ;;  %v7570_v18 = vld [vmem:[#allocation5 + $0x370] ss:$8 sps:$4 sm:$0xff]  }
 0x118   :  { %5600 = vmatpush1.bf16.msra.mxu0 %v7494_v19  ;;  %5150 = vmatprep.subr.bf16.mxu1 %v7499_v20  ;;  %v7573_v19 = vld [vmem:[#allocation5 + $0xe70] ss:$8 sps:$4 sm:$0xff]   ;;  %v7578_v20 = vld [vmem:[#allocation5 + $0x384] ss:$8 sps:$4 sm:$0xff]  }
 0x119   :  { %5601 = vmatprep.subr.bf16.mxu0 %v7502_v21  ;;  %v7581_v21 = vld [vmem:[#allocation5 + $0xe84] ss:$8 sps:$4 sm:$0xff]  }
 0x11b   :  { %5151 = vmatpush1.bf16.msra.mxu1 %v7497_v22  ;;  %v7576_v22 = vld [vmem:[#allocation5 + $0x380] ss:$8 sps:$4 sm:$0xff]  }
 0x11c   :  { %5602 = vmatpush1.bf16.msra.mxu0 %v7500_v23  ;;  %5152 = vmatprep.subr.bf16.mxu1 %v7505_v24  ;;  %v7579_v23 = vld [vmem:[#allocation5 + $0xe80] ss:$8 sps:$4 sm:$0xff]   ;;  %v7584_v24 = vld [vmem:[#allocation5 + $0x394] ss:$8 sps:$4 sm:$0xff]  }
 0x11d   :  { %5603 = vmatprep.subr.bf16.mxu0 %v7508_v25  ;;  %v7587_v25 = vld [vmem:[#allocation5 + $0xe94] ss:$8 sps:$4 sm:$0xff]  }
 0x11f   :  { %5153 = vmatpush1.bf16.msra.mxu1 %v7503_v26  ;;  %v7582_v26 = vld [vmem:[#allocation5 + $0x390] ss:$8 sps:$4 sm:$0xff]  }
 0x120   :  { %5604 = vmatpush1.bf16.msra.mxu0 %v7506_v28  ;;  %5154 = vmatprep.subr.bf16.mxu1 %v7511_v29  ;;  %v7585_v28 = vld [vmem:[#allocation5 + $0xe90] ss:$8 sps:$4 sm:$0xff]   ;;  %v7590_v29 = vld [vmem:[#allocation5 + $0x3a4] ss:$8 sps:$4 sm:$0xff]  }
 0x121   :  { %5605 = vmatprep.subr.bf16.mxu0 %v7514_v30  ;;  %v7593_v30 = vld [vmem:[#allocation5 + $0xea4] ss:$8 sps:$4 sm:$0xff]  }
 0x123   :  { %5155 = vmatpush1.bf16.msra.mxu1 %v7509_v31  ;;  %v7588_v31 = vld [vmem:[#allocation5 + $0x3a0] ss:$8 sps:$4 sm:$0xff]  }
 0x124   :  { %5606 = vmatpush1.bf16.msra.mxu0 %v7512_v32  ;;  %5156 = vmatprep.subr.bf16.mxu1 %v7517_v33  ;;  %v7591_v32 = vld [vmem:[#allocation5 + $0xea0] ss:$8 sps:$4 sm:$0xff]   ;;  %v7596_v33 = vld [vmem:[#allocation5 + $0x3b4] ss:$8 sps:$4 sm:$0xff]  }
 0x125   :  { %5607 = vmatprep.subr.bf16.mxu0 %v7520_v34  ;;  %v7599_v34 = vld [vmem:[#allocation5 + $0xeb4] ss:$8 sps:$4 sm:$0xff]  }
 0x127   :  { %5157 = vmatpush1.bf16.msra.mxu1 %v7515_v35  ;;  %v7594_v35 = vld [vmem:[#allocation5 + $0x3b0] ss:$8 sps:$4 sm:$0xff]  }
 0x128   :  { %5608 = vmatpush1.bf16.msra.mxu0 %v7518_v38  ;;  %5158 = vmatprep.subr.bf16.mxu1 %v7523_v41  ;;  %v7602_v38 = vld [vmem:[#allocation5 + $0x3c4] ss:$8 sps:$4 sm:$0xff]  }
 0x129   :  { %5609 = vmatprep.subr.bf16.mxu0 %v7526_v42  ;;  %v7605_v41 = vld [vmem:[#allocation5 + $0xec4] ss:$8 sps:$4 sm:$0xff]   ;;  %v7600_v42 = vld [vmem:[#allocation5 + $0x3c0] ss:$8 sps:$4 sm:$0xff]  }
 0x12b   :  { %5159 = vmatpush1.bf16.msra.mxu1 %v7521_v45  ;;  %v7603_v45 = vld [vmem:[#allocation5 + $0xec0] ss:$8 sps:$4 sm:$0xff]  }
 0x12c   :  { %5610 = vmatpush1.bf16.msra.mxu0 %v7524_v39  ;;  %5169 = vmatprep.subr.bf16.mxu1 %v7529_v46  ;;  %v7608_v39 = vld [vmem:[#allocation5 + $0x3d4] ss:$8 sps:$4 sm:$0xff]  }
 0x12d   :  { %5620 = vmatprep.subr.bf16.mxu0 %v7533_v47  ;;  %v7611_v46 = vld [vmem:[#allocation5 + $0xed4] ss:$8 sps:$4 sm:$0xff]   ;;  %v7606_v47 = vld [vmem:[#allocation5 + $0x3d0] ss:$8 sps:$4 sm:$0xff]  }
 0x12e   :  { %5161 = vmatmul.mubr.bf16.vlgmr.msra.gmra.mrb[0].mxu1 %v382_v52  ;;  %v245_v52 = vcombine.high %v8839_v37, %v8839_v37  ;;  %v7618_v37 = vld [vmem:[#allocation5 + $0x3f0] ss:$8 sps:$4 sm:$0xff]  }
 0x12f   :  { %5612 = vmatmul.mubr.bf16.vlgmr.msra.gmra.mrb[0].mxu0 %v404_v53  ;;  %5170 = vmatpush1.bf16.msra.mxu1 %v7527_v51  ;;  %v7617_v51 = vld [vmem:[#allocation5 + $0xee4] ss:$8 sps:$4 sm:$0xff]   ;;  %v8858_v53 = vld [vmem:[#allocation2 + $0x10] sm:$0xff] }
 0x130   :  { %5621 = vmatpush1.bf16.msra.mxu0 %v7531_v54  ;;  %5171 = vmatprep.subr.bf16.mxu1 %v7536_v55  ;;  %v7612_v54 = vld [vmem:[#allocation5 + $0x3e0] ss:$8 sps:$4 sm:$0xff]  }
 0x131   :  { %5622 = vmatprep.subr.bf16.mxu0 %v7539_v56  ;;  %5201 = vmatprep.mubr.bf16.mxu1 %v385_v57  ;;  %v7615_v55 = vld [vmem:[#allocation5 + $0xee0] ss:$8 sps:$4 sm:$0xff]   ;;  %v7620_v56 = vld [vmem:[#allocation5 + $0x3f4] ss:$8 sps:$4 sm:$0xff]  }
 0x132   :  { %5652 = vmatprep.mubr.bf16.mxu0 %v407_v58  ;;  %v7623_v57 = vld [vmem:[#allocation5 + $0xef4] ss:$8 sps:$4 sm:$0xff]   ;;  %v8862_v58 = vrot.slane %v8858_v53, %v8795_v49 }
 0x133   :  { %5172 = vmatpush1.bf16.msra.mxu1 %v7534_v59  ;;  %v8865_v59 = vrot.slane %v245_v52, %v8795_v49  ;;  %v7691_v52 = vld [vmem:[#allocation5 + $0x4b0] ss:$8 sps:$4 sm:$0xff]  }
 0x134   :  { %5623 = vmatpush1.bf16.msra.mxu0 %v7537_v60  ;;  %5173 = vmatprep.subr.bf16.mxu1 %v7542_v40  ;;  %v7621_v60 = vld [vmem:[#allocation5 + $0xef0] ss:$8 sps:$4 sm:$0xff]   ;;  %v7627_v40 = vld [vmem:[#allocation5 + $0x404] ss:$8 sps:$4 sm:$0xff]  }
 0x135   :  { %5624 = vmatprep.subr.bf16.mxu0 %v7545_v61  ;;  %v7630_v61 = vld [vmem:[#allocation5 + $0xf04] ss:$8 sps:$4 sm:$0xff]  }
 0x137   :  { %5174 = vmatpush1.bf16.msra.mxu1 %v7540_v27  ;;  %v175_v27 = vcombine.high %v8862_v58, %v8862_v58 }
 0x138   :  { %5625 = vmatpush1.bf16.msra.mxu0 %v7543_v62  ;;  %5175 = vmatprep.subr.bf16.mxu1 %v7548_v63  ;;  %v261_v62 = vcombine.high %v8865_v59, %v8865_v59  ;;  %v384_v63 = vpack.c.bf16 %v8842_v14, %v8842_v14  ;;  %v7639_v14 = vld [vmem:[#allocation5 + $0x424] ss:$8 sps:$4 sm:$0xff]  }
 0x139   :  { %5626 = vmatprep.subr.bf16.mxu0 %v7551_v0  ;;  %v406_v0 = vpack.c.bf16 %v8846_v44, %v8846_v44  ;;  %v7642_v44 = vld [vmem:[#allocation5 + $0xf24] ss:$8 sps:$4 sm:$0xff]  }
 0x13b   :  { %5176 = vmatpush1.bf16.msra.mxu1 %v7546_v1  ;;  %v7625_v1 = vld [vmem:[#allocation5 + $0x400] ss:$8 sps:$4 sm:$0xff]  }
 0x13c   :  { %5627 = vmatpush1.bf16.msra.mxu0 %v7549_v2  ;;  %5177 = vmatprep.subr.bf16.mxu1 %v7554_v3  ;;  %v7628_v2 = vld [vmem:[#allocation5 + $0xf00] ss:$8 sps:$4 sm:$0xff]   ;;  %v7633_v3 = vld [vmem:[#allocation5 + $0x414] ss:$8 sps:$4 sm:$0xff]  }
 0x13d   :  { %5628 = vmatprep.subr.bf16.mxu0 %v7557_v4  ;;  %v7636_v4 = vld [vmem:[#allocation5 + $0xf14] ss:$8 sps:$4 sm:$0xff]  }
 0x13f   :  { %5178 = vmatpush1.bf16.msra.mxu1 %v7552_v5  ;;  %v387_v5 = vpack.c.bf16 %v175_v27, %v175_v27  ;;  %v7706_v27 = vld [vmem:[#allocation5 + $0xfd0] ss:$8 sps:$4 sm:$0xff]  }
 0x140   :  { %5629 = vmatpush1.bf16.msra.mxu0 %v7555_v6  ;;  %5179 = vmatprep.subr.bf16.mxu1 %v7560_v7  ;;  %v409_v6 = vpack.c.bf16 %v261_v62, %v261_v62  ;;  %v7631_v7 = vld [vmem:[#allocation5 + $0x410] ss:$8 sps:$4 sm:$0xff]   ;;  %v7711_v62 = vld [vmem:[#allocation5 + $0x4e4] ss:$8 sps:$4 sm:$0xff]  }
 0x141   :  { %5630 = vmatprep.subr.bf16.mxu0 %v7563_v8  ;;  %v7634_v8 = vld [vmem:[#allocation5 + $0xf10] ss:$8 sps:$4 sm:$0xff]  }
 0x143   :  { %5180 = vmatpush1.bf16.msra.mxu1 %v7558_v9  ;;  %v7637_v9 = vld [vmem:[#allocation5 + $0x420] ss:$8 sps:$4 sm:$0xff]  }
 0x144   :  { %5631 = vmatpush1.bf16.msra.mxu0 %v7561_v10  ;;  %5181 = vmatprep.subr.bf16.mxu1 %v7566_v11  ;;  %v7640_v10 = vld [vmem:[#allocation5 + $0xf20] ss:$8 sps:$4 sm:$0xff]   ;;  %v7645_v11 = vld [vmem:[#allocation5 + $0x434] ss:$8 sps:$4 sm:$0xff]  }
 0x145   :  { %5632 = vmatprep.subr.bf16.mxu0 %v7569_v12  ;;  %v7648_v12 = vld [vmem:[#allocation5 + $0xf34] ss:$8 sps:$4 sm:$0xff]  }
 0x147   :  { %5182 = vmatpush1.bf16.msra.mxu1 %v7564_v13  ;;  %v7643_v13 = vld [vmem:[#allocation5 + $0x430] ss:$8 sps:$4 sm:$0xff]  }
 0x148   :  { %5633 = vmatpush1.bf16.msra.mxu0 %v7567_v15  ;;  %5183 = vmatprep.subr.bf16.mxu1 %v7572_v16  ;;  %v7646_v15 = vld [vmem:[#allocation5 + $0xf30] ss:$8 sps:$4 sm:$0xff]   ;;  %v7651_v16 = vld [vmem:[#allocation5 + $0x444] ss:$8 sps:$4 sm:$0xff]  }
 0x149   :  { %5634 = vmatprep.subr.bf16.mxu0 %v7575_v17  ;;  %v7654_v17 = vld [vmem:[#allocation5 + $0xf44] ss:$8 sps:$4 sm:$0xff]  }
 0x14b   :  { %5184 = vmatpush1.bf16.msra.mxu1 %v7570_v18  ;;  %v7649_v18 = vld [vmem:[#allocation5 + $0x440] ss:$8 sps:$4 sm:$0xff]  }
 0x14c   :  { %5635 = vmatpush1.bf16.msra.mxu0 %v7573_v19  ;;  %5185 = vmatprep.subr.bf16.mxu1 %v7578_v20  ;;  %v7652_v19 = vld [vmem:[#allocation5 + $0xf40] ss:$8 sps:$4 sm:$0xff]   ;;  %v7657_v20 = vld [vmem:[#allocation5 + $0x454] ss:$8 sps:$4 sm:$0xff]  }
 0x14d   :  { %5636 = vmatprep.subr.bf16.mxu0 %v7581_v21  ;;  %v7660_v21 = vld [vmem:[#allocation5 + $0xf54] ss:$8 sps:$4 sm:$0xff]  }
 0x14f   :  { %5186 = vmatpush1.bf16.msra.mxu1 %v7576_v22  ;;  %v7655_v22 = vld [vmem:[#allocation5 + $0x450] ss:$8 sps:$4 sm:$0xff]  }
 0x150   :  { %5637 = vmatpush1.bf16.msra.mxu0 %v7579_v23  ;;  %5187 = vmatprep.subr.bf16.mxu1 %v7584_v24  ;;  %v7658_v23 = vld [vmem:[#allocation5 + $0xf50] ss:$8 sps:$4 sm:$0xff]   ;;  %v7663_v24 = vld [vmem:[#allocation5 + $0x464] ss:$8 sps:$4 sm:$0xff]  }
 0x151   :  { %5638 = vmatprep.subr.bf16.mxu0 %v7587_v25  ;;  %v7666_v25 = vld [vmem:[#allocation5 + $0xf64] ss:$8 sps:$4 sm:$0xff]  }
 0x153   :  { %5188 = vmatpush1.bf16.msra.mxu1 %v7582_v26  ;;  %v7661_v26 = vld [vmem:[#allocation5 + $0x460] ss:$8 sps:$4 sm:$0xff]  }
 0x154   :  { %5639 = vmatpush1.bf16.msra.mxu0 %v7585_v28  ;;  %5189 = vmatprep.subr.bf16.mxu1 %v7590_v29  ;;  %v7664_v28 = vld [vmem:[#allocation5 + $0xf60] ss:$8 sps:$4 sm:$0xff]   ;;  %v7669_v29 = vld [vmem:[#allocation5 + $0x474] ss:$8 sps:$4 sm:$0xff]  }
 0x155   :  { %5640 = vmatprep.subr.bf16.mxu0 %v7593_v30  ;;  %v7672_v30 = vld [vmem:[#allocation5 + $0xf74] ss:$8 sps:$4 sm:$0xff]  }
 0x157   :  { %5190 = vmatpush1.bf16.msra.mxu1 %v7588_v31  ;;  %v7667_v31 = vld [vmem:[#allocation5 + $0x470] ss:$8 sps:$4 sm:$0xff]  }
 0x158   :  { %5641 = vmatpush1.bf16.msra.mxu0 %v7591_v32  ;;  %5191 = vmatprep.subr.bf16.mxu1 %v7596_v33  ;;  %v7670_v32 = vld [vmem:[#allocation5 + $0xf70] ss:$8 sps:$4 sm:$0xff]   ;;  %v7675_v33 = vld [vmem:[#allocation5 + $0x484] ss:$8 sps:$4 sm:$0xff]  }
 0x159   :  { %5642 = vmatprep.subr.bf16.mxu0 %v7599_v34  ;;  %v7678_v34 = vld [vmem:[#allocation5 + $0xf84] ss:$8 sps:$4 sm:$0xff]  }
 0x15b   :  { %5192 = vmatpush1.bf16.msra.mxu1 %v7594_v35  ;;  %v7673_v35 = vld [vmem:[#allocation5 + $0x480] ss:$8 sps:$4 sm:$0xff]  }
 0x15c   :  { %5643 = vmatpush1.bf16.msra.mxu0 %v7597_v36  ;;  %5193 = vmatprep.subr.bf16.mxu1 %v7602_v38  ;;  %v7676_v36 = vld [vmem:[#allocation5 + $0xf80] ss:$8 sps:$4 sm:$0xff]   ;;  %v7681_v38 = vld [vmem:[#allocation5 + $0x494] ss:$8 sps:$4 sm:$0xff]  }
 0x15d   :  { %5644 = vmatprep.subr.bf16.mxu0 %v7605_v41  ;;  %v7684_v41 = vld [vmem:[#allocation5 + $0xf94] ss:$8 sps:$4 sm:$0xff]  }
 0x15f   :  { %5194 = vmatpush1.bf16.msra.mxu1 %v7600_v42  ;;  %v7679_v42 = vld [vmem:[#allocation5 + $0x490] ss:$8 sps:$4 sm:$0xff]  }
 0x160   :  { %5645 = vmatpush1.bf16.msra.mxu0 %v7603_v45  ;;  %5195 = vmatprep.subr.bf16.mxu1 %v7608_v39  ;;  %v7682_v45 = vld [vmem:[#allocation5 + $0xf90] ss:$8 sps:$4 sm:$0xff]   ;;  %v7687_v39 = vld [vmem:[#allocation5 + $0x4a4] ss:$8 sps:$4 sm:$0xff]  }
 0x161   :  { %5646 = vmatprep.subr.bf16.mxu0 %v7611_v46  ;;  %v7690_v46 = vld [vmem:[#allocation5 + $0xfa4] ss:$8 sps:$4 sm:$0xff]  }
 0x163   :  { %5196 = vmatpush1.bf16.msra.mxu1 %v7606_v47  ;;  %v7685_v47 = vld [vmem:[#allocation5 + $0x4a0] ss:$8 sps:$4 sm:$0xff]  }
 0x164   :  { %5647 = vmatpush1.bf16.msra.mxu0 %v7609_v48  ;;  %5197 = vmatprep.subr.bf16.mxu1 %v7614_v50  ;;  %v7688_v48 = vld [vmem:[#allocation5 + $0xfa0] ss:$8 sps:$4 sm:$0xff]   ;;  %v7693_v50 = vld [vmem:[#allocation5 + $0x4b4] ss:$8 sps:$4 sm:$0xff]  }
 0x165   :  { %5648 = vmatprep.subr.bf16.mxu0 %v7617_v51  ;;  %v7696_v51 = vld [vmem:[#allocation5 + $0xfb4] ss:$8 sps:$4 sm:$0xff]  }
 0x167   :  { %5198 = vmatpush1.bf16.msra.mxu1 %v7612_v54  ;;  %v7694_v54 = vld [vmem:[#allocation5 + $0xfb0] ss:$8 sps:$4 sm:$0xff]  }
 0x168   :  { %5649 = vmatpush1.bf16.msra.mxu0 %v7615_v55  ;;  %5199 = vmatprep.subr.bf16.mxu1 %v7620_v56  ;;  %v7699_v55 = vld [vmem:[#allocation5 + $0x4c4] ss:$8 sps:$4 sm:$0xff]  }
 0x169   :  { %5650 = vmatprep.subr.bf16.mxu0 %v7623_v57  ;;  %v7702_v56 = vld [vmem:[#allocation5 + $0xfc4] ss:$8 sps:$4 sm:$0xff]   ;;  %v7697_v57 = vld [vmem:[#allocation5 + $0x4c0] ss:$8 sps:$4 sm:$0xff]  }
 0x16b   :  { %5200 = vmatpush1.bf16.msra.mxu1 %v7618_v37  ;;  %v7700_v37 = vld [vmem:[#allocation5 + $0xfc0] ss:$8 sps:$4 sm:$0xff]  }
 0x16c   :  { %5651 = vmatpush1.bf16.msra.mxu0 %v7621_v60  ;;  %5210 = vmatprep.subr.bf16.mxu1 %v7627_v40  ;;  %v7705_v60 = vld [vmem:[#allocation5 + $0x4d4] ss:$8 sps:$4 sm:$0xff]  }
 0x16d   :  { %5661 = vmatprep.subr.bf16.mxu0 %v7630_v61  ;;  %v7708_v40 = vld [vmem:[#allocation5 + $0xfd4] ss:$8 sps:$4 sm:$0xff]   ;;  %v7703_v61 = vld [vmem:[#allocation5 + $0x4d0] ss:$8 sps:$4 sm:$0xff]  }
 0x16e   :  { %5202 = vmatmul.mubr.bf16.vlgmr.msra.gmra.mrb[0].mxu1 %v384_v63  ;;  %v7714_v63 = vld [vmem:[#allocation5 + $0xfe4] ss:$8 sps:$4 sm:$0xff]  }
 0x16f   :  { %5653 = vmatmul.mubr.bf16.vlgmr.msra.gmra.mrb[0].mxu0 %v406_v0  ;;  %5211 = vmatpush1.bf16.msra.mxu1 %v7625_v1  ;;  %v8875_v0 = vld [vmem:[#allocation2 + $0x40] sm:$0xff]  ;;  %v160_v1 = vcombine.high %v8858_v53, %v8858_v53 }
 0x170   :  { %5662 = vmatpush1.bf16.msra.mxu0 %v7628_v2  ;;  %5212 = vmatprep.subr.bf16.mxu1 %v7633_v3  ;;  %v7709_v2 = vld [vmem:[#allocation5 + $0x4e0] ss:$8 sps:$4 sm:$0xff]   ;;  %v7723_v53 = vld [vmem:[#allocation5 + $0x504] ss:$8 sps:$4 sm:$0xff]  }
 0x171   :  { %5663 = vmatprep.subr.bf16.mxu0 %v7636_v4  ;;  %5242 = vmatprep.mubr.bf16.mxu1 %v387_v5  ;;  %v7712_v3 = vld [vmem:[#allocation5 + $0xfe0] ss:$8 sps:$4 sm:$0xff]   ;;  %v7717_v4 = vld [vmem:[#allocation5 + $0x4f4] ss:$8 sps:$4 sm:$0xff]  }
 0x172   :  { %5693 = vmatprep.mubr.bf16.mxu0 %v409_v6  ;;  %v7720_v5 = vld [vmem:[#allocation5 + $0xff4] ss:$8 sps:$4 sm:$0xff]   ;;  %v8880_v6 = vrot.slane %v160_v1, %v8795_v49  ;;  %v7788_v1 = vld [vmem:[#allocation5 + $0x5b0] ss:$8 sps:$4 sm:$0xff]  }
 0x173   :  { %5213 = vmatpush1.bf16.msra.mxu1 %v7631_v7  ;;  %v8884_v7 = vrot.slane %v8875_v0, %v8795_v49 }
 0x174   :  { %5664 = vmatpush1.bf16.msra.mxu0 %v7634_v8  ;;  %5214 = vmatprep.subr.bf16.mxu1 %v7639_v14  ;;  %v7715_v8 = vld [vmem:[#allocation5 + $0x4f0] ss:$8 sps:$4 sm:$0xff]  }
 0x175   :  { %5665 = vmatprep.subr.bf16.mxu0 %v7642_v44  ;;  %v7718_v14 = vld [vmem:[#allocation5 + $0xff0] ss:$8 sps:$4 sm:$0xff]   ;;  %v7727_v44 = vld [vmem:[#allocation5 + $0x1004] ss:$8 sps:$4 sm:$0xff]  }
 0x177   :  { %5215 = vmatpush1.bf16.msra.mxu1 %v7637_v9  ;;  %v176_v9 = vcombine.high %v8880_v6, %v8880_v6 }
 0x178   :  { %5666 = vmatpush1.bf16.msra.mxu0 %v7640_v10  ;;  %5216 = vmatprep.subr.bf16.mxu1 %v7645_v11  ;;  %v277_v10 = vcombine.high %v8884_v7, %v8884_v7  ;;  %v386_v11 = vpack.c.bf16 %v8862_v58, %v8862_v58  ;;  %v7736_v58 = vld [vmem:[#allocation5 + $0x524] ss:$8 sps:$4 sm:$0xff]  }
 0x179   :  { %5667 = vmatprep.subr.bf16.mxu0 %v7648_v12  ;;  %v408_v12 = vpack.c.bf16 %v8865_v59, %v8865_v59  ;;  %v7739_v59 = vld [vmem:[#allocation5 + $0x1024] ss:$8 sps:$4 sm:$0xff]  }
 0x17b   :  { %5217 = vmatpush1.bf16.msra.mxu1 %v7643_v13  ;;  %v7721_v13 = vld [vmem:[#allocation5 + $0x500] ss:$8 sps:$4 sm:$0xff]  }
 0x17c   :  { %5668 = vmatpush1.bf16.msra.mxu0 %v7646_v15  ;;  %5218 = vmatprep.subr.bf16.mxu1 %v7651_v16  ;;  %v7725_v15 = vld [vmem:[#allocation5 + $0x1000] ss:$8 sps:$4 sm:$0xff]   ;;  %v7730_v16 = vld [vmem:[#allocation5 + $0x514] ss:$8 sps:$4 sm:$0xff]  }
 0x17d   :  { %5669 = vmatprep.subr.bf16.mxu0 %v7654_v17  ;;  %v7733_v17 = vld [vmem:[#allocation5 + $0x1014] ss:$8 sps:$4 sm:$0xff]  }
 0x17f   :  { %5219 = vmatpush1.bf16.msra.mxu1 %v7649_v18  ;;  %v389_v18 = vpack.c.bf16 %v176_v9, %v176_v9  ;;  %v7803_v9 = vld [vmem:[#allocation5 + $0x10d0] ss:$8 sps:$4 sm:$0xff]  }
 0x180   :  { %5670 = vmatpush1.bf16.msra.mxu0 %v7652_v19  ;;  %5220 = vmatprep.subr.bf16.mxu1 %v7657_v20  ;;  %v411_v19 = vpack.c.bf16 %v277_v10, %v277_v10  ;;  %v7728_v20 = vld [vmem:[#allocation5 + $0x510] ss:$8 sps:$4 sm:$0xff]   ;;  %v7808_v10 = vld [vmem:[#allocation5 + $0x5e4] ss:$8 sps:$4 sm:$0xff]  }
 0x181   :  { %5671 = vmatprep.subr.bf16.mxu0 %v7660_v21  ;;  %v7731_v21 = vld [vmem:[#allocation5 + $0x1010] ss:$8 sps:$4 sm:$0xff]  }
 0x183   :  { %5221 = vmatpush1.bf16.msra.mxu1 %v7655_v22  ;;  %v7734_v22 = vld [vmem:[#allocation5 + $0x520] ss:$8 sps:$4 sm:$0xff]  }
 0x184   :  { %5672 = vmatpush1.bf16.msra.mxu0 %v7658_v23  ;;  %5222 = vmatprep.subr.bf16.mxu1 %v7663_v24  ;;  %v7737_v23 = vld [vmem:[#allocation5 + $0x1020] ss:$8 sps:$4 sm:$0xff]   ;;  %v7742_v24 = vld [vmem:[#allocation5 + $0x534] ss:$8 sps:$4 sm:$0xff]  }
 0x185   :  { %5673 = vmatprep.subr.bf16.mxu0 %v7666_v25  ;;  %v7745_v25 = vld [vmem:[#allocation5 + $0x1034] ss:$8 sps:$4 sm:$0xff]  }
 0x187   :  { %5223 = vmatpush1.bf16.msra.mxu1 %v7661_v26  ;;  %v7740_v26 = vld [vmem:[#allocation5 + $0x530] ss:$8 sps:$4 sm:$0xff]  }
 0x188   :  { %5674 = vmatpush1.bf16.msra.mxu0 %v7664_v28  ;;  %5224 = vmatprep.subr.bf16.mxu1 %v7669_v29  ;;  %v7743_v28 = vld [vmem:[#allocation5 + $0x1030] ss:$8 sps:$4 sm:$0xff]   ;;  %v7748_v29 = vld [vmem:[#allocation5 + $0x544] ss:$8 sps:$4 sm:$0xff]  }
 0x189   :  { %5675 = vmatprep.subr.bf16.mxu0 %v7672_v30  ;;  %v7751_v30 = vld [vmem:[#allocation5 + $0x1044] ss:$8 sps:$4 sm:$0xff]  }
 0x18b   :  { %5225 = vmatpush1.bf16.msra.mxu1 %v7667_v31  ;;  %v7746_v31 = vld [vmem:[#allocation5 + $0x540] ss:$8 sps:$4 sm:$0xff]  }
 0x18c   :  { %5676 = vmatpush1.bf16.msra.mxu0 %v7670_v32  ;;  %5226 = vmatprep.subr.bf16.mxu1 %v7675_v33  ;;  %v7749_v32 = vld [vmem:[#allocation5 + $0x1040] ss:$8 sps:$4 sm:$0xff]   ;;  %v7754_v33 = vld [vmem:[#allocation5 + $0x554] ss:$8 sps:$4 sm:$0xff]  }
 0x18d   :  { %5677 = vmatprep.subr.bf16.mxu0 %v7678_v34  ;;  %v7757_v34 = vld [vmem:[#allocation5 + $0x1054] ss:$8 sps:$4 sm:$0xff]  }
 0x18f   :  { %5227 = vmatpush1.bf16.msra.mxu1 %v7673_v35  ;;  %v7752_v35 = vld [vmem:[#allocation5 + $0x550] ss:$8 sps:$4 sm:$0xff]  }
 0x190   :  { %5678 = vmatpush1.bf16.msra.mxu0 %v7676_v36  ;;  %5228 = vmatprep.subr.bf16.mxu1 %v7681_v38  ;;  %v7755_v36 = vld [vmem:[#allocation5 + $0x1050] ss:$8 sps:$4 sm:$0xff]   ;;  %v7760_v38 = vld [vmem:[#allocation5 + $0x564] ss:$8 sps:$4 sm:$0xff]  }
 0x191   :  { %5679 = vmatprep.subr.bf16.mxu0 %v7684_v41  ;;  %v7763_v41 = vld [vmem:[#allocation5 + $0x1064] ss:$8 sps:$4 sm:$0xff]  }
 0x193   :  { %5229 = vmatpush1.bf16.msra.mxu1 %v7679_v42  ;;  %v7758_v42 = vld [vmem:[#allocation5 + $0x560] ss:$8 sps:$4 sm:$0xff]  }
 0x194   :  { %5680 = vmatpush1.bf16.msra.mxu0 %v7682_v45  ;;  %5230 = vmatprep.subr.bf16.mxu1 %v7687_v39  ;;  %v7761_v45 = vld [vmem:[#allocation5 + $0x1060] ss:$8 sps:$4 sm:$0xff]   ;;  %v7766_v39 = vld [vmem:[#allocation5 + $0x574] ss:$8 sps:$4 sm:$0xff]  }
 0x195   :  { %5681 = vmatprep.subr.bf16.mxu0 %v7690_v46  ;;  %v7769_v46 = vld [vmem:[#allocation5 + $0x1074] ss:$8 sps:$4 sm:$0xff]  }
 0x197   :  { %5231 = vmatpush1.bf16.msra.mxu1 %v7685_v47  ;;  %v7764_v47 = vld [vmem:[#allocation5 + $0x570] ss:$8 sps:$4 sm:$0xff]  }
 0x198   :  { %5682 = vmatpush1.bf16.msra.mxu0 %v7688_v48  ;;  %5232 = vmatprep.subr.bf16.mxu1 %v7693_v50  ;;  %v7767_v48 = vld [vmem:[#allocation5 + $0x1070] ss:$8 sps:$4 sm:$0xff]   ;;  %v7772_v50 = vld [vmem:[#allocation5 + $0x584] ss:$8 sps:$4 sm:$0xff]  }
 0x199   :  { %5683 = vmatprep.subr.bf16.mxu0 %v7696_v51  ;;  %v7775_v51 = vld [vmem:[#allocation5 + $0x1084] ss:$8 sps:$4 sm:$0xff]  }
 0x19b   :  { %5233 = vmatpush1.bf16.msra.mxu1 %v7691_v52  ;;  %v7770_v52 = vld [vmem:[#allocation5 + $0x580] ss:$8 sps:$4 sm:$0xff]  }
 0x19c   :  { %5684 = vmatpush1.bf16.msra.mxu0 %v7694_v54  ;;  %5234 = vmatprep.subr.bf16.mxu1 %v7699_v55  ;;  %v7773_v54 = vld [vmem:[#allocation5 + $0x1080] ss:$8 sps:$4 sm:$0xff]   ;;  %v7778_v55 = vld [vmem:[#allocation5 + $0x594] ss:$8 sps:$4 sm:$0xff]  }
 0x19d   :  { %5685 = vmatprep.subr.bf16.mxu0 %v7702_v56  ;;  %v7781_v56 = vld [vmem:[#allocation5 + $0x1094] ss:$8 sps:$4 sm:$0xff]  }
 0x19f   :  { %5235 = vmatpush1.bf16.msra.mxu1 %v7697_v57  ;;  %v7776_v57 = vld [vmem:[#allocation5 + $0x590] ss:$8 sps:$4 sm:$0xff]  }
 0x1a0   :  { %5686 = vmatpush1.bf16.msra.mxu0 %v7700_v37  ;;  %5236 = vmatprep.subr.bf16.mxu1 %v7705_v60  ;;  %v7779_v37 = vld [vmem:[#allocation5 + $0x1090] ss:$8 sps:$4 sm:$0xff]   ;;  %v7784_v60 = vld [vmem:[#allocation5 + $0x5a4] ss:$8 sps:$4 sm:$0xff]  }
 0x1a1   :  { %5687 = vmatprep.subr.bf16.mxu0 %v7708_v40  ;;  %v7787_v40 = vld [vmem:[#allocation5 + $0x10a4] ss:$8 sps:$4 sm:$0xff]  }
 0x1a3   :  { %5237 = vmatpush1.bf16.msra.mxu1 %v7703_v61  ;;  %v7782_v61 = vld [vmem:[#allocation5 + $0x5a0] ss:$8 sps:$4 sm:$0xff]  }
 0x1a4   :  { %5688 = vmatpush1.bf16.msra.mxu0 %v7706_v27  ;;  %5238 = vmatprep.subr.bf16.mxu1 %v7711_v62  ;;  %v7785_v27 = vld [vmem:[#allocation5 + $0x10a0] ss:$8 sps:$4 sm:$0xff]   ;;  %v7790_v62 = vld [vmem:[#allocation5 + $0x5b4] ss:$8 sps:$4 sm:$0xff]  }
 0x1a5   :  { %5689 = vmatprep.subr.bf16.mxu0 %v7714_v63  ;;  %v7793_v63 = vld [vmem:[#allocation5 + $0x10b4] ss:$8 sps:$4 sm:$0xff]  }
 0x1a7   :  { %5239 = vmatpush1.bf16.msra.mxu1 %v7709_v2  ;;  %v7791_v2 = vld [vmem:[#allocation5 + $0x10b0] ss:$8 sps:$4 sm:$0xff]  }
 0x1a8   :  { %5690 = vmatpush1.bf16.msra.mxu0 %v7712_v3  ;;  %5240 = vmatprep.subr.bf16.mxu1 %v7717_v4  ;;  %v7796_v3 = vld [vmem:[#allocation5 + $0x5c4] ss:$8 sps:$4 sm:$0xff]  }
 0x1a9   :  { %5691 = vmatprep.subr.bf16.mxu0 %v7720_v5  ;;  %v7799_v4 = vld [vmem:[#allocation5 + $0x10c4] ss:$8 sps:$4 sm:$0xff]   ;;  %v7794_v5 = vld [vmem:[#allocation5 + $0x5c0] ss:$8 sps:$4 sm:$0xff]  }
 0x1ab   :  { %5241 = vmatpush1.bf16.msra.mxu1 %v7715_v8  ;;  %v7797_v8 = vld [vmem:[#allocation5 + $0x10c0] ss:$8 sps:$4 sm:$0xff]  }
 0x1ac   :  { %5692 = vmatpush1.bf16.msra.mxu0 %v7718_v14  ;;  %5251 = vmatprep.subr.bf16.mxu1 %v7723_v53  ;;  %v7802_v14 = vld [vmem:[#allocation5 + $0x5d4] ss:$8 sps:$4 sm:$0xff]  }
 0x1ad   :  { %5702 = vmatprep.subr.bf16.mxu0 %v7727_v44  ;;  %v7805_v53 = vld [vmem:[#allocation5 + $0x10d4] ss:$8 sps:$4 sm:$0xff]   ;;  %v7800_v44 = vld [vmem:[#allocation5 + $0x5d0] ss:$8 sps:$4 sm:$0xff]  }
 0x1ae   :  { %5243 = vmatmul.mubr.bf16.vlgmr.msra.gmra.mrb[0].mxu1 %v386_v11  ;;  %v7811_v11 = vld [vmem:[#allocation5 + $0x10e4] ss:$8 sps:$4 sm:$0xff]  }
 0x1af   :  { %5694 = vmatmul.mubr.bf16.vlgmr.msra.gmra.mrb[0].mxu0 %v408_v12  ;;  %5252 = vmatpush1.bf16.msra.mxu1 %v7721_v13  ;;  %v8894_v12 = vld [vmem:[#allocation2 + $0x18] sm:$0xff]  ;;  %v262_v13 = vcombine.high %v8875_v0, %v8875_v0  ;;  %v7821_v0 = vld [vmem:[#allocation5 + $0x604] ss:$8 sps:$4 sm:$0xff]  }
 0x1b0   :  { %5703 = vmatpush1.bf16.msra.mxu0 %v7725_v15  ;;  %5253 = vmatprep.subr.bf16.mxu1 %v7730_v16  ;;  %v7806_v15 = vld [vmem:[#allocation5 + $0x5e0] ss:$8 sps:$4 sm:$0xff]  }
 0x1b1   :  { %5704 = vmatprep.subr.bf16.mxu0 %v7733_v17  ;;  %5283 = vmatprep.mubr.bf16.mxu1 %v389_v18  ;;  %v7809_v16 = vld [vmem:[#allocation5 + $0x10e0] ss:$8 sps:$4 sm:$0xff]   ;;  %v7814_v17 = vld [vmem:[#allocation5 + $0x5f4] ss:$8 sps:$4 sm:$0xff]  }
 0x1b2   :  { %5734 = vmatprep.mubr.bf16.mxu0 %v411_v19  ;;  %v7817_v18 = vld [vmem:[#allocation5 + $0x10f4] ss:$8 sps:$4 sm:$0xff]   ;;  %v8900_v19 = vrot.slane %v8894_v12, %v8795_v49 }
 0x1b3   :  { %5254 = vmatpush1.bf16.msra.mxu1 %v7728_v20  ;;  %v8903_v20 = vrot.slane %v262_v13, %v8795_v49  ;;  %v7885_v13 = vld [vmem:[#allocation5 + $0x6b0] ss:$8 sps:$4 sm:$0xff]  }
 0x1b4   :  { %5705 = vmatpush1.bf16.msra.mxu0 %v7731_v21  ;;  %5255 = vmatprep.subr.bf16.mxu1 %v7736_v58  ;;  %v7812_v21 = vld [vmem:[#allocation5 + $0x5f0] ss:$8 sps:$4 sm:$0xff]  }
 0x1b5   :  { %5706 = vmatprep.subr.bf16.mxu0 %v7739_v59  ;;  %v7815_v58 = vld [vmem:[#allocation5 + $0x10f0] ss:$8 sps:$4 sm:$0xff]   ;;  %v7824_v59 = vld [vmem:[#allocation5 + $0x1104] ss:$8 sps:$4 sm:$0xff]  }
 0x1b7   :  { %5256 = vmatpush1.bf16.msra.mxu1 %v7734_v22  ;;  %v192_v22 = vcombine.high %v8900_v19, %v8900_v19 }
 0x1b8   :  { %5707 = vmatpush1.bf16.msra.mxu0 %v7737_v23  ;;  %5257 = vmatprep.subr.bf16.mxu1 %v7742_v24  ;;  %v278_v23 = vcombine.high %v8903_v20, %v8903_v20  ;;  %v388_v24 = vpack.c.bf16 %v8880_v6, %v8880_v6  ;;  %v7833_v6 = vld [vmem:[#allocation5 + $0x624] ss:$8 sps:$4 sm:$0xff]  }
 0x1b9   :  { %5708 = vmatprep.subr.bf16.mxu0 %v7745_v25  ;;  %v410_v25 = vpack.c.bf16 %v8884_v7, %v8884_v7  ;;  %v7836_v7 = vld [vmem:[#allocation5 + $0x1124] ss:$8 sps:$4 sm:$0xff]  }
 0x1bb   :  { %5258 = vmatpush1.bf16.msra.mxu1 %v7740_v26  ;;  %v7819_v26 = vld [vmem:[#allocation5 + $0x600] ss:$8 sps:$4 sm:$0xff]  }
 0x1bc   :  { %5709 = vmatpush1.bf16.msra.mxu0 %v7743_v28  ;;  %5259 = vmatprep.subr.bf16.mxu1 %v7748_v29  ;;  %v7822_v28 = vld [vmem:[#allocation5 + $0x1100] ss:$8 sps:$4 sm:$0xff]   ;;  %v7827_v29 = vld [vmem:[#allocation5 + $0x614] ss:$8 sps:$4 sm:$0xff]  }
 0x1bd   :  { %5710 = vmatprep.subr.bf16.mxu0 %v7751_v30  ;;  %v7830_v30 = vld [vmem:[#allocation5 + $0x1114] ss:$8 sps:$4 sm:$0xff]  }
 0x1bf   :  { %5260 = vmatpush1.bf16.msra.mxu1 %v7746_v31  ;;  %v391_v31 = vpack.c.bf16 %v192_v22, %v192_v22  ;;  %v7900_v22 = vld [vmem:[#allocation5 + $0x11d0] ss:$8 sps:$4 sm:$0xff]  }
 0x1c0   :  { %5711 = vmatpush1.bf16.msra.mxu0 %v7749_v32  ;;  %5261 = vmatprep.subr.bf16.mxu1 %v7754_v33  ;;  %v413_v32 = vpack.c.bf16 %v278_v23, %v278_v23  ;;  %v7825_v33 = vld [vmem:[#allocation5 + $0x610] ss:$8 sps:$4 sm:$0xff]   ;;  %v7905_v23 = vld [vmem:[#allocation5 + $0x6e4] ss:$8 sps:$4 sm:$0xff]  }
 0x1c1   :  { %5712 = vmatprep.subr.bf16.mxu0 %v7757_v34  ;;  %v7828_v34 = vld [vmem:[#allocation5 + $0x1110] ss:$8 sps:$4 sm:$0xff]  }
 0x1c3   :  { %5262 = vmatpush1.bf16.msra.mxu1 %v7752_v35  ;;  %v7831_v35 = vld [vmem:[#allocation5 + $0x620] ss:$8 sps:$4 sm:$0xff]  }
 0x1c4   :  { %5713 = vmatpush1.bf16.msra.mxu0 %v7755_v36  ;;  %5263 = vmatprep.subr.bf16.mxu1 %v7760_v38  ;;  %v7834_v36 = vld [vmem:[#allocation5 + $0x1120] ss:$8 sps:$4 sm:$0xff]   ;;  %v7839_v38 = vld [vmem:[#allocation5 + $0x634] ss:$8 sps:$4 sm:$0xff]  }
 0x1c5   :  { %5714 = vmatprep.subr.bf16.mxu0 %v7763_v41  ;;  %v7842_v41 = vld [vmem:[#allocation5 + $0x1134] ss:$8 sps:$4 sm:$0xff]  }
 0x1c7   :  { %5264 = vmatpush1.bf16.msra.mxu1 %v7758_v42  ;;  %v7837_v42 = vld [vmem:[#allocation5 + $0x630] ss:$8 sps:$4 sm:$0xff]  }
 0x1c8   :  { %5715 = vmatpush1.bf16.msra.mxu0 %v7761_v45  ;;  %5265 = vmatprep.subr.bf16.mxu1 %v7766_v39  ;;  %v7840_v45 = vld [vmem:[#allocation5 + $0x1130] ss:$8 sps:$4 sm:$0xff]   ;;  %v7845_v39 = vld [vmem:[#allocation5 + $0x644] ss:$8 sps:$4 sm:$0xff]  }
 0x1c9   :  { %5716 = vmatprep.subr.bf16.mxu0 %v7769_v46  ;;  %v7848_v46 = vld [vmem:[#allocation5 + $0x1144] ss:$8 sps:$4 sm:$0xff]  }
 0x1cb   :  { %5266 = vmatpush1.bf16.msra.mxu1 %v7764_v47  ;;  %v7843_v47 = vld [vmem:[#allocation5 + $0x640] ss:$8 sps:$4 sm:$0xff]  }
 0x1cc   :  { %5717 = vmatpush1.bf16.msra.mxu0 %v7767_v48  ;;  %5267 = vmatprep.subr.bf16.mxu1 %v7772_v50  ;;  %v7846_v48 = vld [vmem:[#allocation5 + $0x1140] ss:$8 sps:$4 sm:$0xff]   ;;  %v7851_v50 = vld [vmem:[#allocation5 + $0x654] ss:$8 sps:$4 sm:$0xff]  }
 0x1cd   :  { %5718 = vmatprep.subr.bf16.mxu0 %v7775_v51  ;;  %v7854_v51 = vld [vmem:[#allocation5 + $0x1154] ss:$8 sps:$4 sm:$0xff]  }
 0x1cf   :  { %5268 = vmatpush1.bf16.msra.mxu1 %v7770_v52  ;;  %v7849_v52 = vld [vmem:[#allocation5 + $0x650] ss:$8 sps:$4 sm:$0xff]  }
 0x1d0   :  { %5719 = vmatpush1.bf16.msra.mxu0 %v7773_v54  ;;  %5269 = vmatprep.subr.bf16.mxu1 %v7778_v55  ;;  %v7852_v54 = vld [vmem:[#allocation5 + $0x1150] ss:$8 sps:$4 sm:$0xff]   ;;  %v7857_v55 = vld [vmem:[#allocation5 + $0x664] ss:$8 sps:$4 sm:$0xff]  }
 0x1d1   :  { %5720 = vmatprep.subr.bf16.mxu0 %v7781_v56  ;;  %v7860_v56 = vld [vmem:[#allocation5 + $0x1164] ss:$8 sps:$4 sm:$0xff]  }
 0x1d3   :  { %5270 = vmatpush1.bf16.msra.mxu1 %v7776_v57  ;;  %v7855_v57 = vld [vmem:[#allocation5 + $0x660] ss:$8 sps:$4 sm:$0xff]  }
 0x1d4   :  { %5721 = vmatpush1.bf16.msra.mxu0 %v7779_v37  ;;  %5271 = vmatprep.subr.bf16.mxu1 %v7784_v60  ;;  %v7858_v37 = vld [vmem:[#allocation5 + $0x1160] ss:$8 sps:$4 sm:$0xff]   ;;  %v7863_v60 = vld [vmem:[#allocation5 + $0x674] ss:$8 sps:$4 sm:$0xff]  }
 0x1d5   :  { %5722 = vmatprep.subr.bf16.mxu0 %v7787_v40  ;;  %v7866_v40 = vld [vmem:[#allocation5 + $0x1174] ss:$8 sps:$4 sm:$0xff]  }
 0x1d7   :  { %5272 = vmatpush1.bf16.msra.mxu1 %v7782_v61  ;;  %v7861_v61 = vld [vmem:[#allocation5 + $0x670] ss:$8 sps:$4 sm:$0xff]  }
 0x1d8   :  { %5723 = vmatpush1.bf16.msra.mxu0 %v7785_v27  ;;  %5273 = vmatprep.subr.bf16.mxu1 %v7790_v62  ;;  %v7864_v27 = vld [vmem:[#allocation5 + $0x1170] ss:$8 sps:$4 sm:$0xff]   ;;  %v7869_v62 = vld [vmem:[#allocation5 + $0x684] ss:$8 sps:$4 sm:$0xff]  }
 0x1d9   :  { %5724 = vmatprep.subr.bf16.mxu0 %v7793_v63  ;;  %v7872_v63 = vld [vmem:[#allocation5 + $0x1184] ss:$8 sps:$4 sm:$0xff]  }
 0x1db   :  { %5274 = vmatpush1.bf16.msra.mxu1 %v7788_v1  ;;  %v7867_v1 = vld [vmem:[#allocation5 + $0x680] ss:$8 sps:$4 sm:$0xff]  }
 0x1dc   :  { %5725 = vmatpush1.bf16.msra.mxu0 %v7791_v2  ;;  %5275 = vmatprep.subr.bf16.mxu1 %v7796_v3  ;;  %v7870_v2 = vld [vmem:[#allocation5 + $0x1180] ss:$8 sps:$4 sm:$0xff]   ;;  %v7875_v3 = vld [vmem:[#allocation5 + $0x694] ss:$8 sps:$4 sm:$0xff]  }
 0x1dd   :  { %5726 = vmatprep.subr.bf16.mxu0 %v7799_v4  ;;  %v7878_v4 = vld [vmem:[#allocation5 + $0x1194] ss:$8 sps:$4 sm:$0xff]  }
 0x1df   :  { %5276 = vmatpush1.bf16.msra.mxu1 %v7794_v5  ;;  %v7873_v5 = vld [vmem:[#allocation5 + $0x690] ss:$8 sps:$4 sm:$0xff]  }
 0x1e0   :  { %5727 = vmatpush1.bf16.msra.mxu0 %v7797_v8  ;;  %5277 = vmatprep.subr.bf16.mxu1 %v7802_v14  ;;  %v7876_v8 = vld [vmem:[#allocation5 + $0x1190] ss:$8 sps:$4 sm:$0xff]   ;;  %v7881_v14 = vld [vmem:[#allocation5 + $0x6a4] ss:$8 sps:$4 sm:$0xff]  }
 0x1e1   :  { %5728 = vmatprep.subr.bf16.mxu0 %v7805_v53  ;;  %v7884_v53 = vld [vmem:[#allocation5 + $0x11a4] ss:$8 sps:$4 sm:$0xff]  }
 0x1e3   :  { %5278 = vmatpush1.bf16.msra.mxu1 %v7800_v44  ;;  %v7879_v44 = vld [vmem:[#allocation5 + $0x6a0] ss:$8 sps:$4 sm:$0xff]  }
 0x1e4   :  { %5729 = vmatpush1.bf16.msra.mxu0 %v7803_v9  ;;  %5279 = vmatprep.subr.bf16.mxu1 %v7808_v10  ;;  %v7882_v9 = vld [vmem:[#allocation5 + $0x11a0] ss:$8 sps:$4 sm:$0xff]   ;;  %v7887_v10 = vld [vmem:[#allocation5 + $0x6b4] ss:$8 sps:$4 sm:$0xff]  }
 0x1e5   :  { %5730 = vmatprep.subr.bf16.mxu0 %v7811_v11  ;;  %v7890_v11 = vld [vmem:[#allocation5 + $0x11b4] ss:$8 sps:$4 sm:$0xff]  }
 0x1e7   :  { %5280 = vmatpush1.bf16.msra.mxu1 %v7806_v15  ;;  %v7888_v15 = vld [vmem:[#allocation5 + $0x11b0] ss:$8 sps:$4 sm:$0xff]  }
 0x1e8   :  { %5731 = vmatpush1.bf16.msra.mxu0 %v7809_v16  ;;  %5281 = vmatprep.subr.bf16.mxu1 %v7814_v17  ;;  %v7893_v16 = vld [vmem:[#allocation5 + $0x6c4] ss:$8 sps:$4 sm:$0xff]  }
 0x1e9   :  { %5732 = vmatprep.subr.bf16.mxu0 %v7817_v18  ;;  %v7896_v17 = vld [vmem:[#allocation5 + $0x11c4] ss:$8 sps:$4 sm:$0xff]   ;;  %v7891_v18 = vld [vmem:[#allocation5 + $0x6c0] ss:$8 sps:$4 sm:$0xff]  }
 0x1eb   :  { %5282 = vmatpush1.bf16.msra.mxu1 %v7812_v21  ;;  %v7894_v21 = vld [vmem:[#allocation5 + $0x11c0] ss:$8 sps:$4 sm:$0xff]  }
 0x1ec   :  { %5733 = vmatpush1.bf16.msra.mxu0 %v7815_v58  ;;  %5292 = vmatprep.subr.bf16.mxu1 %v7821_v0  ;;  %v7899_v58 = vld [vmem:[#allocation5 + $0x6d4] ss:$8 sps:$4 sm:$0xff]  }
 0x1ed   :  { %5743 = vmatprep.subr.bf16.mxu0 %v7824_v59  ;;  %v7902_v0 = vld [vmem:[#allocation5 + $0x11d4] ss:$8 sps:$4 sm:$0xff]   ;;  %v7897_v59 = vld [vmem:[#allocation5 + $0x6d0] ss:$8 sps:$4 sm:$0xff]  }
 0x1ee   :  { %5284 = vmatmul.mubr.bf16.vlgmr.msra.gmra.mrb[0].mxu1 %v388_v24  ;;  %v7908_v24 = vld [vmem:[#allocation5 + $0x11e4] ss:$8 sps:$4 sm:$0xff]  }
 0x1ef   :  { %5735 = vmatmul.mubr.bf16.vlgmr.msra.gmra.mrb[0].mxu0 %v410_v25  ;;  %5293 = vmatpush1.bf16.msra.mxu1 %v7819_v26  ;;  %v8913_v25 = vld [vmem:[#allocation2 + $0x48] sm:$0xff]  ;;  %v177_v26 = vcombine.high %v8894_v12, %v8894_v12 }
 0x1f0   :  { %5744 = vmatpush1.bf16.msra.mxu0 %v7822_v28  ;;  %5294 = vmatprep.subr.bf16.mxu1 %v7827_v29  ;;  %v7903_v28 = vld [vmem:[#allocation5 + $0x6e0] ss:$8 sps:$4 sm:$0xff]   ;;  %v7917_v12 = vld [vmem:[#allocation5 + $0x704] ss:$8 sps:$4 sm:$0xff]  }
 0x1f1   :  { %5745 = vmatprep.subr.bf16.mxu0 %v7830_v30  ;;  %5324 = vmatprep.mubr.bf16.mxu1 %v391_v31  ;;  %v7906_v29 = vld [vmem:[#allocation5 + $0x11e0] ss:$8 sps:$4 sm:$0xff]   ;;  %v7911_v30 = vld [vmem:[#allocation5 + $0x6f4] ss:$8 sps:$4 sm:$0xff]  }
 0x1f2   :  { %5775 = vmatprep.mubr.bf16.mxu0 %v413_v32  ;;  %v7914_v31 = vld [vmem:[#allocation5 + $0x11f4] ss:$8 sps:$4 sm:$0xff]   ;;  %v8918_v32 = vrot.slane %v177_v26, %v8795_v49  ;;  %v7982_v26 = vld [vmem:[#allocation5 + $0x7b0] ss:$8 sps:$4 sm:$0xff]  }
 0x1f3   :  { %5295 = vmatpush1.bf16.msra.mxu1 %v7825_v33  ;;  %v8922_v33 = vrot.slane %v8913_v25, %v8795_v49 }
 0x1f4   :  { %5746 = vmatpush1.bf16.msra.mxu0 %v7828_v34  ;;  %5296 = vmatprep.subr.bf16.mxu1 %v7833_v6  ;;  %v7909_v34 = vld [vmem:[#allocation5 + $0x6f0] ss:$8 sps:$4 sm:$0xff]  }
 0x1f5   :  { %5747 = vmatprep.subr.bf16.mxu0 %v7836_v7  ;;  %v7912_v6 = vld [vmem:[#allocation5 + $0x11f0] ss:$8 sps:$4 sm:$0xff]   ;;  %v7921_v7 = vld [vmem:[#allocation5 + $0x1204] ss:$8 sps:$4 sm:$0xff]  }
 0x1f7   :  { %5297 = vmatpush1.bf16.msra.mxu1 %v7831_v35  ;;  %v193_v35 = vcombine.high %v8918_v32, %v8918_v32 }
 0x1f8   :  { %5748 = vmatpush1.bf16.msra.mxu0 %v7834_v36  ;;  %5298 = vmatprep.subr.bf16.mxu1 %v7839_v38  ;;  %v294_v36 = vcombine.high %v8922_v33, %v8922_v33  ;;  %v390_v38 = vpack.c.bf16 %v8900_v19, %v8900_v19  ;;  %v7930_v19 = vld [vmem:[#allocation5 + $0x724] ss:$8 sps:$4 sm:$0xff]  }
 0x1f9   :  { %5749 = vmatprep.subr.bf16.mxu0 %v7842_v41  ;;  %v412_v41 = vpack.c.bf16 %v8903_v20, %v8903_v20  ;;  %v7933_v20 = vld [vmem:[#allocation5 + $0x1224] ss:$8 sps:$4 sm:$0xff]  }
 0x1fb   :  { %5299 = vmatpush1.bf16.msra.mxu1 %v7837_v42  ;;  %v7915_v42 = vld [vmem:[#allocation5 + $0x700] ss:$8 sps:$4 sm:$0xff]  }
 0x1fc   :  { %5750 = vmatpush1.bf16.msra.mxu0 %v7840_v45  ;;  %5300 = vmatprep.subr.bf16.mxu1 %v7845_v39  ;;  %v7919_v45 = vld [vmem:[#allocation5 + $0x1200] ss:$8 sps:$4 sm:$0xff]   ;;  %v7924_v39 = vld [vmem:[#allocation5 + $0x714] ss:$8 sps:$4 sm:$0xff]  }
 0x1fd   :  { %5751 = vmatprep.subr.bf16.mxu0 %v7848_v46  ;;  %v7927_v46 = vld [vmem:[#allocation5 + $0x1214] ss:$8 sps:$4 sm:$0xff]  }
 0x1ff   :  { %5301 = vmatpush1.bf16.msra.mxu1 %v7843_v47  ;;  %v393_v47 = vpack.c.bf16 %v193_v35, %v193_v35  ;;  %v7997_v35 = vld [vmem:[#allocation5 + $0x12d0] ss:$8 sps:$4 sm:$0xff]  }
 0x200   :  { %5752 = vmatpush1.bf16.msra.mxu0 %v7846_v48  ;;  %5302 = vmatprep.subr.bf16.mxu1 %v7851_v50  ;;  %v415_v48 = vpack.c.bf16 %v294_v36, %v294_v36  ;;  %v7922_v50 = vld [vmem:[#allocation5 + $0x710] ss:$8 sps:$4 sm:$0xff]   ;;  %v8002_v36 = vld [vmem:[#allocation5 + $0x7e4] ss:$8 sps:$4 sm:$0xff]  }
 0x201   :  { %5753 = vmatprep.subr.bf16.mxu0 %v7854_v51  ;;  %v7925_v51 = vld [vmem:[#allocation5 + $0x1210] ss:$8 sps:$4 sm:$0xff]  }
 0x203   :  { %5303 = vmatpush1.bf16.msra.mxu1 %v7849_v52  ;;  %v7928_v52 = vld [vmem:[#allocation5 + $0x720] ss:$8 sps:$4 sm:$0xff]  }
 0x204   :  { %5754 = vmatpush1.bf16.msra.mxu0 %v7852_v54  ;;  %5304 = vmatprep.subr.bf16.mxu1 %v7857_v55  ;;  %v7931_v54 = vld [vmem:[#allocation5 + $0x1220] ss:$8 sps:$4 sm:$0xff]   ;;  %v7936_v55 = vld [vmem:[#allocation5 + $0x734] ss:$8 sps:$4 sm:$0xff]  }
 0x205   :  { %5755 = vmatprep.subr.bf16.mxu0 %v7860_v56  ;;  %v7939_v56 = vld [vmem:[#allocation5 + $0x1234] ss:$8 sps:$4 sm:$0xff]  }
 0x207   :  { %5305 = vmatpush1.bf16.msra.mxu1 %v7855_v57  ;;  %v7934_v57 = vld [vmem:[#allocation5 + $0x730] ss:$8 sps:$4 sm:$0xff]  }
 0x208   :  { %5756 = vmatpush1.bf16.msra.mxu0 %v7858_v37  ;;  %5306 = vmatprep.subr.bf16.mxu1 %v7863_v60  ;;  %v7937_v37 = vld [vmem:[#allocation5 + $0x1230] ss:$8 sps:$4 sm:$0xff]   ;;  %v7942_v60 = vld [vmem:[#allocation5 + $0x744] ss:$8 sps:$4 sm:$0xff]  }
 0x209   :  { %5757 = vmatprep.subr.bf16.mxu0 %v7866_v40  ;;  %v7945_v40 = vld [vmem:[#allocation5 + $0x1244] ss:$8 sps:$4 sm:$0xff]  }
 0x20b   :  { %5307 = vmatpush1.bf16.msra.mxu1 %v7861_v61  ;;  %v7940_v61 = vld [vmem:[#allocation5 + $0x740] ss:$8 sps:$4 sm:$0xff]  }
 0x20c   :  { %5758 = vmatpush1.bf16.msra.mxu0 %v7864_v27  ;;  %5308 = vmatprep.subr.bf16.mxu1 %v7869_v62  ;;  %v7943_v27 = vld [vmem:[#allocation5 + $0x1240] ss:$8 sps:$4 sm:$0xff]   ;;  %v7948_v62 = vld [vmem:[#allocation5 + $0x754] ss:$8 sps:$4 sm:$0xff]  }
 0x20d   :  { %5759 = vmatprep.subr.bf16.mxu0 %v7872_v63  ;;  %v7951_v63 = vld [vmem:[#allocation5 + $0x1254] ss:$8 sps:$4 sm:$0xff]  }
 0x20f   :  { %5309 = vmatpush1.bf16.msra.mxu1 %v7867_v1  ;;  %v7946_v1 = vld [vmem:[#allocation5 + $0x750] ss:$8 sps:$4 sm:$0xff]  }
 0x210   :  { %5760 = vmatpush1.bf16.msra.mxu0 %v7870_v2  ;;  %5310 = vmatprep.subr.bf16.mxu1 %v7875_v3  ;;  %v7949_v2 = vld [vmem:[#allocation5 + $0x1250] ss:$8 sps:$4 sm:$0xff]   ;;  %v7954_v3 = vld [vmem:[#allocation5 + $0x764] ss:$8 sps:$4 sm:$0xff]  }
 0x211   :  { %5761 = vmatprep.subr.bf16.mxu0 %v7878_v4  ;;  %v7957_v4 = vld [vmem:[#allocation5 + $0x1264] ss:$8 sps:$4 sm:$0xff]  }
 0x213   :  { %5311 = vmatpush1.bf16.msra.mxu1 %v7873_v5  ;;  %v7952_v5 = vld [vmem:[#allocation5 + $0x760] ss:$8 sps:$4 sm:$0xff]  }
 0x214   :  { %5762 = vmatpush1.bf16.msra.mxu0 %v7876_v8  ;;  %5312 = vmatprep.subr.bf16.mxu1 %v7881_v14  ;;  %v7955_v8 = vld [vmem:[#allocation5 + $0x1260] ss:$8 sps:$4 sm:$0xff]   ;;  %v7960_v14 = vld [vmem:[#allocation5 + $0x774] ss:$8 sps:$4 sm:$0xff]  }
 0x215   :  { %5763 = vmatprep.subr.bf16.mxu0 %v7884_v53  ;;  %v7963_v53 = vld [vmem:[#allocation5 + $0x1274] ss:$8 sps:$4 sm:$0xff]  }
 0x217   :  { %5313 = vmatpush1.bf16.msra.mxu1 %v7879_v44  ;;  %v7958_v44 = vld [vmem:[#allocation5 + $0x770] ss:$8 sps:$4 sm:$0xff]  }
 0x218   :  { %5764 = vmatpush1.bf16.msra.mxu0 %v7882_v9  ;;  %5314 = vmatprep.subr.bf16.mxu1 %v7887_v10  ;;  %v7961_v9 = vld [vmem:[#allocation5 + $0x1270] ss:$8 sps:$4 sm:$0xff]   ;;  %v7966_v10 = vld [vmem:[#allocation5 + $0x784] ss:$8 sps:$4 sm:$0xff]  }
 0x219   :  { %5765 = vmatprep.subr.bf16.mxu0 %v7890_v11  ;;  %v7969_v11 = vld [vmem:[#allocation5 + $0x1284] ss:$8 sps:$4 sm:$0xff]  }
 0x21b   :  { %5315 = vmatpush1.bf16.msra.mxu1 %v7885_v13  ;;  %v7964_v13 = vld [vmem:[#allocation5 + $0x780] ss:$8 sps:$4 sm:$0xff]  }
 0x21c   :  { %5766 = vmatpush1.bf16.msra.mxu0 %v7888_v15  ;;  %5316 = vmatprep.subr.bf16.mxu1 %v7893_v16  ;;  %v7967_v15 = vld [vmem:[#allocation5 + $0x1280] ss:$8 sps:$4 sm:$0xff]   ;;  %v7972_v16 = vld [vmem:[#allocation5 + $0x794] ss:$8 sps:$4 sm:$0xff]  }
 0x21d   :  { %5767 = vmatprep.subr.bf16.mxu0 %v7896_v17  ;;  %v7975_v17 = vld [vmem:[#allocation5 + $0x1294] ss:$8 sps:$4 sm:$0xff]  }
 0x21f   :  { %5317 = vmatpush1.bf16.msra.mxu1 %v7891_v18  ;;  %v7970_v18 = vld [vmem:[#allocation5 + $0x790] ss:$8 sps:$4 sm:$0xff]  }
 0x220   :  { %5768 = vmatpush1.bf16.msra.mxu0 %v7894_v21  ;;  %5318 = vmatprep.subr.bf16.mxu1 %v7899_v58  ;;  %v7973_v21 = vld [vmem:[#allocation5 + $0x1290] ss:$8 sps:$4 sm:$0xff]   ;;  %v7978_v58 = vld [vmem:[#allocation5 + $0x7a4] ss:$8 sps:$4 sm:$0xff]  }
 0x221   :  { %5769 = vmatprep.subr.bf16.mxu0 %v7902_v0  ;;  %v7981_v0 = vld [vmem:[#allocation5 + $0x12a4] ss:$8 sps:$4 sm:$0xff]  }
 0x223   :  { %5319 = vmatpush1.bf16.msra.mxu1 %v7897_v59  ;;  %v7976_v59 = vld [vmem:[#allocation5 + $0x7a0] ss:$8 sps:$4 sm:$0xff]  }
 0x224   :  { %5770 = vmatpush1.bf16.msra.mxu0 %v7900_v22  ;;  %5320 = vmatprep.subr.bf16.mxu1 %v7905_v23  ;;  %v7979_v22 = vld [vmem:[#allocation5 + $0x12a0] ss:$8 sps:$4 sm:$0xff]   ;;  %v7984_v23 = vld [vmem:[#allocation5 + $0x7b4] ss:$8 sps:$4 sm:$0xff]  }
 0x225   :  { %5771 = vmatprep.subr.bf16.mxu0 %v7908_v24  ;;  %v7987_v24 = vld [vmem:[#allocation5 + $0x12b4] ss:$8 sps:$4 sm:$0xff]  }
 0x227   :  { %5321 = vmatpush1.bf16.msra.mxu1 %v7903_v28  ;;  %v7985_v28 = vld [vmem:[#allocation5 + $0x12b0] ss:$8 sps:$4 sm:$0xff]  }
 0x228   :  { %5772 = vmatpush1.bf16.msra.mxu0 %v7906_v29  ;;  %5322 = vmatprep.subr.bf16.mxu1 %v7911_v30  ;;  %v7990_v29 = vld [vmem:[#allocation5 + $0x7c4] ss:$8 sps:$4 sm:$0xff]  }
 0x229   :  { %5773 = vmatprep.subr.bf16.mxu0 %v7914_v31  ;;  %v7993_v30 = vld [vmem:[#allocation5 + $0x12c4] ss:$8 sps:$4 sm:$0xff]   ;;  %v7988_v31 = vld [vmem:[#allocation5 + $0x7c0] ss:$8 sps:$4 sm:$0xff]  }
 0x22b   :  { %5323 = vmatpush1.bf16.msra.mxu1 %v7909_v34  ;;  %v7991_v34 = vld [vmem:[#allocation5 + $0x12c0] ss:$8 sps:$4 sm:$0xff]  }
 0x22c   :  { %5774 = vmatpush1.bf16.msra.mxu0 %v7912_v6  ;;  %5333 = vmatprep.subr.bf16.mxu1 %v7917_v12  ;;  %v7996_v6 = vld [vmem:[#allocation5 + $0x7d4] ss:$8 sps:$4 sm:$0xff]  }
 0x22d   :  { %5784 = vmatprep.subr.bf16.mxu0 %v7921_v7  ;;  %v7999_v12 = vld [vmem:[#allocation5 + $0x12d4] ss:$8 sps:$4 sm:$0xff]   ;;  %v7994_v7 = vld [vmem:[#allocation5 + $0x7d0] ss:$8 sps:$4 sm:$0xff]  }
 0x22e   :  { %5325 = vmatmul.mubr.bf16.vlgmr.msra.gmra.mrb[0].mxu1 %v390_v38  ;;  %v8005_v38 = vld [vmem:[#allocation5 + $0x12e4] ss:$8 sps:$4 sm:$0xff]  }
 0x22f   :  { %5776 = vmatmul.mubr.bf16.vlgmr.msra.gmra.mrb[0].mxu0 %v412_v41  ;;  %5334 = vmatpush1.bf16.msra.mxu1 %v7915_v42  ;;  %v279_v41 = vcombine.high %v8913_v25, %v8913_v25  ;;  %v8934_v42 = vld [vmem:[#allocation2 + $0x20] sm:$0xff]  ;;  %v8006_v25 = vld [vmem:[#allocation5 + $0x7f0] ss:$8 sps:$4 sm:$0xff]  }
 0x230   :  { %5785 = vmatpush1.bf16.msra.mxu0 %v7919_v45  ;;  %5335 = vmatprep.subr.bf16.mxu1 %v7924_v39  ;;  %v8000_v45 = vld [vmem:[#allocation5 + $0x7e0] ss:$8 sps:$4 sm:$0xff]  }
 0x231   :  { %5786 = vmatprep.subr.bf16.mxu0 %v7927_v46  ;;  %5365 = vmatprep.mubr.bf16.mxu1 %v393_v47  ;;  %v8003_v39 = vld [vmem:[#allocation5 + $0x12e0] ss:$8 sps:$4 sm:$0xff]   ;;  %v8008_v46 = vld [vmem:[#allocation5 + $0x7f4] ss:$8 sps:$4 sm:$0xff]  }
 0x232   :  { %5816 = vmatprep.mubr.bf16.mxu0 %v415_v48  ;;  %v8011_v47 = vld [vmem:[#allocation5 + $0x12f4] ss:$8 sps:$4 sm:$0xff]   ;;  %v8938_v48 = vrot.slane %v8934_v42, %v8795_v49 }
 0x233   :  { %5336 = vmatpush1.bf16.msra.mxu1 %v7922_v50  ;;  %v8941_v50 = vrot.slane %v279_v41, %v8795_v49  ;;  %v8079_v41 = vld [vmem:[#allocation5 + $0x8b0] ss:$8 sps:$4 sm:$0xff]  }
 0x234   :  { %5787 = vmatpush1.bf16.msra.mxu0 %v7925_v51  ;;  %5337 = vmatprep.subr.bf16.mxu1 %v7930_v19  ;;  %v8009_v51 = vld [vmem:[#allocation5 + $0x12f0] ss:$8 sps:$4 sm:$0xff]   ;;  %v8015_v19 = vld [vmem:[#allocation5 + $0x804] ss:$8 sps:$4 sm:$0xff]  }
 0x235   :  { %5788 = vmatprep.subr.bf16.mxu0 %v7933_v20  ;;  %v8018_v20 = vld [vmem:[#allocation5 + $0x1304] ss:$8 sps:$4 sm:$0xff]  }
 0x237   :  { %5338 = vmatpush1.bf16.msra.mxu1 %v7928_v52  ;;  %v209_v52 = vcombine.high %v8938_v48, %v8938_v48 }
 0x238   :  { %5789 = vmatpush1.bf16.msra.mxu0 %v7931_v54  ;;  %5339 = vmatprep.subr.bf16.mxu1 %v7936_v55  ;;  %v295_v54 = vcombine.high %v8941_v50, %v8941_v50  ;;  %v392_v55 = vpack.c.bf16 %v8918_v32, %v8918_v32  ;;  %v8027_v32 = vld [vmem:[#allocation5 + $0x824] ss:$8 sps:$4 sm:$0xff]  }
 0x239   :  { %5790 = vmatprep.subr.bf16.mxu0 %v7939_v56  ;;  %v414_v56 = vpack.c.bf16 %v8922_v33, %v8922_v33  ;;  %v8030_v33 = vld [vmem:[#allocation5 + $0x1324] ss:$8 sps:$4 sm:$0xff]  }
 0x23b   :  { %5340 = vmatpush1.bf16.msra.mxu1 %v7934_v57  ;;  %v8013_v57 = vld [vmem:[#allocation5 + $0x800] ss:$8 sps:$4 sm:$0xff]  }
 0x23c   :  { %5791 = vmatpush1.bf16.msra.mxu0 %v7937_v37  ;;  %5341 = vmatprep.subr.bf16.mxu1 %v7942_v60  ;;  %v8016_v37 = vld [vmem:[#allocation5 + $0x1300] ss:$8 sps:$4 sm:$0xff]   ;;  %v8021_v60 = vld [vmem:[#allocation5 + $0x814] ss:$8 sps:$4 sm:$0xff]  }
 0x23d   :  { %5792 = vmatprep.subr.bf16.mxu0 %v7945_v40  ;;  %v8024_v40 = vld [vmem:[#allocation5 + $0x1314] ss:$8 sps:$4 sm:$0xff]  }
 0x23f   :  { %5342 = vmatpush1.bf16.msra.mxu1 %v7940_v61  ;;  %v395_v61 = vpack.c.bf16 %v209_v52, %v209_v52  ;;  %v8094_v52 = vld [vmem:[#allocation5 + $0x13d0] ss:$8 sps:$4 sm:$0xff]  }
 0x240   :  { %5793 = vmatpush1.bf16.msra.mxu0 %v7943_v27  ;;  %5343 = vmatprep.subr.bf16.mxu1 %v7948_v62  ;;  %v417_v27 = vpack.c.bf16 %v295_v54, %v295_v54  ;;  %v8019_v62 = vld [vmem:[#allocation5 + $0x810] ss:$8 sps:$4 sm:$0xff]   ;;  %v8099_v54 = vld [vmem:[#allocation5 + $0x8e4] ss:$8 sps:$4 sm:$0xff]  }
 0x241   :  { %5794 = vmatprep.subr.bf16.mxu0 %v7951_v63  ;;  %v8022_v63 = vld [vmem:[#allocation5 + $0x1310] ss:$8 sps:$4 sm:$0xff]  }
 0x243   :  { %5344 = vmatpush1.bf16.msra.mxu1 %v7946_v1  ;;  %v8025_v1 = vld [vmem:[#allocation5 + $0x820] ss:$8 sps:$4 sm:$0xff]  }
 0x244   :  { %5795 = vmatpush1.bf16.msra.mxu0 %v7949_v2  ;;  %5345 = vmatprep.subr.bf16.mxu1 %v7954_v3  ;;  %v8028_v2 = vld [vmem:[#allocation5 + $0x1320] ss:$8 sps:$4 sm:$0xff]   ;;  %v8033_v3 = vld [vmem:[#allocation5 + $0x834] ss:$8 sps:$4 sm:$0xff]  }
 0x245   :  { %5796 = vmatprep.subr.bf16.mxu0 %v7957_v4  ;;  %v8036_v4 = vld [vmem:[#allocation5 + $0x1334] ss:$8 sps:$4 sm:$0xff]  }
 0x247   :  { %5346 = vmatpush1.bf16.msra.mxu1 %v7952_v5  ;;  %v8031_v5 = vld [vmem:[#allocation5 + $0x830] ss:$8 sps:$4 sm:$0xff]  }
 0x248   :  { %5797 = vmatpush1.bf16.msra.mxu0 %v7955_v8  ;;  %5347 = vmatprep.subr.bf16.mxu1 %v7960_v14  ;;  %v8034_v8 = vld [vmem:[#allocation5 + $0x1330] ss:$8 sps:$4 sm:$0xff]   ;;  %v8039_v14 = vld [vmem:[#allocation5 + $0x844] ss:$8 sps:$4 sm:$0xff]  }
 0x249   :  { %5798 = vmatprep.subr.bf16.mxu0 %v7963_v53  ;;  %v8042_v53 = vld [vmem:[#allocation5 + $0x1344] ss:$8 sps:$4 sm:$0xff]  }
 0x24b   :  { %5348 = vmatpush1.bf16.msra.mxu1 %v7958_v44  ;;  %v8037_v44 = vld [vmem:[#allocation5 + $0x840] ss:$8 sps:$4 sm:$0xff]  }
 0x24c   :  { %5799 = vmatpush1.bf16.msra.mxu0 %v7961_v9  ;;  %5349 = vmatprep.subr.bf16.mxu1 %v7966_v10  ;;  %v8040_v9 = vld [vmem:[#allocation5 + $0x1340] ss:$8 sps:$4 sm:$0xff]   ;;  %v8045_v10 = vld [vmem:[#allocation5 + $0x854] ss:$8 sps:$4 sm:$0xff]  }
 0x24d   :  { %5800 = vmatprep.subr.bf16.mxu0 %v7969_v11  ;;  %v8048_v11 = vld [vmem:[#allocation5 + $0x1354] ss:$8 sps:$4 sm:$0xff]  }
 0x24f   :  { %5350 = vmatpush1.bf16.msra.mxu1 %v7964_v13  ;;  %v8043_v13 = vld [vmem:[#allocation5 + $0x850] ss:$8 sps:$4 sm:$0xff]  }
 0x250   :  { %5801 = vmatpush1.bf16.msra.mxu0 %v7967_v15  ;;  %5351 = vmatprep.subr.bf16.mxu1 %v7972_v16  ;;  %v8046_v15 = vld [vmem:[#allocation5 + $0x1350] ss:$8 sps:$4 sm:$0xff]   ;;  %v8051_v16 = vld [vmem:[#allocation5 + $0x864] ss:$8 sps:$4 sm:$0xff]  }
 0x251   :  { %5802 = vmatprep.subr.bf16.mxu0 %v7975_v17  ;;  %v8054_v17 = vld [vmem:[#allocation5 + $0x1364] ss:$8 sps:$4 sm:$0xff]  }
 0x253   :  { %5352 = vmatpush1.bf16.msra.mxu1 %v7970_v18  ;;  %v8049_v18 = vld [vmem:[#allocation5 + $0x860] ss:$8 sps:$4 sm:$0xff]  }
 0x254   :  { %5803 = vmatpush1.bf16.msra.mxu0 %v7973_v21  ;;  %5353 = vmatprep.subr.bf16.mxu1 %v7978_v58  ;;  %v8052_v21 = vld [vmem:[#allocation5 + $0x1360] ss:$8 sps:$4 sm:$0xff]   ;;  %v8057_v58 = vld [vmem:[#allocation5 + $0x874] ss:$8 sps:$4 sm:$0xff]  }
 0x255   :  { %5804 = vmatprep.subr.bf16.mxu0 %v7981_v0  ;;  %v8060_v0 = vld [vmem:[#allocation5 + $0x1374] ss:$8 sps:$4 sm:$0xff]  }
 0x257   :  { %5354 = vmatpush1.bf16.msra.mxu1 %v7976_v59  ;;  %v8055_v59 = vld [vmem:[#allocation5 + $0x870] ss:$8 sps:$4 sm:$0xff]  }
 0x258   :  { %5805 = vmatpush1.bf16.msra.mxu0 %v7979_v22  ;;  %5355 = vmatprep.subr.bf16.mxu1 %v7984_v23  ;;  %v8058_v22 = vld [vmem:[#allocation5 + $0x1370] ss:$8 sps:$4 sm:$0xff]   ;;  %v8063_v23 = vld [vmem:[#allocation5 + $0x884] ss:$8 sps:$4 sm:$0xff]  }
 0x259   :  { %5806 = vmatprep.subr.bf16.mxu0 %v7987_v24  ;;  %v8066_v24 = vld [vmem:[#allocation5 + $0x1384] ss:$8 sps:$4 sm:$0xff]  }
 0x25b   :  { %5356 = vmatpush1.bf16.msra.mxu1 %v7982_v26  ;;  %v8061_v26 = vld [vmem:[#allocation5 + $0x880] ss:$8 sps:$4 sm:$0xff]  }
 0x25c   :  { %5807 = vmatpush1.bf16.msra.mxu0 %v7985_v28  ;;  %5357 = vmatprep.subr.bf16.mxu1 %v7990_v29  ;;  %v8064_v28 = vld [vmem:[#allocation5 + $0x1380] ss:$8 sps:$4 sm:$0xff]   ;;  %v8069_v29 = vld [vmem:[#allocation5 + $0x894] ss:$8 sps:$4 sm:$0xff]  }
 0x25d   :  { %5808 = vmatprep.subr.bf16.mxu0 %v7993_v30  ;;  %v8072_v30 = vld [vmem:[#allocation5 + $0x1394] ss:$8 sps:$4 sm:$0xff]  }
 0x25f   :  { %5358 = vmatpush1.bf16.msra.mxu1 %v7988_v31  ;;  %v8067_v31 = vld [vmem:[#allocation5 + $0x890] ss:$8 sps:$4 sm:$0xff]  }
 0x260   :  { %5809 = vmatpush1.bf16.msra.mxu0 %v7991_v34  ;;  %5359 = vmatprep.subr.bf16.mxu1 %v7996_v6  ;;  %v8070_v34 = vld [vmem:[#allocation5 + $0x1390] ss:$8 sps:$4 sm:$0xff]   ;;  %v8075_v6 = vld [vmem:[#allocation5 + $0x8a4] ss:$8 sps:$4 sm:$0xff]  }
 0x261   :  { %5810 = vmatprep.subr.bf16.mxu0 %v7999_v12  ;;  %v8078_v12 = vld [vmem:[#allocation5 + $0x13a4] ss:$8 sps:$4 sm:$0xff]  }
 0x263   :  { %5360 = vmatpush1.bf16.msra.mxu1 %v7994_v7  ;;  %v8073_v7 = vld [vmem:[#allocation5 + $0x8a0] ss:$8 sps:$4 sm:$0xff]  }
 0x264   :  { %5811 = vmatpush1.bf16.msra.mxu0 %v7997_v35  ;;  %5361 = vmatprep.subr.bf16.mxu1 %v8002_v36  ;;  %v8076_v35 = vld [vmem:[#allocation5 + $0x13a0] ss:$8 sps:$4 sm:$0xff]   ;;  %v8081_v36 = vld [vmem:[#allocation5 + $0x8b4] ss:$8 sps:$4 sm:$0xff]  }
 0x265   :  { %5812 = vmatprep.subr.bf16.mxu0 %v8005_v38  ;;  %v8084_v38 = vld [vmem:[#allocation5 + $0x13b4] ss:$8 sps:$4 sm:$0xff]  }
 0x267   :  { %5362 = vmatpush1.bf16.msra.mxu1 %v8000_v45  ;;  %v8082_v45 = vld [vmem:[#allocation5 + $0x13b0] ss:$8 sps:$4 sm:$0xff]  }
 0x268   :  { %5813 = vmatpush1.bf16.msra.mxu0 %v8003_v39  ;;  %5363 = vmatprep.subr.bf16.mxu1 %v8008_v46  ;;  %v8087_v39 = vld [vmem:[#allocation5 + $0x8c4] ss:$8 sps:$4 sm:$0xff]  }
 0x269   :  { %5814 = vmatprep.subr.bf16.mxu0 %v8011_v47  ;;  %v8090_v46 = vld [vmem:[#allocation5 + $0x13c4] ss:$8 sps:$4 sm:$0xff]   ;;  %v8085_v47 = vld [vmem:[#allocation5 + $0x8c0] ss:$8 sps:$4 sm:$0xff]  }
 0x26b   :  { %5364 = vmatpush1.bf16.msra.mxu1 %v8006_v25  ;;  %v8088_v25 = vld [vmem:[#allocation5 + $0x13c0] ss:$8 sps:$4 sm:$0xff]  }
 0x26c   :  { %5815 = vmatpush1.bf16.msra.mxu0 %v8009_v51  ;;  %5374 = vmatprep.subr.bf16.mxu1 %v8015_v19  ;;  %v8093_v51 = vld [vmem:[#allocation5 + $0x8d4] ss:$8 sps:$4 sm:$0xff]  }
 0x26d   :  { %5825 = vmatprep.subr.bf16.mxu0 %v8018_v20  ;;  %v8096_v19 = vld [vmem:[#allocation5 + $0x13d4] ss:$8 sps:$4 sm:$0xff]   ;;  %v8091_v20 = vld [vmem:[#allocation5 + $0x8d0] ss:$8 sps:$4 sm:$0xff]  }
 0x26e   :  { %5366 = vmatmul.mubr.bf16.vlgmr.msra.gmra.mrb[0].mxu1 %v392_v55  ;;  %v8102_v55 = vld [vmem:[#allocation5 + $0x13e4] ss:$8 sps:$4 sm:$0xff]  }
 0x26f   :  { %5817 = vmatmul.mubr.bf16.vlgmr.msra.gmra.mrb[0].mxu0 %v414_v56  ;;  %5375 = vmatpush1.bf16.msra.mxu1 %v8013_v57  ;;  %v194_v56 = vcombine.high %v8934_v42, %v8934_v42  ;;  %v8953_v57 = vld [vmem:[#allocation2 + $0x50] sm:$0xff] }
 0x270   :  { %5826 = vmatpush1.bf16.msra.mxu0 %v8016_v37  ;;  %5376 = vmatprep.subr.bf16.mxu1 %v8021_v60  ;;  %v8097_v37 = vld [vmem:[#allocation5 + $0x8e0] ss:$8 sps:$4 sm:$0xff]   ;;  %v8103_v42 = vld [vmem:[#allocation5 + $0x8f0] ss:$8 sps:$4 sm:$0xff]  }
 0x271   :  { %5827 = vmatprep.subr.bf16.mxu0 %v8024_v40  ;;  %5406 = vmatprep.mubr.bf16.mxu1 %v395_v61  ;;  %v8100_v60 = vld [vmem:[#allocation5 + $0x13e0] ss:$8 sps:$4 sm:$0xff]   ;;  %v8105_v40 = vld [vmem:[#allocation5 + $0x8f4] ss:$8 sps:$4 sm:$0xff]  }
 0x272   :  { %5857 = vmatprep.mubr.bf16.mxu0 %v417_v27  ;;  %v8108_v61 = vld [vmem:[#allocation5 + $0x13f4] ss:$8 sps:$4 sm:$0xff]   ;;  %v8956_v27 = vrot.slane %v194_v56, %v8795_v49  ;;  %v8176_v56 = vld [vmem:[#allocation5 + $0x9b0] ss:$8 sps:$4 sm:$0xff]  }
 0x273   :  { %5377 = vmatpush1.bf16.msra.mxu1 %v8019_v62  ;;  %v8960_v62 = vrot.slane %v8953_v57, %v8795_v49 }
 0x274   :  { %5828 = vmatpush1.bf16.msra.mxu0 %v8022_v63  ;;  %5378 = vmatprep.subr.bf16.mxu1 %v8027_v32  ;;  %v8106_v63 = vld [vmem:[#allocation5 + $0x13f0] ss:$8 sps:$4 sm:$0xff]   ;;  %v8111_v32 = vld [vmem:[#allocation5 + $0x904] ss:$8 sps:$4 sm:$0xff]  }
 0x275   :  { %5829 = vmatprep.subr.bf16.mxu0 %v8030_v33  ;;  %v8115_v33 = vld [vmem:[#allocation5 + $0x1404] ss:$8 sps:$4 sm:$0xff]  }
 0x277   :  { %5379 = vmatpush1.bf16.msra.mxu1 %v8025_v1  ;;  %v210_v1 = vcombine.high %v8956_v27, %v8956_v27 }
 0x278   :  { %5830 = vmatpush1.bf16.msra.mxu0 %v8028_v2  ;;  %5380 = vmatprep.subr.bf16.mxu1 %v8033_v3  ;;  %v311_v2 = vcombine.high %v8960_v62, %v8960_v62  ;;  %v394_v3 = vpack.c.bf16 %v8938_v48, %v8938_v48  ;;  %v8124_v48 = vld [vmem:[#allocation5 + $0x924] ss:$8 sps:$4 sm:$0xff]  }
 0x279   :  { %5831 = vmatprep.subr.bf16.mxu0 %v8036_v4  ;;  %v416_v4 = vpack.c.bf16 %v8941_v50, %v8941_v50  ;;  %v8127_v50 = vld [vmem:[#allocation5 + $0x1424] ss:$8 sps:$4 sm:$0xff]  }
 0x27b   :  { %5381 = vmatpush1.bf16.msra.mxu1 %v8031_v5  ;;  %v8109_v5 = vld [vmem:[#allocation5 + $0x900] ss:$8 sps:$4 sm:$0xff]  }
 0x27c   :  { %5832 = vmatpush1.bf16.msra.mxu0 %v8034_v8  ;;  %5382 = vmatprep.subr.bf16.mxu1 %v8039_v14  ;;  %v8113_v8 = vld [vmem:[#allocation5 + $0x1400] ss:$8 sps:$4 sm:$0xff]   ;;  %v8118_v14 = vld [vmem:[#allocation5 + $0x914] ss:$8 sps:$4 sm:$0xff]  }
 0x27d   :  { %5833 = vmatprep.subr.bf16.mxu0 %v8042_v53  ;;  %v8121_v53 = vld [vmem:[#allocation5 + $0x1414] ss:$8 sps:$4 sm:$0xff]  }
 0x27f   :  { %5383 = vmatpush1.bf16.msra.mxu1 %v8037_v44  ;;  %v397_v44 = vpack.c.bf16 %v210_v1, %v210_v1  ;;  %v8191_v1 = vld [vmem:[#allocation5 + $0x14d0] ss:$8 sps:$4 sm:$0xff]  }
 0x280   :  { %5834 = vmatpush1.bf16.msra.mxu0 %v8040_v9  ;;  %5384 = vmatprep.subr.bf16.mxu1 %v8045_v10  ;;  %v419_v9 = vpack.c.bf16 %v311_v2, %v311_v2  ;;  %v8116_v10 = vld [vmem:[#allocation5 + $0x910] ss:$8 sps:$4 sm:$0xff]   ;;  %v8196_v2 = vld [vmem:[#allocation5 + $0x9e4] ss:$8 sps:$4 sm:$0xff]  }
 0x281   :  { %5835 = vmatprep.subr.bf16.mxu0 %v8048_v11  ;;  %v8119_v11 = vld [vmem:[#allocation5 + $0x1410] ss:$8 sps:$4 sm:$0xff]  }
 0x283   :  { %5385 = vmatpush1.bf16.msra.mxu1 %v8043_v13  ;;  %v8122_v13 = vld [vmem:[#allocation5 + $0x920] ss:$8 sps:$4 sm:$0xff]  }
 0x284   :  { %5836 = vmatpush1.bf16.msra.mxu0 %v8046_v15  ;;  %5386 = vmatprep.subr.bf16.mxu1 %v8051_v16  ;;  %v8125_v15 = vld [vmem:[#allocation5 + $0x1420] ss:$8 sps:$4 sm:$0xff]   ;;  %v8130_v16 = vld [vmem:[#allocation5 + $0x934] ss:$8 sps:$4 sm:$0xff]  }
 0x285   :  { %5837 = vmatprep.subr.bf16.mxu0 %v8054_v17  ;;  %v8133_v17 = vld [vmem:[#allocation5 + $0x1434] ss:$8 sps:$4 sm:$0xff]  }
 0x287   :  { %5387 = vmatpush1.bf16.msra.mxu1 %v8049_v18  ;;  %v8128_v18 = vld [vmem:[#allocation5 + $0x930] ss:$8 sps:$4 sm:$0xff]  }
 0x288   :  { %5838 = vmatpush1.bf16.msra.mxu0 %v8052_v21  ;;  %5388 = vmatprep.subr.bf16.mxu1 %v8057_v58  ;;  %v8131_v21 = vld [vmem:[#allocation5 + $0x1430] ss:$8 sps:$4 sm:$0xff]   ;;  %v8136_v58 = vld [vmem:[#allocation5 + $0x944] ss:$8 sps:$4 sm:$0xff]  }
 0x289   :  { %5839 = vmatprep.subr.bf16.mxu0 %v8060_v0  ;;  %v8139_v0 = vld [vmem:[#allocation5 + $0x1444] ss:$8 sps:$4 sm:$0xff]  }
 0x28b   :  { %5389 = vmatpush1.bf16.msra.mxu1 %v8055_v59  ;;  %v8134_v59 = vld [vmem:[#allocation5 + $0x940] ss:$8 sps:$4 sm:$0xff]  }
 0x28c   :  { %5840 = vmatpush1.bf16.msra.mxu0 %v8058_v22  ;;  %5390 = vmatprep.subr.bf16.mxu1 %v8063_v23  ;;  %v8137_v22 = vld [vmem:[#allocation5 + $0x1440] ss:$8 sps:$4 sm:$0xff]   ;;  %v8142_v23 = vld [vmem:[#allocation5 + $0x954] ss:$8 sps:$4 sm:$0xff]  }
 0x28d   :  { %5841 = vmatprep.subr.bf16.mxu0 %v8066_v24  ;;  %v8145_v24 = vld [vmem:[#allocation5 + $0x1454] ss:$8 sps:$4 sm:$0xff]  }
 0x28f   :  { %5391 = vmatpush1.bf16.msra.mxu1 %v8061_v26  ;;  %v8140_v26 = vld [vmem:[#allocation5 + $0x950] ss:$8 sps:$4 sm:$0xff]  }
 0x290   :  { %5842 = vmatpush1.bf16.msra.mxu0 %v8064_v28  ;;  %5392 = vmatprep.subr.bf16.mxu1 %v8069_v29  ;;  %v8143_v28 = vld [vmem:[#allocation5 + $0x1450] ss:$8 sps:$4 sm:$0xff]   ;;  %v8148_v29 = vld [vmem:[#allocation5 + $0x964] ss:$8 sps:$4 sm:$0xff]  }
 0x291   :  { %5843 = vmatprep.subr.bf16.mxu0 %v8072_v30  ;;  %v8151_v30 = vld [vmem:[#allocation5 + $0x1464] ss:$8 sps:$4 sm:$0xff]  }
 0x293   :  { %5393 = vmatpush1.bf16.msra.mxu1 %v8067_v31  ;;  %v8146_v31 = vld [vmem:[#allocation5 + $0x960] ss:$8 sps:$4 sm:$0xff]  }
 0x294   :  { %5844 = vmatpush1.bf16.msra.mxu0 %v8070_v34  ;;  %5394 = vmatprep.subr.bf16.mxu1 %v8075_v6  ;;  %v8149_v34 = vld [vmem:[#allocation5 + $0x1460] ss:$8 sps:$4 sm:$0xff]   ;;  %v8154_v6 = vld [vmem:[#allocation5 + $0x974] ss:$8 sps:$4 sm:$0xff]  }
 0x295   :  { %5845 = vmatprep.subr.bf16.mxu0 %v8078_v12  ;;  %v8157_v12 = vld [vmem:[#allocation5 + $0x1474] ss:$8 sps:$4 sm:$0xff]  }
 0x297   :  { %5395 = vmatpush1.bf16.msra.mxu1 %v8073_v7  ;;  %v8152_v7 = vld [vmem:[#allocation5 + $0x970] ss:$8 sps:$4 sm:$0xff]  }
 0x298   :  { %5846 = vmatpush1.bf16.msra.mxu0 %v8076_v35  ;;  %5396 = vmatprep.subr.bf16.mxu1 %v8081_v36  ;;  %v8155_v35 = vld [vmem:[#allocation5 + $0x1470] ss:$8 sps:$4 sm:$0xff]   ;;  %v8160_v36 = vld [vmem:[#allocation5 + $0x984] ss:$8 sps:$4 sm:$0xff]  }
 0x299   :  { %5847 = vmatprep.subr.bf16.mxu0 %v8084_v38  ;;  %v8163_v38 = vld [vmem:[#allocation5 + $0x1484] ss:$8 sps:$4 sm:$0xff]  }
 0x29b   :  { %5397 = vmatpush1.bf16.msra.mxu1 %v8079_v41  ;;  %v8158_v41 = vld [vmem:[#allocation5 + $0x980] ss:$8 sps:$4 sm:$0xff]  }
 0x29c   :  { %5848 = vmatpush1.bf16.msra.mxu0 %v8082_v45  ;;  %5398 = vmatprep.subr.bf16.mxu1 %v8087_v39  ;;  %v8161_v45 = vld [vmem:[#allocation5 + $0x1480] ss:$8 sps:$4 sm:$0xff]   ;;  %v8166_v39 = vld [vmem:[#allocation5 + $0x994] ss:$8 sps:$4 sm:$0xff]  }
 0x29d   :  { %5849 = vmatprep.subr.bf16.mxu0 %v8090_v46  ;;  %v8169_v46 = vld [vmem:[#allocation5 + $0x1494] ss:$8 sps:$4 sm:$0xff]  }
 0x29f   :  { %5399 = vmatpush1.bf16.msra.mxu1 %v8085_v47  ;;  %v8164_v47 = vld [vmem:[#allocation5 + $0x990] ss:$8 sps:$4 sm:$0xff]  }
 0x2a0   :  { %5850 = vmatpush1.bf16.msra.mxu0 %v8088_v25  ;;  %5400 = vmatprep.subr.bf16.mxu1 %v8093_v51  ;;  %v8167_v25 = vld [vmem:[#allocation5 + $0x1490] ss:$8 sps:$4 sm:$0xff]   ;;  %v8172_v51 = vld [vmem:[#allocation5 + $0x9a4] ss:$8 sps:$4 sm:$0xff]  }
 0x2a1   :  { %5851 = vmatprep.subr.bf16.mxu0 %v8096_v19  ;;  %v8175_v19 = vld [vmem:[#allocation5 + $0x14a4] ss:$8 sps:$4 sm:$0xff]  }
 0x2a3   :  { %5401 = vmatpush1.bf16.msra.mxu1 %v8091_v20  ;;  %v8170_v20 = vld [vmem:[#allocation5 + $0x9a0] ss:$8 sps:$4 sm:$0xff]  }
 0x2a4   :  { %5852 = vmatpush1.bf16.msra.mxu0 %v8094_v52  ;;  %5402 = vmatprep.subr.bf16.mxu1 %v8099_v54  ;;  %v8173_v52 = vld [vmem:[#allocation5 + $0x14a0] ss:$8 sps:$4 sm:$0xff]   ;;  %v8178_v54 = vld [vmem:[#allocation5 + $0x9b4] ss:$8 sps:$4 sm:$0xff]  }
 0x2a5   :  { %5853 = vmatprep.subr.bf16.mxu0 %v8102_v55  ;;  %v8181_v55 = vld [vmem:[#allocation5 + $0x14b4] ss:$8 sps:$4 sm:$0xff]  }
 0x2a7   :  { %5403 = vmatpush1.bf16.msra.mxu1 %v8097_v37  ;;  %v8179_v37 = vld [vmem:[#allocation5 + $0x14b0] ss:$8 sps:$4 sm:$0xff]  }
 0x2a8   :  { %5854 = vmatpush1.bf16.msra.mxu0 %v8100_v60  ;;  %5404 = vmatprep.subr.bf16.mxu1 %v8105_v40  ;;  %v8184_v60 = vld [vmem:[#allocation5 + $0x9c4] ss:$8 sps:$4 sm:$0xff]  }
 0x2a9   :  { %5855 = vmatprep.subr.bf16.mxu0 %v8108_v61  ;;  %v8187_v40 = vld [vmem:[#allocation5 + $0x14c4] ss:$8 sps:$4 sm:$0xff]   ;;  %v8182_v61 = vld [vmem:[#allocation5 + $0x9c0] ss:$8 sps:$4 sm:$0xff]  }
 0x2ab   :  { %5405 = vmatpush1.bf16.msra.mxu1 %v8103_v42  ;;  %v8185_v42 = vld [vmem:[#allocation5 + $0x14c0] ss:$8 sps:$4 sm:$0xff]  }
 0x2ac   :  { %5856 = vmatpush1.bf16.msra.mxu0 %v8106_v63  ;;  %5415 = vmatprep.subr.bf16.mxu1 %v8111_v32  ;;  %v8190_v63 = vld [vmem:[#allocation5 + $0x9d4] ss:$8 sps:$4 sm:$0xff]  }
 0x2ad   :  { %5866 = vmatprep.subr.bf16.mxu0 %v8115_v33  ;;  %v8193_v32 = vld [vmem:[#allocation5 + $0x14d4] ss:$8 sps:$4 sm:$0xff]   ;;  %v8188_v33 = vld [vmem:[#allocation5 + $0x9d0] ss:$8 sps:$4 sm:$0xff]  }
 0x2ae   :  { %5407 = vmatmul.mubr.bf16.vlgmr.msra.gmra.mrb[0].mxu1 %v394_v3  ;;  %v8199_v3 = vld [vmem:[#allocation5 + $0x14e4] ss:$8 sps:$4 sm:$0xff]  }
 0x2af   :  { %5858 = vmatmul.mubr.bf16.vlgmr.msra.gmra.mrb[0].mxu0 %v416_v4  ;;  %5416 = vmatpush1.bf16.msra.mxu1 %v8109_v5  ;;  %v296_v4 = vcombine.high %v8953_v57, %v8953_v57  ;;  %v8194_v5 = vld [vmem:[#allocation5 + $0x9e0] ss:$8 sps:$4 sm:$0xff]   ;;  %v8209_v57 = vld [vmem:[#allocation5 + $0xa04] ss:$8 sps:$4 sm:$0xff]  }
 0x2b0   :  { %5867 = vmatpush1.bf16.msra.mxu0 %v8113_v8  ;;  %5417 = vmatprep.subr.bf16.mxu1 %v8118_v14  ;;  %v8197_v8 = vld [vmem:[#allocation5 + $0x14e0] ss:$8 sps:$4 sm:$0xff]   ;;  %v8202_v14 = vld [vmem:[#allocation5 + $0x9f4] ss:$8 sps:$4 sm:$0xff]  }
 0x2b1   :  { %5868 = vmatprep.subr.bf16.mxu0 %v8121_v53  ;;  %5447 = vmatprep.mubr.bf16.mxu1 %v397_v44  ;;  %v8205_v53 = vld [vmem:[#allocation5 + $0x14f4] ss:$8 sps:$4 sm:$0xff]   ;;  %v8972_v44 = vld.sshfl [vmem:[#allocation2 + $0x28] sm:$0xff pattern:$0x76325410] }
 0x2b2   :  { %5898 = vmatprep.mubr.bf16.mxu0 %v419_v9  ;;  %v8975_v9 = vrot.slane %v296_v4, %v8795_v49  ;;  %v8276_v4 = vld [vmem:[#allocation5 + $0x15b0] ss:$8 sps:$4 sm:$0xff]  }
 0x2b3   :  { %5418 = vmatpush1.bf16.msra.mxu1 %v8116_v10  ;;  %v8200_v10 = vld [vmem:[#allocation5 + $0x9f0] ss:$8 sps:$4 sm:$0xff]  }
 0x2b4   :  { %5869 = vmatpush1.bf16.msra.mxu0 %v8119_v11  ;;  %5419 = vmatprep.subr.bf16.mxu1 %v8124_v48  ;;  %v8203_v11 = vld [vmem:[#allocation5 + $0x14f0] ss:$8 sps:$4 sm:$0xff]   ;;  %v8212_v48 = vld [vmem:[#allocation5 + $0x1504] ss:$8 sps:$4 sm:$0xff]  }
 0x2b5   :  { %5870 = vmatprep.subr.bf16.mxu0 %v8127_v50  ;;  %v226_v50 = vcombine.high %v8972_v44, %v8972_v44 }
 0x2b7   :  { %5420 = vmatpush1.bf16.msra.mxu1 %v8122_v13  ;;  %v312_v13 = vcombine.high %v8975_v9, %v8975_v9 }
 0x2b8   :  { %5871 = vmatpush1.bf16.msra.mxu0 %v8125_v15  ;;  %5421 = vmatprep.subr.bf16.mxu1 %v8130_v16  ;;  %v396_v15 = vpack.c.bf16 %v8956_v27, %v8956_v27  ;;  %v418_v16 = vpack.c.bf16 %v8960_v62, %v8960_v62  ;;  %v8221_v27 = vld [vmem:[#allocation5 + $0xa24] ss:$8 sps:$4 sm:$0xff]  }
 0x2b9   :  { %5872 = vmatprep.subr.bf16.mxu0 %v8133_v17  ;;  %v8207_v17 = vld [vmem:[#allocation5 + $0xa00] ss:$8 sps:$4 sm:$0xff]   ;;  %v8224_v62 = vld [vmem:[#allocation5 + $0x1524] ss:$8 sps:$4 sm:$0xff]  }
 0x2bb   :  { %5422 = vmatpush1.bf16.msra.mxu1 %v8128_v18  ;;  %v8210_v18 = vld [vmem:[#allocation5 + $0x1500] ss:$8 sps:$4 sm:$0xff]  }
 0x2bc   :  { %5873 = vmatpush1.bf16.msra.mxu0 %v8131_v21  ;;  %5423 = vmatprep.subr.bf16.mxu1 %v8136_v58  ;;  %v8215_v21 = vld [vmem:[#allocation5 + $0xa14] ss:$8 sps:$4 sm:$0xff]  }
 0x2bd   :  { %5874 = vmatprep.subr.bf16.mxu0 %v8139_v0  ;;  %v8218_v58 = vld [vmem:[#allocation5 + $0x1514] ss:$8 sps:$4 sm:$0xff]   ;;  %v399_v0 = vpack.c.bf16 %v226_v50, %v226_v50  ;;  %v8293_v50 = vld [vmem:[#allocation5 + $0xae4] ss:$8 sps:$4 sm:$0xff]  }
 0x2bf   :  { %5424 = vmatpush1.bf16.msra.mxu1 %v8134_v59  ;;  %v421_v59 = vpack.c.bf16 %v312_v13, %v312_v13  ;;  %v8296_v13 = vld [vmem:[#allocation5 + $0x15e4] ss:$8 sps:$4 sm:$0xff]  }
 0x2c0   :  { %5875 = vmatpush1.bf16.msra.mxu0 %v8137_v22  ;;  %5425 = vmatprep.subr.bf16.mxu1 %v8142_v23  ;;  %v8213_v22 = vld [vmem:[#allocation5 + $0xa10] ss:$8 sps:$4 sm:$0xff]  }
 0x2c1   :  { %5876 = vmatprep.subr.bf16.mxu0 %v8145_v24  ;;  %v8216_v23 = vld [vmem:[#allocation5 + $0x1510] ss:$8 sps:$4 sm:$0xff]   ;;  %v8219_v24 = vld [vmem:[#allocation5 + $0xa20] ss:$8 sps:$4 sm:$0xff]  }
 0x2c3   :  { %5426 = vmatpush1.bf16.msra.mxu1 %v8140_v26  ;;  %v8222_v26 = vld [vmem:[#allocation5 + $0x1520] ss:$8 sps:$4 sm:$0xff]  }
 0x2c4   :  { %5877 = vmatpush1.bf16.msra.mxu0 %v8143_v28  ;;  %5427 = vmatprep.subr.bf16.mxu1 %v8148_v29  ;;  %v8227_v28 = vld [vmem:[#allocation5 + $0xa34] ss:$8 sps:$4 sm:$0xff]  }
 0x2c5   :  { %5878 = vmatprep.subr.bf16.mxu0 %v8151_v30  ;;  %v8230_v29 = vld [vmem:[#allocation5 + $0x1534] ss:$8 sps:$4 sm:$0xff]   ;;  %v8225_v30 = vld [vmem:[#allocation5 + $0xa30] ss:$8 sps:$4 sm:$0xff]  }
 0x2c7   :  { %5428 = vmatpush1.bf16.msra.mxu1 %v8146_v31  ;;  %v8228_v31 = vld [vmem:[#allocation5 + $0x1530] ss:$8 sps:$4 sm:$0xff]  }
 0x2c8   :  { %5879 = vmatpush1.bf16.msra.mxu0 %v8149_v34  ;;  %5429 = vmatprep.subr.bf16.mxu1 %v8154_v6  ;;  %v8233_v34 = vld [vmem:[#allocation5 + $0xa44] ss:$8 sps:$4 sm:$0xff]  }
 0x2c9   :  { %5880 = vmatprep.subr.bf16.mxu0 %v8157_v12  ;;  %v8236_v6 = vld [vmem:[#allocation5 + $0x1544] ss:$8 sps:$4 sm:$0xff]   ;;  %v8231_v12 = vld [vmem:[#allocation5 + $0xa40] ss:$8 sps:$4 sm:$0xff]  }
 0x2cb   :  { %5430 = vmatpush1.bf16.msra.mxu1 %v8152_v7  ;;  %v8234_v7 = vld [vmem:[#allocation5 + $0x1540] ss:$8 sps:$4 sm:$0xff]  }
 0x2cc   :  { %5881 = vmatpush1.bf16.msra.mxu0 %v8155_v35  ;;  %5431 = vmatprep.subr.bf16.mxu1 %v8160_v36  ;;  %v8239_v35 = vld [vmem:[#allocation5 + $0xa54] ss:$8 sps:$4 sm:$0xff]  }
 0x2cd   :  { %5882 = vmatprep.subr.bf16.mxu0 %v8163_v38  ;;  %v8242_v36 = vld [vmem:[#allocation5 + $0x1554] ss:$8 sps:$4 sm:$0xff]   ;;  %v8237_v38 = vld [vmem:[#allocation5 + $0xa50] ss:$8 sps:$4 sm:$0xff]  }
 0x2cf   :  { %5432 = vmatpush1.bf16.msra.mxu1 %v8158_v41  ;;  %v8240_v41 = vld [vmem:[#allocation5 + $0x1550] ss:$8 sps:$4 sm:$0xff]  }
 0x2d0   :  { %5883 = vmatpush1.bf16.msra.mxu0 %v8161_v45  ;;  %5433 = vmatprep.subr.bf16.mxu1 %v8166_v39  ;;  %v8245_v45 = vld [vmem:[#allocation5 + $0xa64] ss:$8 sps:$4 sm:$0xff]  }
 0x2d1   :  { %5884 = vmatprep.subr.bf16.mxu0 %v8169_v46  ;;  %v8248_v39 = vld [vmem:[#allocation5 + $0x1564] ss:$8 sps:$4 sm:$0xff]   ;;  %v8243_v46 = vld [vmem:[#allocation5 + $0xa60] ss:$8 sps:$4 sm:$0xff]  }
 0x2d3   :  { %5434 = vmatpush1.bf16.msra.mxu1 %v8164_v47  ;;  %v8246_v47 = vld [vmem:[#allocation5 + $0x1560] ss:$8 sps:$4 sm:$0xff]  }
 0x2d4   :  { %5885 = vmatpush1.bf16.msra.mxu0 %v8167_v25  ;;  %5435 = vmatprep.subr.bf16.mxu1 %v8172_v51  ;;  %v8251_v25 = vld [vmem:[#allocation5 + $0xa74] ss:$8 sps:$4 sm:$0xff]  }
 0x2d5   :  { %5886 = vmatprep.subr.bf16.mxu0 %v8175_v19  ;;  %v8254_v51 = vld [vmem:[#allocation5 + $0x1574] ss:$8 sps:$4 sm:$0xff]   ;;  %v8249_v19 = vld [vmem:[#allocation5 + $0xa70] ss:$8 sps:$4 sm:$0xff]  }
 0x2d7   :  { %5436 = vmatpush1.bf16.msra.mxu1 %v8170_v20  ;;  %v8252_v20 = vld [vmem:[#allocation5 + $0x1570] ss:$8 sps:$4 sm:$0xff]  }
 0x2d8   :  { %5887 = vmatpush1.bf16.msra.mxu0 %v8173_v52  ;;  %5437 = vmatprep.subr.bf16.mxu1 %v8178_v54  ;;  %v8257_v52 = vld [vmem:[#allocation5 + $0xa84] ss:$8 sps:$4 sm:$0xff]  }
 0x2d9   :  { %5888 = vmatprep.subr.bf16.mxu0 %v8181_v55  ;;  %v8260_v54 = vld [vmem:[#allocation5 + $0x1584] ss:$8 sps:$4 sm:$0xff]   ;;  %v8255_v55 = vld [vmem:[#allocation5 + $0xa80] ss:$8 sps:$4 sm:$0xff]  }
 0x2db   :  { %5438 = vmatpush1.bf16.msra.mxu1 %v8176_v56  ;;  %v8258_v56 = vld [vmem:[#allocation5 + $0x1580] ss:$8 sps:$4 sm:$0xff]  }
 0x2dc   :  { %5889 = vmatpush1.bf16.msra.mxu0 %v8179_v37  ;;  %5439 = vmatprep.subr.bf16.mxu1 %v8184_v60  ;;  %v8263_v37 = vld [vmem:[#allocation5 + $0xa94] ss:$8 sps:$4 sm:$0xff]  }
 0x2dd   :  { %5890 = vmatprep.subr.bf16.mxu0 %v8187_v40  ;;  %v8266_v60 = vld [vmem:[#allocation5 + $0x1594] ss:$8 sps:$4 sm:$0xff]   ;;  %v8261_v40 = vld [vmem:[#allocation5 + $0xa90] ss:$8 sps:$4 sm:$0xff]  }
 0x2df   :  { %5440 = vmatpush1.bf16.msra.mxu1 %v8182_v61  ;;  %v8264_v61 = vld [vmem:[#allocation5 + $0x1590] ss:$8 sps:$4 sm:$0xff]  }
 0x2e0   :  { %5891 = vmatpush1.bf16.msra.mxu0 %v8185_v42  ;;  %5441 = vmatprep.subr.bf16.mxu1 %v8190_v63  ;;  %v8269_v42 = vld [vmem:[#allocation5 + $0xaa4] ss:$8 sps:$4 sm:$0xff]  }
 0x2e1   :  { %5892 = vmatprep.subr.bf16.mxu0 %v8193_v32  ;;  %v8272_v63 = vld [vmem:[#allocation5 + $0x15a4] ss:$8 sps:$4 sm:$0xff]   ;;  %v8267_v32 = vld [vmem:[#allocation5 + $0xaa0] ss:$8 sps:$4 sm:$0xff]  }
 0x2e3   :  { %5442 = vmatpush1.bf16.msra.mxu1 %v8188_v33  ;;  %v8270_v33 = vld [vmem:[#allocation5 + $0x15a0] ss:$8 sps:$4 sm:$0xff]  }
 0x2e4   :  { %5893 = vmatpush1.bf16.msra.mxu0 %v8191_v1  ;;  %5443 = vmatprep.subr.bf16.mxu1 %v8196_v2  ;;  %v8275_v1 = vld [vmem:[#allocation5 + $0xab4] ss:$8 sps:$4 sm:$0xff]  }
 0x2e5   :  { %5894 = vmatprep.subr.bf16.mxu0 %v8199_v3  ;;  %v8278_v2 = vld [vmem:[#allocation5 + $0x15b4] ss:$8 sps:$4 sm:$0xff]   ;;  %v8273_v3 = vld [vmem:[#allocation5 + $0xab0] ss:$8 sps:$4 sm:$0xff]  }
 0x2e7   :  { %5444 = vmatpush1.bf16.msra.mxu1 %v8194_v5  ;;  %v8281_v5 = vld [vmem:[#allocation5 + $0xac4] ss:$8 sps:$4 sm:$0xff]  }
 0x2e8   :  { %5895 = vmatpush1.bf16.msra.mxu0 %v8197_v8  ;;  %5445 = vmatprep.subr.bf16.mxu1 %v8202_v14  ;;  %v8284_v8 = vld [vmem:[#allocation5 + $0x15c4] ss:$8 sps:$4 sm:$0xff]   ;;  %v8279_v14 = vld [vmem:[#allocation5 + $0xac0] ss:$8 sps:$4 sm:$0xff]  }
 0x2e9   :  { %5896 = vmatprep.subr.bf16.mxu0 %v8205_v53  ;;  %v8282_v53 = vld [vmem:[#allocation5 + $0x15c0] ss:$8 sps:$4 sm:$0xff]  }
 0x2eb   :  { %5446 = vmatpush1.bf16.msra.mxu1 %v8200_v10  ;;  %v8287_v10 = vld [vmem:[#allocation5 + $0xad4] ss:$8 sps:$4 sm:$0xff]  }
 0x2ec   :  { %5897 = vmatpush1.bf16.msra.mxu0 %v8203_v11  ;;  %5456 = vmatprep.subr.bf16.mxu1 %v8209_v57  ;;  %v8290_v11 = vld [vmem:[#allocation5 + $0x15d4] ss:$8 sps:$4 sm:$0xff]   ;;  %v8285_v57 = vld [vmem:[#allocation5 + $0xad0] ss:$8 sps:$4 sm:$0xff]  }
 0x2ed   :  { %5907 = vmatprep.subr.bf16.mxu0 %v8212_v48  ;;  %v8288_v48 = vld [vmem:[#allocation5 + $0x15d0] ss:$8 sps:$4 sm:$0xff]  }
 0x2ee   :  { %5448 = vmatmul.mubr.bf16.vlgmr.msra.gmra.mrb[0].mxu1 %v396_v15  ;;  %v8985_v15 = vld [vmem:[#allocation2 + $0x58] sm:$0xff] }
 0x2ef   :  { %5899 = vmatmul.mubr.bf16.vlgmr.msra.gmra.mrb[0].mxu0 %v418_v16  ;;  %5457 = vmatpush1.bf16.msra.mxu1 %v8207_v17  ;;  %v8291_v16 = vld [vmem:[#allocation5 + $0xae0] ss:$8 sps:$4 sm:$0xff]  }
 0x2f0   :  { %5908 = vmatpush1.bf16.msra.mxu0 %v8210_v18  ;;  %5458 = vmatprep.subr.bf16.mxu1 %v8215_v21  ;;  %v8294_v17 = vld [vmem:[#allocation5 + $0x15e0] ss:$8 sps:$4 sm:$0xff]   ;;  %v8989_v18 = vrot.slane %v8985_v15, %v8795_v49  ;;  %v8299_v21 = vld [vmem:[#allocation5 + $0xaf4] ss:$8 sps:$4 sm:$0xff]  }
 0x2f1   :  { %5909 = vmatprep.subr.bf16.mxu0 %v8218_v58  ;;  %5488 = vmatprep.mubr.bf16.mxu1 %v399_v0  ;;  %v8302_v58 = vld [vmem:[#allocation5 + $0x15f4] ss:$8 sps:$4 sm:$0xff]   ;;  %v8297_v0 = vld [vmem:[#allocation5 + $0xaf0] ss:$8 sps:$4 sm:$0xff]  }
 0x2f2   :  { %5939 = vmatprep.mubr.bf16.mxu0 %v421_v59  ;;  %v8300_v59 = vld [vmem:[#allocation5 + $0x15f0] ss:$8 sps:$4 sm:$0xff]  }
 0x2f3   :  { %5459 = vmatpush1.bf16.msra.mxu1 %v8213_v22  ;;  %v328_v22 = vcombine.high %v8989_v18, %v8989_v18 }
 0x2f4   :  { %5910 = vmatpush1.bf16.msra.mxu0 %v8216_v23  ;;  %5460 = vmatprep.subr.bf16.mxu1 %v8221_v27  ;;  %v8306_v23 = vld [vmem:[#allocation5 + $0x1604] ss:$8 sps:$4 sm:$0xff]   ;;  %v398_v27 = vpack.c.bf16 %v8972_v44, %v8972_v44  ;;  %v8315_v44 = vld [vmem:[#allocation5 + $0x1634] ss:$8 sps:$4 sm:$0xff]  }
 0x2f5   :  { %5911 = vmatprep.subr.bf16.mxu0 %v8224_v62  ;;  %v420_v62 = vpack.c.bf16 %v8975_v9, %v8975_v9  ;;  %v8318_v9 = vld [vmem:[#allocation5 + $0x1644] ss:$8 sps:$4 sm:$0xff]  }
 0x2f7   :  { %5461 = vmatpush1.bf16.msra.mxu1 %v8219_v24  ;;  %v8304_v24 = vld [vmem:[#allocation5 + $0x1600] ss:$8 sps:$4 sm:$0xff]  }
 0x2f8   :  { %5912 = vmatpush1.bf16.msra.mxu0 %v8222_v26  ;;  %5462 = vmatprep.subr.bf16.mxu1 %v8227_v28  ;;  %v423_v26 = vpack.c.bf16 %v328_v22, %v328_v22  ;;  %v8309_v28 = vld [vmem:[#allocation5 + $0x1614] ss:$8 sps:$4 sm:$0xff]   ;;  %v8376_v22 = vld [vmem:[#allocation5 + $0x1780] ss:$8 sps:$4 sm:$0xff]  }
 0x2f9   :  { %5913 = vmatprep.subr.bf16.mxu0 %v8230_v29  ;;  %v8307_v29 = vld [vmem:[#allocation5 + $0x1610] ss:$8 sps:$4 sm:$0xff]  }
 0x2fb   :  { %5463 = vmatpush1.bf16.msra.mxu1 %v8225_v30  ;;  %v8312_v30 = vld [vmem:[#allocation5 + $0x1624] ss:$8 sps:$4 sm:$0xff]  }
 0x2fc   :  { %5914 = vmatpush1.bf16.msra.mxu0 %v8228_v31  ;;  %5464 = vmatprep.subr.bf16.mxu1 %v8233_v34  ;;  %v8310_v31 = vld [vmem:[#allocation5 + $0x1620] ss:$8 sps:$4 sm:$0xff]   ;;  %v8313_v34 = vld [vmem:[#allocation5 + $0x1630] ss:$8 sps:$4 sm:$0xff]  }
 0x2fd   :  { %5915 = vmatprep.subr.bf16.mxu0 %v8236_v6  ;;  %v8316_v6 = vld [vmem:[#allocation5 + $0x1640] ss:$8 sps:$4 sm:$0xff]  }
 0x2ff   :  { %5465 = vmatpush1.bf16.msra.mxu1 %v8231_v12  ;;  %v8321_v12 = vld [vmem:[#allocation5 + $0x1654] ss:$8 sps:$4 sm:$0xff]  }
 0x300   :  { %5916 = vmatpush1.bf16.msra.mxu0 %v8234_v7  ;;  %5466 = vmatprep.subr.bf16.mxu1 %v8239_v35  ;;  %v8319_v7 = vld [vmem:[#allocation5 + $0x1650] ss:$8 sps:$4 sm:$0xff]   ;;  %v8324_v35 = vld [vmem:[#allocation5 + $0x1664] ss:$8 sps:$4 sm:$0xff]  }
 0x301   :  { %5917 = vmatprep.subr.bf16.mxu0 %v8242_v36  ;;  %v8322_v36 = vld [vmem:[#allocation5 + $0x1660] ss:$8 sps:$4 sm:$0xff]  }
 0x303   :  { %5467 = vmatpush1.bf16.msra.mxu1 %v8237_v38  ;;  %v8327_v38 = vld [vmem:[#allocation5 + $0x1674] ss:$8 sps:$4 sm:$0xff]  }
 0x304   :  { %5918 = vmatpush1.bf16.msra.mxu0 %v8240_v41  ;;  %5468 = vmatprep.subr.bf16.mxu1 %v8245_v45  ;;  %v8325_v41 = vld [vmem:[#allocation5 + $0x1670] ss:$8 sps:$4 sm:$0xff]   ;;  %v8330_v45 = vld [vmem:[#allocation5 + $0x1684] ss:$8 sps:$4 sm:$0xff]  }
 0x305   :  { %5919 = vmatprep.subr.bf16.mxu0 %v8248_v39  ;;  %v8328_v39 = vld [vmem:[#allocation5 + $0x1680] ss:$8 sps:$4 sm:$0xff]  }
 0x307   :  { %5469 = vmatpush1.bf16.msra.mxu1 %v8243_v46  ;;  %v8333_v46 = vld [vmem:[#allocation5 + $0x1694] ss:$8 sps:$4 sm:$0xff]  }
 0x308   :  { %5920 = vmatpush1.bf16.msra.mxu0 %v8246_v47  ;;  %5470 = vmatprep.subr.bf16.mxu1 %v8251_v25  ;;  %v8331_v47 = vld [vmem:[#allocation5 + $0x1690] ss:$8 sps:$4 sm:$0xff]   ;;  %v8336_v25 = vld [vmem:[#allocation5 + $0x16a4] ss:$8 sps:$4 sm:$0xff]  }
 0x309   :  { %5921 = vmatprep.subr.bf16.mxu0 %v8254_v51  ;;  %v8334_v51 = vld [vmem:[#allocation5 + $0x16a0] ss:$8 sps:$4 sm:$0xff]  }
 0x30b   :  { %5471 = vmatpush1.bf16.msra.mxu1 %v8249_v19  ;;  %v8339_v19 = vld [vmem:[#allocation5 + $0x16b4] ss:$8 sps:$4 sm:$0xff]  }
 0x30c   :  { %5922 = vmatpush1.bf16.msra.mxu0 %v8252_v20  ;;  %5472 = vmatprep.subr.bf16.mxu1 %v8257_v52  ;;  %v8337_v20 = vld [vmem:[#allocation5 + $0x16b0] ss:$8 sps:$4 sm:$0xff]   ;;  %v8342_v52 = vld [vmem:[#allocation5 + $0x16c4] ss:$8 sps:$4 sm:$0xff]  }
 0x30d   :  { %5923 = vmatprep.subr.bf16.mxu0 %v8260_v54  ;;  %v8340_v54 = vld [vmem:[#allocation5 + $0x16c0] ss:$8 sps:$4 sm:$0xff]  }
 0x30f   :  { %5473 = vmatpush1.bf16.msra.mxu1 %v8255_v55  ;;  %v8345_v55 = vld [vmem:[#allocation5 + $0x16d4] ss:$8 sps:$4 sm:$0xff]  }
 0x310   :  { %5924 = vmatpush1.bf16.msra.mxu0 %v8258_v56  ;;  %5474 = vmatprep.subr.bf16.mxu1 %v8263_v37  ;;  %v8343_v56 = vld [vmem:[#allocation5 + $0x16d0] ss:$8 sps:$4 sm:$0xff]   ;;  %v313_v37 = vcombine.high %v8985_v15, %v8985_v15  ;;  %v8375_v15 = vld [vmem:[#allocation5 + $0x1774] ss:$8 sps:$4 sm:$0xff]  }
 0x311   :  { %5925 = vmatprep.subr.bf16.mxu0 %v8266_v60  ;;  %v8348_v60 = vld [vmem:[#allocation5 + $0x16e4] ss:$8 sps:$4 sm:$0xff]  }
 0x313   :  { %5475 = vmatpush1.bf16.msra.mxu1 %v8261_v40  ;;  %v8346_v40 = vld [vmem:[#allocation5 + $0x16e0] ss:$8 sps:$4 sm:$0xff]  }
 0x314   :  { %5926 = vmatpush1.bf16.msra.mxu0 %v8264_v61  ;;  %5476 = vmatprep.subr.bf16.mxu1 %v8269_v42  ;;  %v9000_v61 = vrot.slane %v313_v37, %v8795_v49  ;;  %v8351_v42 = vld [vmem:[#allocation5 + $0x16f4] ss:$8 sps:$4 sm:$0xff]   ;;  %v8355_v49 = vld [vmem:[#allocation5 + $0x1710] ss:$8 sps:$4 sm:$0xff]   ;;  %v8431_v37 = vld [vmem:[#allocation8 + $0xa0] ss:$8 sps:$4 sm:$0xff]  }
 0x315   :  { %5927 = vmatprep.subr.bf16.mxu0 %v8272_v63  ;;  %v8349_v63 = vld [vmem:[#allocation5 + $0x16f0] ss:$8 sps:$4 sm:$0xff]  }
 0x317   :  { %5477 = vmatpush1.bf16.msra.mxu1 %v8267_v32  ;;  %v329_v32 = vcombine.high %v9000_v61, %v9000_v61 }
 0x318   :  { %5928 = vmatpush1.bf16.msra.mxu0 %v8270_v33  ;;  %5478 = vmatprep.subr.bf16.mxu1 %v8275_v1  ;;  %v8354_v33 = vld [vmem:[#allocation5 + $0x1704] ss:$8 sps:$4 sm:$0xff]   ;;  %v422_v1 = vpack.c.bf16 %v8989_v18, %v8989_v18  ;;  %v8406_v18 = vld [vmem:[#allocation8 + $0x14] ss:$8 sps:$4 sm:$0xff]  }
 0x319   :  { %5929 = vmatprep.subr.bf16.mxu0 %v8278_v2  ;;  %v8352_v2 = vld [vmem:[#allocation5 + $0x1700] ss:$8 sps:$4 sm:$0xff]  }
 0x31b   :  { %5479 = vmatpush1.bf16.msra.mxu1 %v8273_v3  ;;  %v425_v3 = vpack.c.bf16 %v329_v32, %v329_v32  ;;  %v8442_v32 = vld [vmem:[#allocation8 + $0xd4] ss:$8 sps:$4 sm:$0xff]  }
 0x31c   :  { %5930 = vmatpush1.bf16.msra.mxu0 %v8276_v4  ;;  %5480 = vmatprep.subr.bf16.mxu1 %v8281_v5  ;;  %v8357_v4 = vld [vmem:[#allocation5 + $0x1714] ss:$8 sps:$4 sm:$0xff]   ;;  %v8360_v5 = vld [vmem:[#allocation5 + $0x1724] ss:$8 sps:$4 sm:$0xff]  }
 0x31d   :  { %5931 = vmatprep.subr.bf16.mxu0 %v8284_v8  ;;  %v8358_v8 = vld [vmem:[#allocation5 + $0x1720] ss:$8 sps:$4 sm:$0xff]  }
 0x31f   :  { %5481 = vmatpush1.bf16.msra.mxu1 %v8279_v14  ;;  %v8363_v14 = vld [vmem:[#allocation5 + $0x1734] ss:$8 sps:$4 sm:$0xff]  }
 0x320   :  { %5932 = vmatpush1.bf16.msra.mxu0 %v8282_v53  ;;  %5482 = vmatprep.subr.bf16.mxu1 %v8287_v10  ;;  %v8361_v53 = vld [vmem:[#allocation5 + $0x1730] ss:$8 sps:$4 sm:$0xff]   ;;  %v8366_v10 = vld [vmem:[#allocation5 + $0x1744] ss:$8 sps:$4 sm:$0xff]  }
 0x321   :  { %5933 = vmatprep.subr.bf16.mxu0 %v8290_v11  ;;  %v8364_v11 = vld [vmem:[#allocation5 + $0x1740] ss:$8 sps:$4 sm:$0xff]  }
 0x323   :  { %5483 = vmatpush1.bf16.msra.mxu1 %v8285_v57  ;;  %v8369_v57 = vld [vmem:[#allocation5 + $0x1754] ss:$8 sps:$4 sm:$0xff]  }
 0x324   :  { %5934 = vmatpush1.bf16.msra.mxu0 %v8288_v48  ;;  %5484 = vmatprep.subr.bf16.mxu1 %v8293_v50  ;;  %v8367_v48 = vld [vmem:[#allocation5 + $0x1750] ss:$8 sps:$4 sm:$0xff]   ;;  %v8372_v50 = vld [vmem:[#allocation5 + $0x1764] ss:$8 sps:$4 sm:$0xff]  }
 0x325   :  { %5935 = vmatprep.subr.bf16.mxu0 %v8296_v13  ;;  %v8370_v13 = vld [vmem:[#allocation5 + $0x1760] ss:$8 sps:$4 sm:$0xff]  }
 0x327   :  { %5485 = vmatpush1.bf16.msra.mxu1 %v8291_v16  ;;  %v8401_v16 = vld [vmem:[#allocation8] ss:$8 sps:$4 sm:$0xff]  }
 0x328   :  { %5936 = vmatpush1.bf16.msra.mxu0 %v8294_v17  ;;  %5486 = vmatprep.subr.bf16.mxu1 %v8299_v21  ;;  %v8403_v17 = vld [vmem:[#allocation8 + $0x4] ss:$8 sps:$4 sm:$0xff]  }
 0x329   :  { %5937 = vmatprep.subr.bf16.mxu0 %v8302_v58  ;;  %v8373_v21 = vld [vmem:[#allocation5 + $0x1770] ss:$8 sps:$4 sm:$0xff]  }
 0x32a   :  { %v8404_v58 = vld [vmem:[#allocation8 + $0x10] ss:$8 sps:$4 sm:$0xff]  }
 0x32b   :  { %5487 = vmatpush1.bf16.msra.mxu1 %v8297_v0  ;;  %v8378_v0 = vld [vmem:[#allocation5 + $0x1784] ss:$8 sps:$4 sm:$0xff]  }
 0x32c   :  { %5938 = vmatpush1.bf16.msra.mxu0 %v8300_v59  ;;  %6238 = vmatprep.subr.bf16.mxu1 %v8403_v17  ;;  %v8409_v59 = vld [vmem:[#allocation8 + $0x24] ss:$8 sps:$4 sm:$0xff]  }
 0x32d   :  { %5948 = vmatprep.subr.bf16.mxu0 %v8306_v23  ;;  %v8407_v23 = vld [vmem:[#allocation8 + $0x20] ss:$8 sps:$4 sm:$0xff]  }
 0x32e   :  { %5489 = vmatmul.mubr.bf16.vlgmr.msra.gmra.mrb[0].mxu1 %v398_v27  ;;  %v8381_v27 = vld [vmem:[#allocation5 + $0x1794] ss:$8 sps:$4 sm:$0xff]  }
 0x32f   :  { %5940 = vmatmul.mubr.bf16.vlgmr.msra.gmra.mrb[0].mxu0 %v420_v62  ;;  %6239 = vmatpush1.bf16.msra.mxu1 %v8401_v16  ;;  %v8412_v62 = vld [vmem:[#allocation8 + $0x34] ss:$8 sps:$4 sm:$0xff]  }
 0x330   :  { %5949 = vmatpush1.bf16.msra.mxu0 %v8304_v24  ;;  %5980 = vmatprep.mubr.bf16.mxu0 %v423_v26  ;;  %v8379_v24 = vld [vmem:[#allocation5 + $0x1790] ss:$8 sps:$4 sm:$0xff]  }
 0x331   :  { %5950 = vmatprep.subr.bf16.mxu0 %v8309_v28  ;;  %6240 = vmatprep.subr.bf16.mxu1 %v8406_v18  ;;  %v8410_v26 = vld [vmem:[#allocation8 + $0x30] ss:$8 sps:$4 sm:$0xff]   ;;  %v8384_v28 = vld [vmem:[#allocation5 + $0x17a4] ss:$8 sps:$4 sm:$0xff]  }
 0x333   :  { %6241 = vmatpush1.bf16.msra.mxu1 %v8404_v58 }
 0x334   :  { %5951 = vmatpush1.bf16.msra.mxu0 %v8307_v29  ;;  %6242 = vmatprep.subr.bf16.mxu1 %v8409_v59  ;;  %v8415_v29 = vld [vmem:[#allocation8 + $0x44] ss:$8 sps:$4 sm:$0xff]  }
 0x335   :  { %5952 = vmatprep.subr.bf16.mxu0 %v8312_v30  ;;  %v8382_v30 = vld [vmem:[#allocation5 + $0x17a0] ss:$8 sps:$4 sm:$0xff]  }
 0x337   :  { %6243 = vmatpush1.bf16.msra.mxu1 %v8407_v23  ;;  %v6066_v23 = vld [vmem:[#allocation10] sm:$0x3] }
 0x338   :  { %5953 = vmatpush1.bf16.msra.mxu0 %v8310_v31  ;;  %6244 = vmatprep.subr.bf16.mxu1 %v8412_v62  ;;  %v8413_v31 = vld [vmem:[#allocation8 + $0x40] ss:$8 sps:$4 sm:$0xff]  }
 0x339   :  { %5954 = vmatprep.subr.bf16.mxu0 %v8315_v44  ;;  %v8387_v44 = vld [vmem:[#allocation5 + $0x17b4] ss:$8 sps:$4 sm:$0xff]  }
 0x33b   :  { %6245 = vmatpush1.bf16.msra.mxu1 %v8410_v26 }
 0x33c   :  { %5955 = vmatpush1.bf16.msra.mxu0 %v8313_v34  ;;  %6246 = vmatprep.subr.bf16.mxu1 %v8415_v29  ;;  %v8418_v34 = vld [vmem:[#allocation8 + $0x54] ss:$8 sps:$4 sm:$0xff]  }
 0x33d   :  { %5956 = vmatprep.subr.bf16.mxu0 %v8318_v9  ;;  %v8385_v9 = vld [vmem:[#allocation5 + $0x17b0] ss:$8 sps:$4 sm:$0xff]  }
 0x33f   :  { %6247 = vmatpush1.bf16.msra.mxu1 %v8413_v31 }
 0x340   :  { %5957 = vmatpush1.bf16.msra.mxu0 %v8316_v6  ;;  %v8416_v6 = vld [vmem:[#allocation8 + $0x50] ss:$8 sps:$4 sm:$0xff]   ;;  %6248 = vmatprep.subr.bf16.mxu1 %v8418_v34 }
 0x341   :  { %5958 = vmatprep.subr.bf16.mxu0 %v8321_v12  ;;  %v8390_v12 = vld [vmem:[#allocation5 + $0x17c4] ss:$8 sps:$4 sm:$0xff]  }
 0x343   :  { %6249 = vmatpush1.bf16.msra.mxu1 %v8416_v6 }
 0x344   :  { %5959 = vmatpush1.bf16.msra.mxu0 %v8319_v7  ;;  %v8421_v7 = vld [vmem:[#allocation8 + $0x64] ss:$8 sps:$4 sm:$0xff]  }
 0x345   :  { %5960 = vmatprep.subr.bf16.mxu0 %v8324_v35  ;;  %v8388_v35 = vld [vmem:[#allocation5 + $0x17c0] ss:$8 sps:$4 sm:$0xff]   ;;  %6250 = vmatprep.subr.bf16.mxu1 %v8421_v7 }
 0x348   :  { %5961 = vmatpush1.bf16.msra.mxu0 %v8322_v36  ;;  %v8419_v36 = vld [vmem:[#allocation8 + $0x60] ss:$8 sps:$4 sm:$0xff]  }
 0x349   :  { %5962 = vmatprep.subr.bf16.mxu0 %v8327_v38  ;;  %v8393_v38 = vld [vmem:[#allocation5 + $0x17d4] ss:$8 sps:$4 sm:$0xff]   ;;  %6251 = vmatpush1.bf16.msra.mxu1 %v8419_v36 }
 0x34c   :  { %5963 = vmatpush1.bf16.msra.mxu0 %v8325_v41  ;;  %v8424_v41 = vld [vmem:[#allocation8 + $0x74] ss:$8 sps:$4 sm:$0xff]  }
 0x34d   :  { %5964 = vmatprep.subr.bf16.mxu0 %v8330_v45  ;;  %v8391_v45 = vld [vmem:[#allocation5 + $0x17d0] ss:$8 sps:$4 sm:$0xff]   ;;  %6252 = vmatprep.subr.bf16.mxu1 %v8424_v41 }
 0x350   :  { %5965 = vmatpush1.bf16.msra.mxu0 %v8328_v39  ;;  %v8422_v39 = vld [vmem:[#allocation8 + $0x70] ss:$8 sps:$4 sm:$0xff]  }
 0x351   :  { %5966 = vmatprep.subr.bf16.mxu0 %v8333_v46  ;;  %v8396_v46 = vld [vmem:[#allocation5 + $0x17e4] ss:$8 sps:$4 sm:$0xff]   ;;  %6253 = vmatpush1.bf16.msra.mxu1 %v8422_v39 }
 0x354   :  { %5967 = vmatpush1.bf16.msra.mxu0 %v8331_v47  ;;  %v8427_v47 = vld [vmem:[#allocation8 + $0x84] ss:$8 sps:$4 sm:$0xff]  }
 0x355   :  { %5968 = vmatprep.subr.bf16.mxu0 %v8336_v25  ;;  %v8394_v25 = vld [vmem:[#allocation5 + $0x17e0] ss:$8 sps:$4 sm:$0xff]   ;;  %6254 = vmatprep.subr.bf16.mxu1 %v8427_v47 }
 0x358   :  { %5969 = vmatpush1.bf16.msra.mxu0 %v8334_v51  ;;  %v8425_v51 = vld [vmem:[#allocation8 + $0x80] ss:$8 sps:$4 sm:$0xff]  }
 0x359   :  { %5970 = vmatprep.subr.bf16.mxu0 %v8339_v19  ;;  %v8399_v19 = vld [vmem:[#allocation5 + $0x17f4] ss:$8 sps:$4 sm:$0xff]   ;;  %6255 = vmatpush1.bf16.msra.mxu1 %v8425_v51 }
 0x35c   :  { %5971 = vmatpush1.bf16.msra.mxu0 %v8337_v20  ;;  %v8430_v20 = vld [vmem:[#allocation8 + $0x94] ss:$8 sps:$4 sm:$0xff]  }
 0x35d   :  { %5972 = vmatprep.subr.bf16.mxu0 %v8342_v52  ;;  %v8397_v52 = vld [vmem:[#allocation5 + $0x17f0] ss:$8 sps:$4 sm:$0xff]   ;;  %6256 = vmatprep.subr.bf16.mxu1 %v8430_v20 }
 0x360   :  { %5973 = vmatpush1.bf16.msra.mxu0 %v8340_v54  ;;  %v8428_v54 = vld [vmem:[#allocation8 + $0x90] ss:$8 sps:$4 sm:$0xff]  }
 0x361   :  { %5974 = vmatprep.subr.bf16.mxu0 %v8345_v55  ;;  %v8433_v55 = vld [vmem:[#allocation8 + $0xa4] ss:$8 sps:$4 sm:$0xff]   ;;  %6257 = vmatpush1.bf16.msra.mxu1 %v8428_v54 }
 0x362   :  { %6258 = vmatprep.subr.bf16.mxu1 %v8433_v55 }
 0x364   :  { %5975 = vmatpush1.bf16.msra.mxu0 %v8343_v56  ;;  %v424_v56 = vpack.c.bf16 %v9000_v61, %v9000_v61 }
 0x365   :  { %5976 = vmatprep.subr.bf16.mxu0 %v8348_v60  ;;  %v8436_v60 = vld [vmem:[#allocation8 + $0xb4] ss:$8 sps:$4 sm:$0xff]   ;;  %6259 = vmatpush1.bf16.msra.mxu1 %v8431_v37 }
 0x366   :  { %6260 = vmatprep.subr.bf16.mxu1 %v8436_v60 }
 0x368   :  { %5977 = vmatpush1.bf16.msra.mxu0 %v8346_v40  ;;  %v8434_v40 = vld [vmem:[#allocation8 + $0xb0] ss:$8 sps:$4 sm:$0xff]  }
 0x369   :  { %5978 = vmatprep.subr.bf16.mxu0 %v8351_v42  ;;  %v8439_v42 = vld [vmem:[#allocation8 + $0xc4] ss:$8 sps:$4 sm:$0xff]   ;;  %6261 = vmatpush1.bf16.msra.mxu1 %v8434_v40 }
 0x36a   :  { %6262 = vmatprep.subr.bf16.mxu1 %v8439_v42 }
 0x36c   :  { %5979 = vmatpush1.bf16.msra.mxu0 %v8349_v63  ;;  %v8437_v63 = vld [vmem:[#allocation8 + $0xc0] ss:$8 sps:$4 sm:$0xff]  }
 0x36d   :  { %5989 = vmatprep.subr.bf16.mxu0 %v8354_v33  ;;  %6263 = vmatpush1.bf16.msra.mxu1 %v8437_v63  ;;  %v8440_v33 = vld [vmem:[#allocation8 + $0xd0] ss:$8 sps:$4 sm:$0xff]  }
 0x36e   :  { %6264 = vmatprep.subr.bf16.mxu1 %v8442_v32 }
 0x36f   :  { %5981 = vmatmul.mubr.bf16.vlgmr.msra.gmra.mrb[0].mxu0 %v422_v1  ;;  %v8445_v1 = vld [vmem:[#allocation8 + $0xe4] ss:$8 sps:$4 sm:$0xff]  }
 0x370   :  { %5990 = vmatpush1.bf16.msra.mxu0 %v8352_v2  ;;  %6021 = vmatprep.mubr.bf16.mxu0 %v425_v3  ;;  %v8443_v2 = vld [vmem:[#allocation8 + $0xe0] ss:$8 sps:$4 sm:$0xff]  }
 0x371   :  { %5991 = vmatprep.subr.bf16.mxu0 %v8357_v4  ;;  %6265 = vmatpush1.bf16.msra.mxu1 %v8440_v33 }
 0x372   :  { %6266 = vmatprep.subr.bf16.mxu1 %v8445_v1 }
 0x374   :  { %5992 = vmatpush1.bf16.msra.mxu0 %v8355_v49 }
 0x375   :  { %5993 = vmatprep.subr.bf16.mxu0 %v8360_v5  ;;  %6267 = vmatpush1.bf16.msra.mxu1 %v8443_v2  ;;  %v8448_v5 = vld [vmem:[#allocation8 + $0xf4] ss:$8 sps:$4 sm:$0xff]  }
 0x376   :  { %6268 = vmatprep.subr.bf16.mxu1 %v8448_v5 }
 0x378   :  { %5994 = vmatpush1.bf16.msra.mxu0 %v8358_v8  ;;  %v8446_v8 = vld [vmem:[#allocation8 + $0xf0] ss:$8 sps:$4 sm:$0xff]  }
 0x379   :  { %5995 = vmatprep.subr.bf16.mxu0 %v8363_v14  ;;  %6269 = vmatpush1.bf16.msra.mxu1 %v8446_v8  ;;  %v1198_v14 = vsub.s32 0, %v8792_v43 }
 0x37c   :  { %5996 = vmatpush1.bf16.msra.mxu0 %v8361_v53  ;;  %v1194_v53 = vld [vmem:[#allocation7] sm:$0x3] }
 0x37d   :  { %5997 = vmatprep.subr.bf16.mxu0 %v8366_v10  ;;  %v1202_v10 = vsub.s32 1, %v8792_v43 }
 0x37f   :  { %v6075_v62 = vrot.slane %v6066_v23, %v1202_v10 }
 0x380   :  { %5998 = vmatpush1.bf16.msra.mxu0 %v8364_v11  ;;  %v1199_v11 = vrot.slane %v1194_v53, %v1198_v14 }
 0x381   :  { %5999 = vmatprep.subr.bf16.mxu0 %v8369_v57  ;;  %v1203_v57 = vrot.slane %v1194_v53, %v1202_v10 }
 0x384   :  { %6000 = vmatpush1.bf16.msra.mxu0 %v8367_v48 }
 0x385   :  { %6001 = vmatprep.subr.bf16.mxu0 %v8372_v50 }
 0x388   :  { %6002 = vmatpush1.bf16.msra.mxu0 %v8370_v13 }
 0x389   :  { %6003 = vmatprep.subr.bf16.mxu0 %v8375_v15 }
 0x38c   :  { %6004 = vmatpush1.bf16.msra.mxu0 %v8373_v21 }
 0x38d   :  { %6005 = vmatprep.subr.bf16.mxu0 %v8378_v0 }
 0x390   :  { %6006 = vmatpush1.bf16.msra.mxu0 %v8376_v22 }
 0x391   :  { %6007 = vmatprep.subr.bf16.mxu0 %v8381_v27  ;;  %v6071_v27 = vrot.slane %v6066_v23, %v1198_v14 }
 0x394   :  { %6008 = vmatpush1.bf16.msra.mxu0 %v8379_v24 }
 0x395   :  { %6009 = vmatprep.subr.bf16.mxu0 %v8384_v28 }
 0x398   :  { %6010 = vmatpush1.bf16.msra.mxu0 %v8382_v30 }
 0x399   :  { %6011 = vmatprep.subr.bf16.mxu0 %v8387_v44 }
 0x39c   :  { %6012 = vmatpush1.bf16.msra.mxu0 %v8385_v9 }
 0x39d   :  { %6013 = vmatprep.subr.bf16.mxu0 %v8390_v12 }
 0x3a0   :  { %6014 = vmatpush1.bf16.msra.mxu0 %v8388_v35 }
 0x3a1   :  { %6015 = vmatprep.subr.bf16.mxu0 %v8393_v38 }
 0x3a4   :  { %6016 = vmatpush1.bf16.msra.mxu0 %v8391_v45 }
 0x3a5   :  { %6017 = vmatprep.subr.bf16.mxu0 %v8396_v46 }
 0x3a8   :  { %6018 = vmatpush1.bf16.msra.mxu0 %v8394_v25 }
 0x3a9   :  { %6019 = vmatprep.subr.bf16.mxu0 %v8399_v19 }
 0x3ac   :  { %6020 = vmatpush1.bf16.msra.mxu0 %v8397_v52 }
 0x3af   :  { %6022 = vmatmul.mubr.bf16.vlgmr.msra.gmra.mrb[0].mxu0 %v424_v56 }
 0x401   :  { %v5490_v61 = vpop.f32.mrb[0].mxu1 }
 0x402   :  { %v5492_v3 = vpop.f32.mrb[1].mxu1  ;;  %v7133_v48 = vadd.f32 %v5490_v61, %v1199_v11 }
 0x403   :  { %v5494_v4 = vpop.f32.mrb[2].mxu1  ;;  %v7135_v50 = vadd.f32 %v5492_v3, %v1203_v57 }
 0x404   :  { %v5495_v49 = vpop.f32.mrb[3].mxu1 }
 0x482   :  { %v6023_v13 = vpop.f32.mrb[0].mxu0 }
 0x483   :  { %v7134_v15 = vadd.f32 %v7133_v48, %v6023_v13  ;;  %v6025_v16 = vpop.f32.mrb[1].mxu0 }
 0x484   :  { %v7136_v17 = vadd.f32 %v7135_v50, %v6025_v16  ;;  %v6027_v18 = vpop.f32.mrb[2].mxu0 }
 0x485   :  { %v6030_v21 = vmax.f32 %v7134_v15, 0.0  ;;  %v6028_v58 = vpop.f32.mrb[3].mxu0 }
 0x486   :  { %v6031_v0 = vmax.f32 %v7136_v17, 0.0 }
 0x487   :  { %v6032_v22 = vpack.c.bf16 %v6030_v21, %v6030_v21 }
 0x488   :  { %v6033_v59 = vpack.c.bf16 %v6031_v0, %v6031_v0 }
 0x48a   :  { %6270 = vmatprep.mubr.bf16.mxu1 %v6033_v59 }
 0x48b   :  { %6271 = vmatmul.mubr.bf16.vlgmr.msra.gmra.mrb[4].mxu1 %v6032_v22 }
 0x55e   :  { %v6272_v43 = vpop.f32.mrb[4].mxu1 }
 0x55f   :  { %v6273_v24 = vadd.f32 %v6272_v43, %v6071_v27  ;;  %v6274_v26 = vpop.f32.mrb[5].mxu1 }
 0x560   :  { %v6275_v28 = vadd.f32 %v6274_v26, %v6075_v62  ;;  %v6276_v29 = vpop.f32.mrb[6].mxu1 }
 0x561   :  { %6286 = vst [vmem:[#allocation14] sm:$0x3] %v6273_v24  ;;  %v6277_v30 = vpop.f32.mrb[7].mxu1 }
 0x562   :  { %v6279_v31 = vmul.f32 0.5, %v6275_v28  ;;  %6287 = vst [vmem:[#allocation16] sm:$0x3] %v6275_v28 }
 0x563   :  { %8596 = shalt.err (!%p8593_p10)
}
 0x564   :  { %s8597_s10 = scalar_lea.hbm %s9060_s7, 32 }
 0x565   :  { %p8598_p11 = scmp.ne.s32.totalorder %s9060_s7, %s8597_s10  ;;  %p8601_p12 = scmp.lt.u32.totalorder %s8597_s10, %s9060_s7 }
 0x567   :  { %p8603_p13 = pnand %p8601_p12, %p8598_p11 }
 0x569   :  { %8606 = shalt.err (!%p8603_p13)
}
 0x56a   :  { %6307 = dma.vmem_to_hbm [thread:$0]  %s6305_s30, 32, %s9060_s7, [#allocation15]  }
 0x56b   :  { %s8607_s2 = scalar_lea.vmem %s9010_s0, 32  ;;  %p8612_p1 = scmp.lt.s32.totalorder %s9010_s0, %s9010_s0 }
 0x56c   :  { %p8608_p0 = scmp.ne.s32.totalorder %s9010_s0, %s8607_s2  ;;  %p8613_p2 = scmp.lt.s32.totalorder %s8607_s2, %s8607_s2 }
 0x56e   :  { %p8614_p3 = por %p8613_p2, %p8612_p1 }
 0x570   :  { %p8615_p4 = pnand %p8614_p3, %p8608_p0 }
 0x572   :  { %8618 = shalt.err (!%p8615_p4)
}
 0x573   :  { %s8619_s15 = scalar_lea.hbm %s9061_s8, 32 }
 0x574   :  { %p8620_p5 = scmp.ne.s32.totalorder %s9061_s8, %s8619_s15  ;;  %p8623_p6 = scmp.lt.u32.totalorder %s8619_s15, %s9061_s8 }
 0x576   :  { %p8625_p7 = pnand %p8623_p6, %p8620_p5 }
 0x578   :  { %8628 = shalt.err (!%p8625_p7)
}
 0x579   :  { %6317 = dma.vmem_to_hbm [thread:$0]  %s9010_s0, 32, %s9061_s8, [#allocation15]   ;;  %v6280_v44 = vmul.f32 1.442695, %v6279_v31  ;;  %v6282_v34 = vld [vmem:[#allocation11] sm:$0x3] }
 0x57a   :  { %s8674_s26 = smov [#allocation13]  }
 0x57b   :  { %8449 = vpow2.f32 %v6280_v44  ;;  %s6294_s27 = sshll.u32 %s8674_s26, 4  ;;  %s6295_s27 = int_to_ptr.vmem [resolvable:$true] %s6294_s27 }
 0x57c   :  { %s8629_s29 = scalar_lea.vmem %s6295_s27, 32  ;;  %p8634_p9 = scmp.lt.s32.totalorder %s6295_s27, %s6295_s27 }
 0x57d   :  { %p8630_p8 = scmp.ne.s32.totalorder %s6295_s27, %s8629_s29  ;;  %p8635_p10 = scmp.lt.s32.totalorder %s8629_s29, %s8629_s29 }
 0x57f   :  { %p8636_p11 = por %p8635_p10, %p8634_p9 }
 0x581   :  { %p8637_p12 = pnand %p8636_p11, %p8630_p8 }
 0x585   :  { %v8450_v9 = vpop.eup %8449 }
 0x586   :  { %v6283_v6 = vmul.f32 %v8450_v9, %v6282_v34 }
 0x588   :  { %v6284_v12 = vadd.f32 %v6283_v6, %v6273_v24 }
 0x58a   :  { %6285 = vst [vmem:[#allocation13] sm:$0x3] %v6284_v12 }
 0x58b   :  { %8640 = shalt.err (!%p8637_p12)
}
 0x58c   :  { %s8641_s8 = scalar_lea.hbm %s9059_s6, 32 }
 0x58d   :  { %p8642_p13 = scmp.ne.s32.totalorder %s9059_s6, %s8641_s8  ;;  %p8645_p0 = scmp.lt.u32.totalorder %s8641_s8, %s9059_s6 }
 0x58f   :  { %p8647_p1 = pnand %p8645_p0, %p8642_p13 }
 0x591   :  { %8650 = shalt.err (!%p8647_p1)
}
 0x592   :  { %6297 = dma.vmem_to_hbm [thread:$0]  %s6295_s27, 32, %s9059_s6, [#allocation4]  }
 0x593   :  { %8659 = dma.done.wait [#allocation4], 32  }
 0x594   :  { %8660 = vsyncadd [#allocation4], 4294967264 }
 0x595   :  { %8661 = dma.done.wait [#allocation15], 64  }
 0x596   :  { %8662 = vsyncadd [#allocation15], 4294967232 }
 0x597   :  { %6327 = vsyncpa [#allocation3], 1 }
 0x598   :  { %6328 = vsyncpa [#allocation6], 1 }
 0x599   :  { %6329 = vsyncpa [#allocation9], 1 }
 0x59a   :  { %6330 = vsyncpa [#allocation12], 1 }
 0x59b   :  { %6331 = vsyncpa [#allocation4], 1 }
 0x59c   :  { %6332 = vsyncpa [#allocation15], 1 }

</bundles_post_ra>
